<compile_context>
chip_gen: v7x
topology: tpu7x:2x2x1
jax: 0.10.0
libtpu: 0.0.40
codegen_flags: <defaults>
</compile_context>

<pallas_src>
import jax
import jax.numpy as jnp
from jax import lax
from jax.experimental import pallas as pl
from jax.experimental.pallas import tpu as pltpu


# ----------------------------------- kernel -----------------------------------------

def _bottleneck_kernel(x_ref, w1_ref, b1_ref, w2_ref, b2_ref, w3_ref, b3_ref,
                       o_ref, h1_ref, col_ref):
    """One (batch element, row tile) block per grid step.

    x_ref  : (1, H, W, Cin)      bf16  full un-padded image, resident per batch element
    w1_ref : (Cin, Pslot)        bf16  1x1 conv1 (BN1 folded, output channels padded)
    w2_ref : (9*Pslot, P)        bf16  3x3 conv2, im2col layout (BN2 folded, padded K)
    w3_ref : (P, Cout)           bf16  1x1 conv3 (BN3 folded)
    b*_ref : (1, C)              f32   folded BN shifts
    o_ref  : (1, TH, W, Cout)    f32
    h1_ref : (TH+2, W+2, Pslot)  bf16  conv1 output framed with conv2's zero padding
    col_ref: (TH, W, 9*Pslot)    bf16  im2col scratch (lane-aligned slots)
    """
    _, TH, W, Cout = o_ref.shape
    H = x_ref.shape[1]
    Cin = x_ref.shape[3]
    Pslot = h1_ref.shape[2]

    t = pl.program_id(1)
    nt = pl.num_programs(1)
    r0 = pl.multiple_of(t * TH, TH)

    def conv1_rows(rows):                      # (R, W, Cin) bf16 -> (R, W, Pslot) f32
        r = rows.shape[0]
        y = jnp.dot(rows.reshape(r * W, Cin), w1_ref[...],
                    preferred_element_type=jnp.float32)
        return jnp.maximum(y + b1_ref[...], 0.0).reshape(r, W, Pslot)

    # ---- conv1 (1x1, BN folded) into the padded h1 frame ---------------------------
    h1_int = conv1_rows(x_ref[0, pl.ds(r0, TH), :, :])
    h1_ref[1:TH + 1, 1:W + 1, :] = h1_int.astype(jnp.bfloat16)

    # top / bottom halo rows: clamped reads, zeroed at the image border (3x3 zero pad)
    top = jnp.maximum(r0 - 1, 0)
    bot = jnp.minimum(r0 + TH, H - 1)
    top_keep = (t > 0).astype(jnp.float32)
    bot_keep = (t < nt - 1).astype(jnp.float32)
    h1_ref[0:1, 1:W + 1, :] = (
        conv1_rows(x_ref[0, pl.ds(top, 1), :, :]) * top_keep).astype(jnp.bfloat16)
    h1_ref[TH + 1:TH + 2, 1:W + 1, :] = (
        conv1_rows(x_ref[0, pl.ds(bot, 1), :, :]) * bot_keep).astype(jnp.bfloat16)

    # left / right zero columns of the 3x3 conv padding (cheap, written every step so
    # nothing relies on scratch persistence under megacore grid sharding)
    zcol = jnp.zeros((TH + 2, 1, Pslot), jnp.bfloat16)
    h1_ref[:, 0:1, :] = zcol
    h1_ref[:, W + 1:W + 2, :] = zcol

    # ---- conv2 (3x3) as ONE im2col matmul, K = 9*Pslot (lane-aligned slots) --------
    for k in range(9):
        ky, kx = k // 3, k % 3
        col_ref[:, :, k * Pslot:(k + 1) * Pslot] = h1_ref[ky:ky + TH, kx:kx + W, :]
    h2 = jnp.dot(col_ref[...].reshape(TH * W, 9 * Pslot), w2_ref[...],
                 preferred_element_type=jnp.float32)
    h2 = jnp.maximum(h2 + b2_ref[...], 0.0)

    # ---- conv3 (1x1, BN folded) -----------------------------------------------------
    h3 = jnp.dot(h2.astype(jnp.bfloat16), w3_ref[...],
                 preferred_element_type=jnp.float32) + b3_ref[...]

    # ---- residual add (re-read x from VMEM, bf16 -> f32) + ReLU ---------------------
    res = x_ref[0, pl.ds(r0, TH), :, :].astype(jnp.float32).reshape(TH * W, Cin)
    o_ref[...] = jnp.maximum(h3 + res, 0.0).reshape(1, TH, W, Cout).astype(o_ref.dtype)


# ---------------------------------- wrappers -----------------------------------------

def _round_up(v, m):
    return ((v + m - 1) // m) * m


def _divisors_desc(h, cap=None):
    cap = h if cap is None else min(cap, h)
    return [d for d in range(cap, 0, -1) if h % d == 0]


def _choose_row_tile(n, h):
    th = _divisors_desc(h, 32)[0]                  # largest divisor of H that is <= 32
    if n * (h // th) < 2:                          # keep >= 2 grid steps (v7x: 2 TCs)
        smaller = [d for d in _divisors_desc(h) if d < th]
        if smaller:
            th = smaller[0]
    return th


def _vmem_estimate(th, h, w, cin, p, pslot, cout):
    x_blk = h * w * cin * 2 * 2                    # resident bf16 image, double-buffered
    out_blk = th * w * cout * 4 * 2
    wgt = ((cin * pslot + 9 * pslot * p + p * cout) * 2 + (pslot + p + cout) * 4) * 2
    h1 = (th + 2) * (w + 2) * pslot * 2
    col = th * w * 9 * pslot * 2
    tmp = th * w * (pslot + p + cout + cin) * 4 + th * w * 9 * pslot * 2   # f32 temps
    return x_blk + out_blk + wgt + h1 + col + tmp


@jax.jit
def bottleneck_pallas_nhwc(x_nhwc, params):
    """NHWC Pallas path. x_nhwc: (N, H, W, Cin). Returns (N, H, W, 4*planes) f32.
    Passing bf16 input avoids an extra cast pass (the kernel streams bf16 anyway)."""
    (w1, s1, b1, w2, s2, b2, w3, s3, b3) = params
    x = x_nhwc.astype(jnp.bfloat16)
    N, H, W, Cin = x.shape
    P = w1.shape[1]
    Cout = w3.shape[1]
    assert Cout == Cin, "downsample=None requires inplanes == planes*4"

    Pslot = _round_up(P, 128)                      # lane-aligned im2col slot width

    # Fold BN scales into conv weights (f32), zero-pad conv1/conv2 channel dims to
    # Pslot, then cast to bf16 for the MXU (zero channels contribute nothing).
    w1f = jnp.zeros((Cin, Pslot), jnp.float32).at[:, :P].set(w1 * s1[None, :])
    w1f = w1f.astype(jnp.bfloat16)
    b1f = jnp.zeros((1, Pslot), jnp.float32).at[:, :P].set(
        jnp.asarray(b1, jnp.float32).reshape(1, P))
    w2f = jnp.zeros((3, 3, Pslot, P), jnp.float32).at[:, :, :P, :].set(w2 * s2)
    w2f = w2f.reshape(9 * Pslot, P).astype(jnp.bfloat16)
    w3f = (w3 * s3[None, :]).astype(jnp.bfloat16)
    b2f = jnp.asarray(b2, jnp.float32).reshape(1, P)
    b3f = jnp.asarray(b3, jnp.float32).reshape(1, Cout)

    # Generation-aware VMEM budget: shrink TH rather than over-requesting scoped VMEM.
    try:
        vmem_cap = int(pltpu.get_tpu_info().vmem_capacity_bytes)
    except Exception:
        vmem_cap = 64 * 1024 * 1024                # v7x per-TC size (most conservative)
    usable = (3 * vmem_cap) // 4
    TH = _choose_row_tile(N, H)
    while TH > 1 and _vmem_estimate(TH, H, W, Cin, P, Pslot, Cout) > usable:
        smaller = [d for d in _divisors_desc(H) if d < TH]
        TH = smaller[0] if smaller else 1
    # TODO(synk): if the full resident image alone exceeds the VMEM budget (very large
    # H*W*Cin), a row-blocked input path with explicit halo DMA would be required.
    est = _vmem_estimate(TH, H, W, Cin, P, Pslot, Cout)
    HT = H // TH

    cparams = dict(dimension_semantics=("parallel", "parallel"))
    if est > 32 * 1024 * 1024:
        cparams["vmem_limit_bytes"] = min(int(est * 5 // 4), usable)

    flops = 2 * N * H * W * (Cin * Pslot + 9 * Pslot * P + P * Cout)
    bytes_accessed = (N * H * W * Cin * 2 + N * H * W * Cout * 4
                      + (Cin * Pslot + 9 * Pslot * P + P * Cout) * 2)

    zero2 = lambda n, t: (0, 0)
    out = pl.pallas_call(
        _bottleneck_kernel,
        out_shape=jax.ShapeDtypeStruct((N, H, W, Cout), jnp.float32),
        grid_spec=pltpu.PrefetchScalarGridSpec(
            num_scalar_prefetch=0,
            grid=(N, HT),
            in_specs=[
                # Full image, resident per batch element (block index constant in t).
                pl.BlockSpec((1, H, W, Cin), lambda n, t: (n, 0, 0, 0)),
                # Constant-index weight/bias blocks.  (pl.Buffered(1) would drop the
                # second VMEM copy on v7x; omitted for portability.)
                pl.BlockSpec((Cin, Pslot), zero2),
                pl.BlockSpec((1, Pslot), zero2),
                pl.BlockSpec((9 * Pslot, P), zero2),
                pl.BlockSpec((1, P), zero2),
                pl.BlockSpec((P, Cout), zero2),
                pl.BlockSpec((1, Cout), zero2),
            ],
            out_specs=pl.BlockSpec((1, TH, W, Cout), lambda n, t: (n, t, 0, 0)),
            scratch_shapes=[
                pltpu.VMEM((TH + 2, W + 2, Pslot), jnp.bfloat16),   # h1 padded frame
                pltpu.VMEM((TH, W, 9 * Pslot), jnp.bfloat16),       # im2col
            ],
        ),
        compiler_params=pltpu.CompilerParams(**cparams),
        cost_estimate=pl.CostEstimate(flops=flops, transcendentals=0,
                                      bytes_accessed=bytes_accessed),
    )(x, w1f, b1f, w2f, b2f, w3f, b3f)
    return out


@jax.jit
def bottleneck_pallas(x_nchw, params):
    """PyTorch-layout wrapper: (N, Cin, H, W) -> (N, 4*planes, H, W).
    In an NHWC pipeline call bottleneck_pallas_nhwc directly and skip both transposes
    (they are pure layout plumbing and dominate HBM traffic for this block)."""
    x = jnp.transpose(x_nchw, (0, 2, 3, 1))
    y = bottleneck_pallas_nhwc(x, params)
    return jnp.transpose(y, (0, 3, 1, 2))


# -------------------- parameter construction + pure-JAX reference --------------------

def make_params(key, inplanes, planes, eps=1e-5):
    ks = jax.random.split(key, 16)
    P, Cout = planes, planes * 4

    w1 = jax.random.normal(ks[0], (inplanes, P), jnp.float32) * 0.1      # 1x1: (Cin, P)
    w2 = jax.random.normal(ks[1], (3, 3, P, P), jnp.float32) * 0.1       # HWIO
    w3 = jax.random.normal(ks[2], (P, Cout), jnp.float32) * 0.1          # 1x1: (P, 4P)

    def bn(kg, kb, km, kv, c):
        gamma = 1.0 + 0.1 * jax.random.normal(kg, (c,), jnp.float32)
        beta = 0.1 * jax.random.normal(kb, (c,), jnp.float32)
        mean = 0.1 * jax.random.normal(km, (c,), jnp.float32)
        var = 0.5 + jnp.abs(jax.random.normal(kv, (c,), jnp.float32))
        scale = gamma / jnp.sqrt(var + eps)
        shift = beta - mean * scale
        return scale, shift

    s1, b1 = bn(ks[3], ks[4], ks[5], ks[6], P)
    s2, b2 = bn(ks[7], ks[8], ks[9], ks[10], P)
    s3, b3 = bn(ks[11], ks[12], ks[13], ks[14], Cout)
    return (w1, s1, b1, w2, s2, b2, w3, s3, b3)


def bottleneck_reference(x_nchw, params):
    """Pure-JAX reference mirroring the kernel's numerics: bf16-streamed input,
    BN scales folded into bf16 weights, f32 accumulation, bf16 rounding between convs,
    bf16-rounded residual upcast to f32 at the add."""
    (w1, s1, b1, w2, s2, b2, w3, s3, b3) = params
    x = jnp.transpose(x_nchw, (0, 2, 3, 1)).astype(jnp.bfloat16)
    xf = x.astype(jnp.float32)
    Cin, P = w1.shape
    Cout = w3.shape[1]
    dn = ("NHWC", "HWIO", "NHWC")

    w1f = (w1 * s1[None, :]).astype(jnp.bfloat16).reshape(1, 1, Cin, P)
    w2f = (w2 * s2).astype(jnp.bfloat16)
    w3f = (w3 * s3[None, :]).astype(jnp.bfloat16).reshape(1, 1, P, Cout)

    def conv(a, w, pad):
        return lax.conv_general_dilated(a, w, (1, 1), pad, dimension_numbers=dn,
                                        preferred_element_type=jnp.float32)

    y = jnp.maximum(conv(x, w1f, "VALID") + b1, 0.0)
    y = jnp.maximum(conv(y.astype(jnp.bfloat16), w2f, ((1, 1), (1, 1))) + b2, 0.0)
    y = conv(y.astype(jnp.bfloat16), w3f, "VALID") + b3
    y = jnp.maximum(y + xf, 0.0)
    return jnp.transpose(y, (0, 3, 1, 2))


if __name__ == "__main__":
    key = jax.random.PRNGKey(0)
    kx, kp = jax.random.split(key)

    N, H, W = 2, 16, 16
    planes = 4
    inplanes = planes * 4          # 16, so residual add works with downsample=None

    x = jax.random.normal(kx, (N, inplanes, H, W), jnp.float32)
    params = make_params(kp, inplanes, planes)

    out = jax.block_until_ready(bottleneck_pallas(x, params))
    ref = bottleneck_reference(x, params)

    assert out.shape == (N, planes * 4, H, W)
    assert jnp.allclose(out, ref, rtol=5e-3, atol=5e-3), "mismatch vs reference"

    print("KERNEL_OK")
</pallas_src>

<mosaic_0001>
module attributes {stable_mosaic.version = 11 : i64} {
  func.func @_bottleneck_kernel(%arg0: i32, %arg1: i32, %arg2: memref<1x16x16x16xbf16, #tpu.memory_space<vmem>>, %arg3: memref<16x128xbf16, #tpu.memory_space<vmem>>, %arg4: memref<1x128xf32, #tpu.memory_space<vmem>>, %arg5: memref<1152x4xbf16, #tpu.memory_space<vmem>>, %arg6: memref<1x4xf32, #tpu.memory_space<vmem>>, %arg7: memref<4x16xbf16, #tpu.memory_space<vmem>>, %arg8: memref<1x16xf32, #tpu.memory_space<vmem>>, %arg9: memref<1x16x16x16xf32, #tpu.memory_space<vmem>>, %arg10: memref<18x18x128xbf16, #tpu.memory_space<vmem>>, %arg11: memref<16x16x1152xbf16, #tpu.memory_space<vmem>>) attributes {dimension_semantics = [#tpu.dimension_semantics<parallel>, #tpu.dimension_semantics<parallel>], iteration_bounds = array<i64: 2, 1>, scalar_prefetch = 0 : i64, scratch_operands = 2 : i64, tpu.core_type = #tpu.core_type<tc>, window_params = [{transform_indices = @transform_0, window_bounds = array<i64: 1, 16, 16, 16>}, {pipeline_mode = #tpu.pipeline_mode<synchronous>, transform_indices = @transform_1, window_bounds = array<i64: 16, 128>}, {pipeline_mode = #tpu.pipeline_mode<synchronous>, transform_indices = @transform_2, window_bounds = array<i64: 1, 128>}, {pipeline_mode = #tpu.pipeline_mode<synchronous>, transform_indices = @transform_3, window_bounds = array<i64: 1152, 4>}, {pipeline_mode = #tpu.pipeline_mode<synchronous>, transform_indices = @transform_4, window_bounds = array<i64: 1, 4>}, {pipeline_mode = #tpu.pipeline_mode<synchronous>, transform_indices = @transform_5, window_bounds = array<i64: 4, 16>}, {pipeline_mode = #tpu.pipeline_mode<synchronous>, transform_indices = @transform_6, window_bounds = array<i64: 1, 16>}, {transform_indices = @transform_7, window_bounds = array<i64: 1, 16, 16, 16>}]} {
    %c16_i32 = arith.constant 16 : i32
    %0 = arith.muli %arg1, %c16_i32 : i32
    %1 = tpu.assume_multiple %0, 16 : i32
    %c0 = arith.constant 0 : index
    %2 = arith.index_cast %1 : i32 to index
    %c0_0 = arith.constant 0 : index
    %c0_1 = arith.constant 0 : index
    %3 = vector.load %arg2[%c0, %2, %c0_0, %c0_1] : memref<1x16x16x16xbf16, #tpu.memory_space<vmem>>, vector<1x16x16x16xbf16>
    %4 = vector.shape_cast %3 : vector<1x16x16x16xbf16> to vector<16x16x16xbf16>
    %5 = vector.shape_cast %4 : vector<16x16x16xbf16> to vector<256x16xbf16>
    %c0_2 = arith.constant 0 : index
    %c0_3 = arith.constant 0 : index
    %6 = vector.load %arg3[%c0_2, %c0_3] : memref<16x128xbf16, #tpu.memory_space<vmem>>, vector<16x128xbf16>
    %cst = arith.constant dense<0.000000e+00> : vector<256x128xf32>
    %7 = tpu.matmul %5, %6, %cst {dimension_numbers = #tpu.dot_dimension_numbers<[1], [0], [0], [1], [0, 0, 1, 1], [], []>} : vector<256x16xbf16>, vector<16x128xbf16>, vector<256x128xf32> -> vector<256x128xf32>
    %c0_4 = arith.constant 0 : index
    %c0_5 = arith.constant 0 : index
    %8 = vector.load %arg4[%c0_4, %c0_5] : memref<1x128xf32, #tpu.memory_space<vmem>>, vector<1x128xf32>
    %9 = vector.broadcast %8 : vector<1x128xf32> to vector<256x128xf32>
    %10 = arith.addf %7, %9 : vector<256x128xf32>
    %cst_6 = arith.constant 0.000000e+00 : f32
    %11 = vector.broadcast %cst_6 : f32 to vector<256x128xf32>
    %12 = arith.maximumf %10, %11 : vector<256x128xf32>
    %13 = vector.shape_cast %12 : vector<256x128xf32> to vector<16x16x128xf32>
    %14 = arith.truncf %13 : vector<16x16x128xf32> to vector<16x16x128xbf16>
    %c1 = arith.constant 1 : index
    %c1_7 = arith.constant 1 : index
    %c0_8 = arith.constant 0 : index
    %15 = vector.load %arg10[%c1, %c1_7, %c0_8] : memref<18x18x128xbf16, #tpu.memory_space<vmem>>, vector<16x16x128xbf16>
    tpu.vector_store %arg10[%c1, %c1_7, %c0_8], %14 {strides = array<i32>} : memref<18x18x128xbf16, #tpu.memory_space<vmem>>, vector<16x16x128xbf16>,
    %c1_i32 = arith.constant 1 : i32
    %16 = arith.subi %1, %c1_i32 : i32
    %c0_i32 = arith.constant 0 : i32
    %17 = arith.maxsi %16, %c0_i32 : i32
    %c16_i32_9 = arith.constant 16 : i32
    %18 = arith.addi %1, %c16_i32_9 : i32
    %c15_i32 = arith.constant 15 : i32
    %19 = arith.minsi %18, %c15_i32 : i32
    %c0_i32_10 = arith.constant 0 : i32
    %20 = arith.cmpi sgt, %arg1, %c0_i32_10 : i32
    %21 = arith.extui %20 : i1 to i32
    %22 = arith.sitofp %21 : i32 to f32
    %c0_i32_11 = arith.constant 0 : i32
    %23 = arith.cmpi slt, %arg1, %c0_i32_11 : i32
    %24 = arith.extui %23 : i1 to i32
    %25 = arith.sitofp %24 : i32 to f32
    %c0_12 = arith.constant 0 : index
    %26 = arith.index_cast %17 : i32 to index
    %c0_13 = arith.constant 0 : index
    %c0_14 = arith.constant 0 : index
    %27 = vector.load %arg2[%c0_12, %26, %c0_13, %c0_14] : memref<1x16x16x16xbf16, #tpu.memory_space<vmem>>, vector<1x1x16x16xbf16>
    %28 = vector.shape_cast %27 : vector<1x1x16x16xbf16> to vector<1x16x16xbf16>
    %29 = vector.shape_cast %28 : vector<1x16x16xbf16> to vector<16x16xbf16>
    %c0_15 = arith.constant 0 : index
    %c0_16 = arith.constant 0 : index
    %30 = vector.load %arg3[%c0_15, %c0_16] : memref<16x128xbf16, #tpu.memory_space<vmem>>, vector<16x128xbf16>
    %cst_17 = arith.constant dense<0.000000e+00> : vector<16x128xf32>
    %31 = tpu.matmul %29, %30, %cst_17 {dimension_numbers = #tpu.dot_dimension_numbers<[1], [0], [0], [1], [0, 0, 1, 1], [], []>} : vector<16x16xbf16>, vector<16x128xbf16>, vector<16x128xf32> -> vector<16x128xf32>
    %c0_18 = arith.constant 0 : index
    %c0_19 = arith.constant 0 : index
    %32 = vector.load %arg4[%c0_18, %c0_19] : memref<1x128xf32, #tpu.memory_space<vmem>>, vector<1x128xf32>
    %33 = vector.broadcast %32 : vector<1x128xf32> to vector<16x128xf32>
    %34 = arith.addf %31, %33 : vector<16x128xf32>
    %cst_20 = arith.constant 0.000000e+00 : f32
    %35 = vector.broadcast %cst_20 : f32 to vector<16x128xf32>
    %36 = arith.maximumf %34, %35 : vector<16x128xf32>
    %37 = vector.shape_cast %36 : vector<16x128xf32> to vector<1x16x128xf32>
    %38 = vector.broadcast %22 : f32 to vector<1x16x128xf32>
    %39 = arith.mulf %37, %38 : vector<1x16x128xf32>
    %40 = arith.truncf %39 : vector<1x16x128xf32> to vector<1x16x128xbf16>
    %c0_21 = arith.constant 0 : index
    %c1_22 = arith.constant 1 : index
    %c0_23 = arith.constant 0 : index
    %41 = vector.load %arg10[%c0_21, %c1_22, %c0_23] : memref<18x18x128xbf16, #tpu.memory_space<vmem>>, vector<1x16x128xbf16>
    tpu.vector_store %arg10[%c0_21, %c1_22, %c0_23], %40 {strides = array<i32>} : memref<18x18x128xbf16, #tpu.memory_space<vmem>>, vector<1x16x128xbf16>,
    %c0_24 = arith.constant 0 : index
    %42 = arith.index_cast %19 : i32 to index
    %c0_25 = arith.constant 0 : index
    %c0_26 = arith.constant 0 : index
    %43 = vector.load %arg2[%c0_24, %42, %c0_25, %c0_26] : memref<1x16x16x16xbf16, #tpu.memory_space<vmem>>, vector<1x1x16x16xbf16>
    %44 = vector.shape_cast %43 : vector<1x1x16x16xbf16> to vector<1x16x16xbf16>
    %45 = vector.shape_cast %44 : vector<1x16x16xbf16> to vector<16x16xbf16>
    %c0_27 = arith.constant 0 : index
    %c0_28 = arith.constant 0 : index
    %46 = vector.load %arg3[%c0_27, %c0_28] : memref<16x128xbf16, #tpu.memory_space<vmem>>, vector<16x128xbf16>
    %cst_29 = arith.constant dense<0.000000e+00> : vector<16x128xf32>
    %47 = tpu.matmul %45, %46, %cst_29 {dimension_numbers = #tpu.dot_dimension_numbers<[1], [0], [0], [1], [0, 0, 1, 1], [], []>} : vector<16x16xbf16>, vector<16x128xbf16>, vector<16x128xf32> -> vector<16x128xf32>
    %c0_30 = arith.constant 0 : index
    %c0_31 = arith.constant 0 : index
    %48 = vector.load %arg4[%c0_30, %c0_31] : memref<1x128xf32, #tpu.memory_space<vmem>>, vector<1x128xf32>
    %49 = vector.broadcast %48 : vector<1x128xf32> to vector<16x128xf32>
    %50 = arith.addf %47, %49 : vector<16x128xf32>
    %cst_32 = arith.constant 0.000000e+00 : f32
    %51 = vector.broadcast %cst_32 : f32 to vector<16x128xf32>
    %52 = arith.maximumf %50, %51 : vector<16x128xf32>
    %53 = vector.shape_cast %52 : vector<16x128xf32> to vector<1x16x128xf32>
    %54 = vector.broadcast %25 : f32 to vector<1x16x128xf32>
    %55 = arith.mulf %53, %54 : vector<1x16x128xf32>
    %56 = arith.truncf %55 : vector<1x16x128xf32> to vector<1x16x128xbf16>
    %c17 = arith.constant 17 : index
    %c1_33 = arith.constant 1 : index
    %c0_34 = arith.constant 0 : index
    %57 = vector.load %arg10[%c17, %c1_33, %c0_34] : memref<18x18x128xbf16, #tpu.memory_space<vmem>>, vector<1x16x128xbf16>
    tpu.vector_store %arg10[%c17, %c1_33, %c0_34], %56 {strides = array<i32>} : memref<18x18x128xbf16, #tpu.memory_space<vmem>>, vector<1x16x128xbf16>,
    %cst_35 = arith.constant 0.000000e+00 : bf16
    %58 = vector.broadcast %cst_35 : bf16 to vector<18x1x128xbf16>
    %c0_36 = arith.constant 0 : index
    %c0_37 = arith.constant 0 : index
    %c0_38 = arith.constant 0 : index
    %59 = vector.load %arg10[%c0_36, %c0_37, %c0_38] : memref<18x18x128xbf16, #tpu.memory_space<vmem>>, vector<18x1x128xbf16>
    tpu.vector_store %arg10[%c0_36, %c0_37, %c0_38], %58 {strides = array<i32>} : memref<18x18x128xbf16, #tpu.memory_space<vmem>>, vector<18x1x128xbf16>,
    %c0_39 = arith.constant 0 : index
    %c17_40 = arith.constant 17 : index
    %c0_41 = arith.constant 0 : index
    %60 = vector.load %arg10[%c0_39, %c17_40, %c0_41] : memref<18x18x128xbf16, #tpu.memory_space<vmem>>, vector<18x1x128xbf16>
    tpu.vector_store %arg10[%c0_39, %c17_40, %c0_41], %58 {strides = array<i32>} : memref<18x18x128xbf16, #tpu.memory_space<vmem>>, vector<18x1x128xbf16>,
    %c0_42 = arith.constant 0 : index
    %c0_43 = arith.constant 0 : index
    %c0_44 = arith.constant 0 : index
    %61 = vector.load %arg10[%c0_42, %c0_43, %c0_44] : memref<18x18x128xbf16, #tpu.memory_space<vmem>>, vector<16x16x128xbf16>
    %c0_45 = arith.constant 0 : index
    %c0_46 = arith.constant 0 : index
    %c0_47 = arith.constant 0 : index
    %62 = vector.load %arg11[%c0_45, %c0_46, %c0_47] : memref<16x16x1152xbf16, #tpu.memory_space<vmem>>, vector<16x16x128xbf16>
    tpu.vector_store %arg11[%c0_45, %c0_46, %c0_47], %61 {strides = array<i32>} : memref<16x16x1152xbf16, #tpu.memory_space<vmem>>, vector<16x16x128xbf16>,
    %c0_48 = arith.constant 0 : index
    %c1_49 = arith.constant 1 : index
    %c0_50 = arith.constant 0 : index
    %63 = vector.load %arg10[%c0_48, %c1_49, %c0_50] : memref<18x18x128xbf16, #tpu.memory_space<vmem>>, vector<16x16x128xbf16>
    %c0_51 = arith.constant 0 : index
    %c0_52 = arith.constant 0 : index
    %c128 = arith.constant 128 : index
    %64 = vector.load %arg11[%c0_51, %c0_52, %c128] : memref<16x16x1152xbf16, #tpu.memory_space<vmem>>, vector<16x16x128xbf16>
    tpu.vector_store %arg11[%c0_51, %c0_52, %c128], %63 {strides = array<i32>} : memref<16x16x1152xbf16, #tpu.memory_space<vmem>>, vector<16x16x128xbf16>,
    %c0_53 = arith.constant 0 : index
    %c2 = arith.constant 2 : index
    %c0_54 = arith.constant 0 : index
    %65 = vector.load %arg10[%c0_53, %c2, %c0_54] : memref<18x18x128xbf16, #tpu.memory_space<vmem>>, vector<16x16x128xbf16>
    %c0_55 = arith.constant 0 : index
    %c0_56 = arith.constant 0 : index
    %c256 = arith.constant 256 : index
    %66 = vector.load %arg11[%c0_55, %c0_56, %c256] : memref<16x16x1152xbf16, #tpu.memory_space<vmem>>, vector<16x16x128xbf16>
    tpu.vector_store %arg11[%c0_55, %c0_56, %c256], %65 {strides = array<i32>} : memref<16x16x1152xbf16, #tpu.memory_space<vmem>>, vector<16x16x128xbf16>,
    %c1_57 = arith.constant 1 : index
    %c0_58 = arith.constant 0 : index
    %c0_59 = arith.constant 0 : index
    %67 = vector.load %arg10[%c1_57, %c0_58, %c0_59] : memref<18x18x128xbf16, #tpu.memory_space<vmem>>, vector<16x16x128xbf16>
    %c0_60 = arith.constant 0 : index
    %c0_61 = arith.constant 0 : index
    %c384 = arith.constant 384 : index
    %68 = vector.load %arg11[%c0_60, %c0_61, %c384] : memref<16x16x1152xbf16, #tpu.memory_space<vmem>>, vector<16x16x128xbf16>
    tpu.vector_store %arg11[%c0_60, %c0_61, %c384], %67 {strides = array<i32>} : memref<16x16x1152xbf16, #tpu.memory_space<vmem>>, vector<16x16x128xbf16>,
    %c1_62 = arith.constant 1 : index
    %c1_63 = arith.constant 1 : index
    %c0_64 = arith.constant 0 : index
    %69 = vector.load %arg10[%c1_62, %c1_63, %c0_64] : memref<18x18x128xbf16, #tpu.memory_space<vmem>>, vector<16x16x128xbf16>
    %c0_65 = arith.constant 0 : index
    %c0_66 = arith.constant 0 : index
    %c512 = arith.constant 512 : index
    %70 = vector.load %arg11[%c0_65, %c0_66, %c512] : memref<16x16x1152xbf16, #tpu.memory_space<vmem>>, vector<16x16x128xbf16>
    tpu.vector_store %arg11[%c0_65, %c0_66, %c512], %69 {strides = array<i32>} : memref<16x16x1152xbf16, #tpu.memory_space<vmem>>, vector<16x16x128xbf16>,
    %c1_67 = arith.constant 1 : index
    %c2_68 = arith.constant 2 : index
    %c0_69 = arith.constant 0 : index
    %71 = vector.load %arg10[%c1_67, %c2_68, %c0_69] : memref<18x18x128xbf16, #tpu.memory_space<vmem>>, vector<16x16x128xbf16>
    %c0_70 = arith.constant 0 : index
    %c0_71 = arith.constant 0 : index
    %c640 = arith.constant 640 : index
    %72 = vector.load %arg11[%c0_70, %c0_71, %c640] : memref<16x16x1152xbf16, #tpu.memory_space<vmem>>, vector<16x16x128xbf16>
    tpu.vector_store %arg11[%c0_70, %c0_71, %c640], %71 {strides = array<i32>} : memref<16x16x1152xbf16, #tpu.memory_space<vmem>>, vector<16x16x128xbf16>,
    %c2_72 = arith.constant 2 : index
    %c0_73 = arith.constant 0 : index
    %c0_74 = arith.constant 0 : index
    %73 = vector.load %arg10[%c2_72, %c0_73, %c0_74] : memref<18x18x128xbf16, #tpu.memory_space<vmem>>, vector<16x16x128xbf16>
    %c0_75 = arith.constant 0 : index
    %c0_76 = arith.constant 0 : index
    %c768 = arith.constant 768 : index
    %74 = vector.load %arg11[%c0_75, %c0_76, %c768] : memref<16x16x1152xbf16, #tpu.memory_space<vmem>>, vector<16x16x128xbf16>
    tpu.vector_store %arg11[%c0_75, %c0_76, %c768], %73 {strides = array<i32>} : memref<16x16x1152xbf16, #tpu.memory_space<vmem>>, vector<16x16x128xbf16>,
    %c2_77 = arith.constant 2 : index
    %c1_78 = arith.constant 1 : index
    %c0_79 = arith.constant 0 : index
    %75 = vector.load %arg10[%c2_77, %c1_78, %c0_79] : memref<18x18x128xbf16, #tpu.memory_space<vmem>>, vector<16x16x128xbf16>
    %c0_80 = arith.constant 0 : index
    %c0_81 = arith.constant 0 : index
    %c896 = arith.constant 896 : index
    %76 = vector.load %arg11[%c0_80, %c0_81, %c896] : memref<16x16x1152xbf16, #tpu.memory_space<vmem>>, vector<16x16x128xbf16>
    tpu.vector_store %arg11[%c0_80, %c0_81, %c896], %75 {strides = array<i32>} : memref<16x16x1152xbf16, #tpu.memory_space<vmem>>, vector<16x16x128xbf16>,
    %c2_82 = arith.constant 2 : index
    %c2_83 = arith.constant 2 : index
    %c0_84 = arith.constant 0 : index
    %77 = vector.load %arg10[%c2_82, %c2_83, %c0_84] : memref<18x18x128xbf16, #tpu.memory_space<vmem>>, vector<16x16x128xbf16>
    %c0_85 = arith.constant 0 : index
    %c0_86 = arith.constant 0 : index
    %c1024 = arith.constant 1024 : index
    %78 = vector.load %arg11[%c0_85, %c0_86, %c1024] : memref<16x16x1152xbf16, #tpu.memory_space<vmem>>, vector<16x16x128xbf16>
    tpu.vector_store %arg11[%c0_85, %c0_86, %c1024], %77 {strides = array<i32>} : memref<16x16x1152xbf16, #tpu.memory_space<vmem>>, vector<16x16x128xbf16>,
    %c0_87 = arith.constant 0 : index
    %c0_88 = arith.constant 0 : index
    %c0_89 = arith.constant 0 : index
    %79 = vector.load %arg11[%c0_87, %c0_88, %c0_89] : memref<16x16x1152xbf16, #tpu.memory_space<vmem>>, vector<16x16x1152xbf16>
    %80 = vector.shape_cast %79 : vector<16x16x1152xbf16> to vector<256x1152xbf16>
    %c0_90 = arith.constant 0 : index
    %c0_91 = arith.constant 0 : index
    %81 = vector.load %arg5[%c0_90, %c0_91] : memref<1152x4xbf16, #tpu.memory_space<vmem>>, vector<1152x4xbf16>
    %cst_92 = arith.constant dense<0.000000e+00> : vector<256x4xf32>
    %82 = tpu.matmul %80, %81, %cst_92 {dimension_numbers = #tpu.dot_dimension_numbers<[1], [0], [0], [1], [0, 0, 1, 1], [], []>} : vector<256x1152xbf16>, vector<1152x4xbf16>, vector<256x4xf32> -> vector<256x4xf32>
    %c0_93 = arith.constant 0 : index
    %c0_94 = arith.constant 0 : index
    %83 = vector.load %arg6[%c0_93, %c0_94] : memref<1x4xf32, #tpu.memory_space<vmem>>, vector<1x4xf32>
    %84 = vector.broadcast %83 : vector<1x4xf32> to vector<256x4xf32>
    %85 = arith.addf %82, %84 : vector<256x4xf32>
    %cst_95 = arith.constant 0.000000e+00 : f32
    %86 = vector.broadcast %cst_95 : f32 to vector<256x4xf32>
    %87 = arith.maximumf %85, %86 : vector<256x4xf32>
    %88 = arith.truncf %87 : vector<256x4xf32> to vector<256x4xbf16>
    %c0_96 = arith.constant 0 : index
    %c0_97 = arith.constant 0 : index
    %89 = vector.load %arg7[%c0_96, %c0_97] : memref<4x16xbf16, #tpu.memory_space<vmem>>, vector<4x16xbf16>
    %cst_98 = arith.constant dense<0.000000e+00> : vector<256x16xf32>
    %90 = tpu.matmul %88, %89, %cst_98 {dimension_numbers = #tpu.dot_dimension_numbers<[1], [0], [0], [1], [0, 0, 1, 1], [], []>} : vector<256x4xbf16>, vector<4x16xbf16>, vector<256x16xf32> -> vector<256x16xf32>
    %c0_99 = arith.constant 0 : index
    %c0_100 = arith.constant 0 : index
    %91 = vector.load %arg8[%c0_99, %c0_100] : memref<1x16xf32, #tpu.memory_space<vmem>>, vector<1x16xf32>
    %92 = vector.broadcast %91 : vector<1x16xf32> to vector<256x16xf32>
    %93 = arith.addf %90, %92 : vector<256x16xf32>
    %c0_101 = arith.constant 0 : index
    %94 = arith.index_cast %1 : i32 to index
    %c0_102 = arith.constant 0 : index
    %c0_103 = arith.constant 0 : index
    %95 = vector.load %arg2[%c0_101, %94, %c0_102, %c0_103] : memref<1x16x16x16xbf16, #tpu.memory_space<vmem>>, vector<1x16x16x16xbf16>
    %96 = vector.shape_cast %95 : vector<1x16x16x16xbf16> to vector<16x16x16xbf16>
    %97 = arith.extf %96 : vector<16x16x16xbf16> to vector<16x16x16xf32>
    %98 = vector.shape_cast %97 : vector<16x16x16xf32> to vector<256x16xf32>
    %99 = arith.addf %93, %98 : vector<256x16xf32>
    %cst_104 = arith.constant 0.000000e+00 : f32
    %100 = vector.broadcast %cst_104 : f32 to vector<256x16xf32>
    %101 = arith.maximumf %99, %100 : vector<256x16xf32>
    %102 = vector.shape_cast %101 : vector<256x16xf32> to vector<1x16x16x16xf32>
    %c0_105 = arith.constant 0 : index
    %c0_106 = arith.constant 0 : index
    %c0_107 = arith.constant 0 : index
    %c0_108 = arith.constant 0 : index
    %103 = vector.load %arg9[%c0_105, %c0_106, %c0_107, %c0_108] : memref<1x16x16x16xf32, #tpu.memory_space<vmem>>, vector<1x16x16x16xf32>
    tpu.vector_store %arg9[%c0_105, %c0_106, %c0_107, %c0_108], %102 {strides = array<i32>} : memref<1x16x16x16xf32, #tpu.memory_space<vmem>>, vector<1x16x16x16xf32>,
    return
  }
  func.func @transform_0(%arg0: i32, %arg1: i32) -> (i32, i32, i32, i32) {
    %c0_i32 = arith.constant 0 : i32
    %c0_i32_0 = arith.constant 0 : i32
    %c0_i32_1 = arith.constant 0 : i32
    %c0_i32_2 = arith.constant 0 : i32
    return %arg0, %c0_i32, %c0_i32_0, %c0_i32_1 : i32, i32, i32, i32
  }
  func.func @transform_1(%arg0: i32, %arg1: i32) -> (i32, i32) {
    %c0_i32 = arith.constant 0 : i32
    %c0_i32_0 = arith.constant 0 : i32
    %c0_i32_1 = arith.constant 0 : i32
    return %c0_i32, %c0_i32_0 : i32, i32
  }
  func.func @transform_2(%arg0: i32, %arg1: i32) -> (i32, i32) {
    %c0_i32 = arith.constant 0 : i32
    %c0_i32_0 = arith.constant 0 : i32
    %c0_i32_1 = arith.constant 0 : i32
    return %c0_i32, %c0_i32_0 : i32, i32
  }
  func.func @transform_3(%arg0: i32, %arg1: i32) -> (i32, i32) {
    %c0_i32 = arith.constant 0 : i32
    %c0_i32_0 = arith.constant 0 : i32
    %c0_i32_1 = arith.constant 0 : i32
    return %c0_i32, %c0_i32_0 : i32, i32
  }
  func.func @transform_4(%arg0: i32, %arg1: i32) -> (i32, i32) {
    %c0_i32 = arith.constant 0 : i32
    %c0_i32_0 = arith.constant 0 : i32
    %c0_i32_1 = arith.constant 0 : i32
    return %c0_i32, %c0_i32_0 : i32, i32
  }
  func.func @transform_5(%arg0: i32, %arg1: i32) -> (i32, i32) {
    %c0_i32 = arith.constant 0 : i32
    %c0_i32_0 = arith.constant 0 : i32
    %c0_i32_1 = arith.constant 0 : i32
    return %c0_i32, %c0_i32_0 : i32, i32
  }
  func.func @transform_6(%arg0: i32, %arg1: i32) -> (i32, i32) {
    %c0_i32 = arith.constant 0 : i32
    %c0_i32_0 = arith.constant 0 : i32
    %c0_i32_1 = arith.constant 0 : i32
    return %c0_i32, %c0_i32_0 : i32, i32
  }
  func.func @transform_7(%arg0: i32, %arg1: i32) -> (i32, i32, i32, i32) {
    %c0_i32 = arith.constant 0 : i32
    %c0_i32_0 = arith.constant 0 : i32
    %c0_i32_1 = arith.constant 0 : i32
    return %arg0, %arg1, %c0_i32, %c0_i32_0 : i32, i32, i32, i32
  }
}

</mosaic_0001>

<bundles_post_ra>
// kernel: bottleneck_pallas_nhwc.1
= control target key start
LH: loop header
LB: loop body
LE: loop exit
PB: predicated region body
PF: predicated region fallthrough
CT: control target
= control target key end

     0   :  { %12 = vsyncpa [#allocation5], 0  ;;  %s8929_s0 = inlined_call_operand.vmem [shape: bf16[2,16,16,16], index: 0, kind: input, shape index: {}]   ;;  %s8930_s1 = inlined_call_operand.vmem [shape: bf16[16,128], index: 1, kind: input, shape index: {}]   ;;  %s8931_s2 = inlined_call_operand.vmem [shape: f32[1,128], index: 2, kind: input, shape index: {}]   ;;  %s8932_s3 = inlined_call_operand.vmem [shape: bf16[1152,4], index: 3, kind: input, shape index: {}]   ;;  %s8933_s4 = inlined_call_operand.vmem [shape: f32[1,4], index: 4, kind: input, shape index: {}]   ;;  %s8934_s5 = inlined_call_operand.vmem [shape: bf16[4,16], index: 5, kind: input, shape index: {}]   ;;  %s8935_s6 = inlined_call_operand.vmem [shape: f32[1,16], index: 6, kind: input, shape index: {}]   ;;  %s8936_s7 = inlined_call_operand.hbm [shape: f32[2,16,16,16], index: 7, kind: output, shape index: {}]  }
   0x1   :  { %14 = vsyncpa [#allocation5 + $0x1], 0  ;;  %s7700_s24 = smov 0   ;;  %s7702_s25 = smov 0  }
   0x2   :  { %s7704_s26 = smov 0   ;;  %s7706_s27 = smov 0  }
   0x3   :  { %s7708_s28 = smov 0   ;;  %s7710_s29 = smov 0  }
   0x4 LB: > { %s6000_s30 = sadd.s32 4294967295, %s7653_s29   ;;  %s6001_s8 = sadd.s32 4294967294, %s7653_s29   ;;  %s7653_s29 = sphi %s7710_s29, %s20_s29   ;;  %s7649_s28 = sphi %s7708_s28, %s8951_s28   ;;  %s7645_s27 = sphi %s7706_s27, %s8950_s27   ;;  %s7641_s26 = sphi %s7704_s26, %s8949_s26   ;;  %s7637_s25 = sphi %s7702_s25, %s8948_s25   ;;  %s7633_s24 = sphi %s7700_s24, %s8947_s24  }
   0x5   : > { %s32_s9 = sadd.s32 1, %s7649_s28  ;;  %s193_s10 = sadd.s32 1, %s7641_s26 }
   0x6   : > { %p34_p0 = scmp.ge.s32.totalorder %s32_s9, 2  ;;  %p203_p1 = scmp.ne.s32.totalorder %s7641_s26, %s7637_s25 }
   0x7   : > { %p204_p2 = scmp.eq.s32.totalorder %s6000_s30, 1  ;;  %p209_p3 = scmp.ne.s32.totalorder %s7637_s25, %s7633_s24 }
   0x8   : > { %s8953_s9 = smov (%p34_p0, %s32_s9), 0  ;;  %p210_p5 = scmp.eq.s32.totalorder %s6001_s8, 1 }
   0x9   : > { %p7740_p4 = por %p204_p2, %p203_p1  ;;  %s188_s12 = ssub.s32 %s7649_s28, %s8953_s9 }
   0xa   : > { %p6004_p6 = scmp.ge.s32.totalorder %s7653_s29, 1  ;;  %p191_p7 = scmp.eq.s32.totalorder %s188_s12, 0 }
   0xb   : > { %p7747_p8 = por %p210_p5, %p209_p3  ;;  %p254_p9 = scmp.lt.s32.totalorder %s7653_s29, 3 }
   0xc   : > { %s7753_s14 = scalar_select %p191_p7, %s7641_s26, %s193_s10  }
   0xd   : > { %p255_p10 = pnand %p6004_p6, %p254_p9 }
   0xe   : > { %v7240_v0 = vld [vmem:[%s8930_s1] sm:$0xff] (!%p255_p10)   ;;  %p286_p11 = scmp.lt.s32.totalorder (!%p255_p10), %s7645_s27, 1  ;;  %vm424_vm0 = vcmask (!%p255_p10), 130048   ;;  %v7655_v1 = vmov (!%p255_p10), 0.0   ;;  %vm7656_vm1 = vmmov (!%p255_p10), 0   ;;  %v7265_v26 = vld [vmem:[%s8932_s3 + $0xc8] sm:$0xff] (!%p255_p10)  }
   0xf   : > { %258 = sbr.rel (%p255_p10) target bundleno = 1076 (0x434), region = 48  ;;  %7178 = vmatprep.subr.bf16.mxu1 (!%p255_p10), %v7240_v0  ;;  %7050 = vmatprep.subr.bf16.mxu0 (!%p255_p10), %v7240_v0  ;;  %v7243_v2 = vld [vmem:[%s8930_s1] sm:$0xff] (!%p255_p10)   ;;  %v7266_v27 = vld [vmem:[%s8932_s3 + $0x88] sm:$0xff] (!%p255_p10)   ;;  %v7269_v30 = vld [vmem:[%s8932_s3 + $0xd0] sm:$0xff] (!%p255_p10)   ;;  %vm762_vm2 = vsmask.f32 (!%p255_p10), 256 }
  0x10   : > { %7179 = vmatpush3.bf16.msra.mxu1 (!%p255_p10), %v7240_v0  ;;  %7051 = vmatpush3.bf16.msra.mxu0 (!%p255_p10), %v7240_v0  ;;  %v7259_v20 = vld [vmem:[%s8930_s1] sm:$0xff] (!%p255_p10)   ;;  %v7267_v28 = vld [vmem:[%s8932_s3 + $0x48] sm:$0xff] (!%p255_p10)   ;;  %v7270_v31 = vld [vmem:[%s8932_s3 + $0x90] sm:$0xff] (!%p255_p10)   ;;  %vm1086_vm3 = vcmask (!%p255_p10), 1043456   ;;  %vm1087_vm4 = vsmask.f32 (!%p255_p10), 7938 }
  0x11   : > { %7084 = vmatprep.subr.bf16.mxu1 (!%p255_p10), %v7655_v1  ;;  %v7261_v22 = vld [vmem:[%s8932_s3 + $0xc0] sm:$0xff] (!%p255_p10)   ;;  %v7268_v29 = vld [vmem:[%s8932_s3 + $0x8] sm:$0xff] (!%p255_p10)   ;;  %v7271_v32 = vld [vmem:[%s8932_s3 + $0x50] sm:$0xff] (!%p255_p10)   ;;  %vm1093_vm5 = vcmask (!%p255_p10), 1040384   ;;  %vm763_vm6 = vsmask.f32 (!%p255_p10), 4368 }
  0x12   : > { %v7262_v23 = vld [vmem:[%s8932_s3 + $0x80] sm:$0xff] (!%p255_p10)   ;;  %6673 = vmatprep.subr.bf16.mxu0 (!%p255_p10), %v7261_v22  ;;  %v7272_v33 = vld [vmem:[%s8932_s3 + $0x10] sm:$0xff] (!%p255_p10)   ;;  %v7273_v34 = vld [vmem:[%s8932_s3 + $0xd8] sm:$0xff] (!%p255_p10)   ;;  %vm2260_vm11 = vcmask (!%p255_p10), 1046528   ;;  %vm1859_vm12 = vsmask.f32 (!%p255_p10), 7424 }
  0x13   : > { %v7263_v24 = vld [vmem:[%s8932_s3 + $0x40] sm:$0xff] (!%p255_p10)   ;;  %v7274_v35 = vld [vmem:[%s8932_s3 + $0x98] sm:$0xff] (!%p255_p10)   ;;  %v7281_v42 = vld [vmem:[%s8932_s3 + $0xe8] sm:$0xff] (!%p255_p10)   ;;  %vm5579_vm13 = vcmask (!%p255_p10), 1041408   ;;  %vm5530_vm14 = vcmask (!%p255_p10), 31744   ;;  %s283_s10 = sand.u32 (!%p255_p10), 1, %s7637_s25  }
  0x14   : > { %v7264_v25 = vld [vmem:[%s8932_s3] sm:$0xff] (!%p255_p10)   ;;  %v7275_v36 = vld [vmem:[%s8932_s3 + $0x58] sm:$0xff] (!%p255_p10)   ;;  %v7282_v43 = vld [vmem:[%s8932_s3 + $0xa8] sm:$0xff] (!%p255_p10)   ;;  %s6005_s16 = sshll.u32 (!%p255_p10), %s283_s10, 8  ;;  %s7657_s30 = smov (!%p255_p10), [#allocation4]  }
  0x15   : > { %v7276_v37 = vld [vmem:[%s8932_s3 + $0x18] sm:$0xff] (!%p255_p10)   ;;  %v7277_v38 = vld [vmem:[%s8932_s3 + $0xe0] sm:$0xff] (!%p255_p10)   ;;  %v7283_v44 = vld [vmem:[%s8932_s3 + $0x68] sm:$0xff] (!%p255_p10)   ;;  %s7579_s8 = sshll.u32 (!%p255_p10), %s7657_s30, 4  ;;  %s7580_s8 = int_to_ptr.vmem [resolvable:$false] %s7579_s8 }
  0x16   : > { %s287_s17 = scalar_select %p286_p11, %s7645_s27, 1  ;;  %v7278_v39 = vld [vmem:[%s8932_s3 + $0xa0] sm:$0xff]   ;;  %v7284_v45 = vld [vmem:[%s8932_s3 + $0x28] sm:$0xff]   ;;  %v7286_v46 = vld [vmem:[%s8932_s3 + $0xf0] sm:$0xff]  }
  0x17   : > { %v7279_v40 = vld [vmem:[%s8932_s3 + $0x60] sm:$0xff]   ;;  %v7287_v47 = vld [vmem:[%s8932_s3 + $0xb0] sm:$0xff]   ;;  %v7290_v50 = vld [vmem:[%s8932_s3 + $0xf8] sm:$0xff]   ;;  %s7581_s12 = scalar_lea.vmem %s7580_s8, 8192 }
  0x18   : > { %s6423_s18 = sshll.u32 %s287_s17, 7  ;;  %v7280_v41 = vld [vmem:[%s8932_s3 + $0x20] sm:$0xff]   ;;  %v7288_v48 = vld [vmem:[%s8932_s3 + $0x70] sm:$0xff]   ;;  %v7291_v51 = vld [vmem:[%s8932_s3 + $0xb8] sm:$0xff]   ;;  %s8766_s17 = scalar_lea.vmem [#allocation4], %s6005_s16 }
  0x19   : > { %s7766_s23 = scalar_lea.vmem %s8929_s0, %s6423_s18  ;;  %v7289_v49 = vld [vmem:[%s8932_s3 + $0x30] sm:$0xff]   ;;  %v7292_v52 = vld [vmem:[%s8932_s3 + $0x78] sm:$0xff]   ;;  %v7299_v54 = vld [vmem:[%s8932_s3 + $0x140] sm:$0xff]   ;;  %s5921_s18 = sshll.u32 %s8766_s17, 4  ;;  %s8873_s18 = int_to_ptr.vmem [resolvable:$true] %s5921_s18 }
  0x1a   : > { %v7241_v3 = vld [vmem:[%s7766_s23 + $0x70] sm:$0xff]   ;;  %v7242_v4 = vld [vmem:[%s7766_s23 + $0x78] sm:$0xff]   ;;  %v7244_v5 = vld [vmem:[%s7766_s23] sm:$0xff]   ;;  %s7575_s22 = scalar_lea.vmem %s8873_s18, 4096  ;;  %p7582_p1 = scmp.lt.s32.totalorder %s8873_s18, %s7580_s8 }
  0x1b   : > { %7080 = vmatprep.mubr.msk.bf16.mxu1 %vm424_vm0, %v7241_v3  ;;  %v7245_v6 = vld [vmem:[%s7766_s23 + $0x8] sm:$0xff]   ;;  %7052 = vmatprep.mubr.msk.bf16.mxu0 %vm424_vm0, %v7244_v5  ;;  %v7247_v7 = vld [vmem:[%s7766_s23 + $0x10] sm:$0xff]   ;;  %v7246_v8 = vld [vmem:[%s7766_s23] sm:$0xff]   ;;  %p7576_p12 = scmp.ne.s32.totalorder %s8873_s18, %s7575_s22  ;;  %p7583_p2 = scmp.lt.s32.totalorder %s7581_s12, %s7575_s22 }
  0x1c   : > { %7081 = vmatmul.mubr.msk.bf16.vlgmr.msra.gmra.mrb[0].mxu1 %vm424_vm0, %v7242_v4  ;;  %7053 = vmatmul.mubr.msk.bf16.vlgmr.msra.gmra.mrb[0].mxu0 %vm424_vm0, %v7245_v6  ;;  %v7248_v9 = vld [vmem:[%s7766_s23 + $0x18] sm:$0xff]   ;;  %v7249_v10 = vld [vmem:[%s7766_s23 + $0x20] sm:$0xff]   ;;  %v7250_v11 = vld [vmem:[%s7766_s23 + $0x28] sm:$0xff]  }
  0x1d   : > { %7085 = vmatpush3.bf16.msra.mxu1 %v7243_v2  ;;  %7086 = vmatprep.mubr.msk.bf16.mxu1 %vm7656_vm1, %v7655_v1  ;;  %v7251_v12 = vld [vmem:[%s7766_s23 + $0x30] sm:$0xff]   ;;  %v7252_v13 = vld [vmem:[%s7766_s23 + $0x38] sm:$0xff]   ;;  %v7253_v14 = vld [vmem:[%s7766_s23 + $0x40] sm:$0xff]   ;;  %p7577_p13 = pnand %p7576_p12, %p7740_p4  ;;  %p7584_p3 = por %p7583_p2, %p7582_p1 }
  0x1e   : > { %7090 = vmatprep.subr.bf16.mxu1 %v7655_v1  ;;  %7056 = vmatprep.mubr.msk.bf16.mxu0 %vm424_vm0, %v7247_v7  ;;  %v7254_v15 = vld [vmem:[%s7766_s23 + $0x48] sm:$0xff]   ;;  %v7255_v16 = vld [vmem:[%s7766_s23 + $0x50] sm:$0xff]   ;;  %v7256_v17 = vld [vmem:[%s7766_s23 + $0x58] sm:$0xff]  }
  0x1f   : > { %v7257_v18 = vld [vmem:[%s7766_s23 + $0x60] sm:$0xff]   ;;  %v7258_v19 = vld [vmem:[%s7766_s23 + $0x68] sm:$0xff]   ;;  %v7260_v21 = vld [vmem:[%s7766_s23 + $0x78] sm:$0xff]   ;;  %6674 = vmatpush3.bf16.msra.mxu0 %v7262_v23  ;;  %p7578_p0 = pneg %p7577_p13 }
  0x20   : > { %6675 = vmatprep.subr.bf16.mxu0 %v7265_v26  ;;  %v7293_v53 = vld [vmem:[%s8932_s3 + $0x38] sm:$0xff]   ;;  %v7909_v55 = vld [vmem:[%s8931_s2] ss:$0 sm:$0xff]  ;;  %vm7928_vm7 = vmand %vm1086_vm3, %vm1087_vm4 }
  0x21   : > { %v7352_v3 = vld [vmem:[%s8932_s3 + $0x1c0] sm:$0xff]   ;;  %vm7934_vm8 = vmand %vm1093_vm5, %vm762_vm2  ;;  %p7585_p5 = pnand %p7584_p3, %p7578_p0 }
  0x22   : > { %vm7942_vm9 = vmor %vm762_vm2, %vm763_vm6 }
  0x23   : > { %6676 = vmatpush3.bf16.msra.mxu0 %v7266_v27  ;;  %vm7989_vm10 = vmand %vm1093_vm5, %vm1087_vm4 }
  0x24   : > { %7087 = vmatmul.mubr.msk.bf16.vlgmr.msra.gmra.mrb[4].mxu1 %vm424_vm0, %v7246_v8  ;;  %7057 = vmatmul.mubr.msk.bf16.gmra.mrb[4].mxu0 %vm424_vm0, %v7248_v9 }
  0x25   : > { %7092 = vmatprep.mubr.msk.bf16.mxu1 %vm7656_vm1, %v7655_v1  ;;  %7060 = vmatprep.mubr.msk.bf16.mxu0 %vm424_vm0, %v7249_v10 }
  0x26   : > { %7091 = vmatpush3.bf16.msra.mxu1 %v7259_v20  ;;  %6677 = vmatprep.subr.bf16.mxu0 %v7269_v30 }
  0x27   : > { %6561 = vmatprep.subr.bf16.mxu1 %v7263_v24  ;;  %6678 = vmatpush3.bf16.msra.mxu0 %v7270_v31 }
  0x28   : > { %6679 = vmatprep.subr.bf16.mxu0 %v7273_v34 }
  0x2b   : > { %6680 = vmatpush3.bf16.msra.mxu0 %v7274_v35  ;;  %v1200_v35 = vld [vmem:[#allocation2 + $0xc8] sm:$0x1] }
  0x2c   : > { %7061 = vmatmul.mubr.msk.bf16.gmra.mrb[8].mxu0 %vm424_vm0, %v7250_v11  ;;  %7093 = vmatmul.mubr.msk.bf16.vlgmr.msra.gmra.mrb[8].mxu1 %vm424_vm0, %v7260_v21  ;;  %v1196_v21 = vld [vmem:[#allocation2 + $0xc0] sm:$0xf] }
  0x2d   : > { %7064 = vmatprep.mubr.msk.bf16.mxu0 %vm424_vm0, %v7251_v12  ;;  %6562 = vmatpush3.bf16.msra.mxu1 %v7264_v25 }
  0x2e   : > { %6563 = vmatprep.subr.bf16.mxu1 %v7267_v28  ;;  %6681 = vmatprep.subr.bf16.mxu0 %v7277_v38  ;;  %v1189_v28 = vld [vmem:[#allocation2 + $0xb4] sm:$0xf] }
  0x2f   : > { %6682 = vmatpush3.bf16.msra.mxu0 %v7278_v39 }
  0x30   : > { %6683 = vmatprep.subr.bf16.mxu0 %v7281_v42 }
  0x31   : > { %6564 = vmatpush3.bf16.msra.mxu1 %v7268_v29 }
  0x32   : > { %6565 = vmatprep.subr.bf16.mxu1 %v7271_v32 }
  0x33   : > { %6684 = vmatpush3.bf16.msra.mxu0 %v7282_v43 }
  0x34   : > { %7065 = vmatmul.mubr.msk.bf16.gmra.mrb[12].mxu0 %vm424_vm0, %v7252_v13  ;;  %6685 = vmatprep.subr.bf16.mxu0 %v7286_v46 }
  0x35   : > { %7068 = vmatprep.mubr.msk.bf16.mxu0 %vm424_vm0, %v7253_v14  ;;  %6566 = vmatpush3.bf16.msra.mxu1 %v7272_v33 }
  0x36   : > { %6567 = vmatprep.subr.bf16.mxu1 %v7275_v36 }
  0x37   : > { %6686 = vmatpush3.bf16.msra.mxu0 %v7287_v47 }
  0x38   : > { %6687 = vmatprep.subr.bf16.mxu0 %v7290_v50 }
  0x39   : > { %6568 = vmatpush3.bf16.msra.mxu1 %v7276_v37 }
  0x3a   : > { %6569 = vmatprep.subr.bf16.mxu1 %v7279_v40 }
  0x3b   : > { %6688 = vmatpush3.bf16.msra.mxu0 %v7291_v51  ;;  %v1098_v51 = vld [vmem:[#allocation2 + $0x18] sm:$0xf] }
  0x3c   : > { %7069 = vmatmul.mubr.msk.bf16.gmra.mrb[16].mxu0 %vm424_vm0, %v7254_v15  ;;  %6897 = vmatprep.subr.bf16.mxu0 %v7352_v3 }
  0x3d   : > { %7072 = vmatprep.mubr.msk.bf16.mxu0 %vm424_vm0, %v7255_v16  ;;  %6570 = vmatpush3.bf16.msra.mxu1 %v7280_v41 }
  0x3e   : > { %6571 = vmatprep.subr.bf16.mxu1 %v7283_v44 }
  0x41   : > { %6572 = vmatpush3.bf16.msra.mxu1 %v7284_v45 }
  0x42   : > { %6573 = vmatprep.subr.bf16.mxu1 %v7288_v48 }
  0x44   : > { %7073 = vmatmul.mubr.msk.bf16.gmra.mrb[20].mxu0 %vm424_vm0, %v7256_v17 }
  0x45   : > { %7076 = vmatprep.mubr.msk.bf16.mxu0 %vm424_vm0, %v7257_v18  ;;  %6574 = vmatpush3.bf16.msra.mxu1 %v7289_v49 }
  0x46   : > { %6575 = vmatprep.subr.bf16.mxu1 %v7292_v52 }
  0x49   : > { %6576 = vmatpush3.bf16.msra.mxu1 %v7293_v53 }
  0x4a   : > { %6785 = vmatprep.subr.bf16.mxu1 %v7299_v54 }
  0x4c   : > { %7077 = vmatmul.mubr.msk.bf16.gmra.mrb[24].mxu0 %vm424_vm0, %v7258_v19 }
  0xef   : > { %v7082_v56 = vpop.f32.mrb[0].mxu1  ;;  %v7054_v61 = vpop.f32.mrb[0].mxu0 }
  0xf0   : > { %v628_v57 = vadd.f32 %v7082_v56, %v7909_v55  ;;  %v619_v58 = vpop.f32.mrb[1].mxu1  ;;  %v516_v0 = vadd.f32 %v7054_v61, %v7909_v55  ;;  %v507_v2 = vpop.f32.mrb[1].mxu0 }
  0xf1   : > { %v620_v59 = vadd.f32 %v7909_v55, %v619_v58  ;;  %v7083_v60 = vpop.f32.mrb[2].mxu1  ;;  %v508_v6 = vadd.f32 %v7909_v55, %v507_v2  ;;  %v7055_v7 = vpop.f32.mrb[2].mxu0 }
  0xf2   : > { %v664_v62 = vmax.f32 %v628_v57, 0.0  ;;  %v631_v63 = vadd.f32 %v7083_v60, %v7909_v55  ;;  %v622_v1 = vpop.f32.mrb[3].mxu1  ;;  %v636_v10 = vmax.f32 %v516_v0, 0.0  ;;  %v7921_v11 = vadd.f32 %v7055_v7, %v7909_v55  ;;  %v510_v12 = vpop.f32.mrb[3].mxu0  ;;  %v1193_v60 = vld [vmem:[#allocation2 + $0xbc] sm:$0x1] }
  0xf3   : > { %v662_v4 = vmax.f32 %v620_v59, 0.0  ;;  %v623_v5 = vadd.f32 %v7909_v55, %v622_v1  ;;  %v634_v15 = vmax.f32 %v508_v6, 0.0  ;;  %v7924_v16 = vadd.f32 %v7909_v55, %v510_v12  ;;  %v1089_v12 = vld [vmem:[#allocation2 + $0xc] sm:$0xf] }
  0xf4   : > { %v6454_v8 = vpack.c.bf16 %v664_v62, %v664_v62  ;;  %v665_v9 = vmax.f32 %v631_v63, 0.0  ;;  %v6426_v20 = vpack.c.bf16 %v636_v10, %v636_v10 }
  0xf5   : > { %v6452_v13 = vpack.c.bf16 %v662_v4, %v662_v4  ;;  %v663_v14 = vmax.f32 %v623_v5, 0.0  ;;  %v6424_v25 = vpack.c.bf16 %v634_v15, %v634_v15 }
  0xf6   : > { %v1021_v17 = vshrl.u32 %v6454_v8, 16  ;;  %v1024_v18 = vshll.u32 %v6454_v8, 16  ;;  %v6455_v19 = vpack.c.bf16 %v665_v9, %v665_v9  ;;  %v783_v31 = vshrl.u32 %v6426_v20, 16 }
  0xf7   : > { %v1004_v22 = vshrl.u32 %v6452_v13, 16  ;;  %v1007_v23 = vshll.u32 %v6452_v13, 16  ;;  %v6453_v24 = vpack.c.bf16 %v663_v14, %v663_v14  ;;  %v1277_v26 = vpop.f32.mrb[4].mxu1  ;;  %v786_v36 = vshll.u32 %v6426_v20, 16  ;;  %v7058_v40 = vpop.f32.mrb[4].mxu0 }
  0xf8   : > { %v1023_v27 = vrot.slane %v1021_v17, 7  ;;  %v1029_v29 = vshrl.u32 %v6455_v19, 16  ;;  %v1032_v30 = vshll.u32 %v6455_v19, 16  ;;  %v7088_v32 = vpop.f32.mrb[5].mxu1  ;;  %v7938_v45 = vrot.slane %v783_v31, 7  ;;  %v523_v47 = vpop.f32.mrb[5].mxu0 }
  0xf9   : > { %v1006_v34 = vrot.slane %v1004_v22, 7  ;;  %v1012_v37 = vshrl.u32 %v6453_v24, 16  ;;  %v1015_v38 = vshll.u32 %v6453_v24, 16  ;;  %v1280_v39 = vpop.f32.mrb[6].mxu1  ;;  %v766_v53 = vshrl.u32 %v6424_v25, 16  ;;  %v7059_v54 = vpop.f32.mrb[6].mxu0 }
  0xfa   : > { %v1026_v41 = vor.u32 %v1024_v18, %v1023_v27  ;;  %v1027_v42 = vrot.slane %v1023_v27, 4  ;;  %v1031_v44 = vrot.slane %v1029_v29, 7  ;;  %v7089_v46 = vpop.f32.mrb[7].mxu1  ;;  %v788_v59 = vor.u32 %v786_v36, %v7938_v45  ;;  %v7949_v61 = vpop.f32.mrb[7].mxu0  ;;  %v1102_v32 = vld [vmem:[#allocation2 + $0x20] sm:$0x1] }
  0xfb   : > { %v1009_v48 = vor.u32 %v1007_v23, %v1006_v34  ;;  %v1010_v49 = vrot.slane %v1006_v34, 4  ;;  %v1014_v52 = vrot.slane %v1012_v37, 7  ;;  %v789_v63 = vrot.slane %v7938_v45, 4 }
  0xfc   : > { %v1197_v56 = vsel %vm7928_vm7, %v1026_v41, %v1196_v21  ;;  %v1034_v57 = vor.u32 %v1032_v30, %v1031_v44  ;;  %v1036_v58 = vrot.slane %v1031_v44, 4  ;;  %v1099_v4 = vsel %vm7928_vm7, %v788_v59, %v1098_v51  ;;  %v1095_v41 = vld [vmem:[#allocation2 + $0x14] sm:$0x1] }
  0xfd   : > { %1198 = vst [vmem:[#allocation2 + $0xc0] sm:$0xf] %v1197_v56  ;;  %v1190_v62 = vsel %vm7928_vm7, %v1009_v48, %v1189_v28  ;;  %v1017_v0 = vor.u32 %v1015_v38, %v1014_v52  ;;  %v1019_v1 = vrot.slane %v1014_v52, 4  ;;  %v7960_v5 = vrot.slane %v766_v53, 7  ;;  %1100 = vst [vmem:[#allocation2 + $0x18] sm:$0xf] %v1099_v4 }
  0xfe   : > { %1191 = vst [vmem:[#allocation2 + $0xb4] sm:$0xf] %v1190_v62  ;;  %v1035_v2 = vsel %vm7942_vm9, %v1027_v42, %v1034_v57  ;;  %v1201_v3 = vsel %vm7934_vm8, %v1036_v58, %v1200_v35  ;;  %v769_v8 = vshll.u32 %v6424_v25, 16  ;;  %v637_v9 = vmax.f32 %v7921_v11, 0.0 }
  0xff   : > { %1199 = vst [vmem:[#allocation2 + $0xc4] sm:$0xf] %v1035_v2  ;;  %1202 = vst [vmem:[#allocation2 + $0xc8] sm:$0x1] %v1201_v3  ;;  %v1018_v6 = vsel %vm7942_vm9, %v1010_v49, %v1017_v0  ;;  %v1194_v7 = vsel %vm7934_vm8, %v1019_v1, %v1193_v60  ;;  %v772_v10 = vrot.slane %v7960_v5, 4  ;;  %v635_v13 = vmax.f32 %v7924_v16, 0.0 }
 0x100   : > { %1192 = vst [vmem:[#allocation2 + $0xb8] sm:$0xf] %v1018_v6  ;;  %1195 = vst [vmem:[#allocation2 + $0xbc] sm:$0x1] %v1194_v7  ;;  %v1278_v14 = vadd.f32 %v7909_v55, %v1277_v26  ;;  %v1281_v15 = vadd.f32 %v7909_v55, %v1280_v39  ;;  %v771_v17 = vor.u32 %v769_v8, %v7960_v5  ;;  %v7976_v11 = vpop.f32.mrb[8].mxu0 }
 0x101   : > { %v6427_v18 = vpack.c.bf16 %v637_v9, %v637_v9  ;;  %v532_v19 = vadd.f32 %v7058_v40, %v7909_v55  ;;  %v7974_v20 = vadd.f32 %v7909_v55, %v523_v47  ;;  %v6425_v21 = vpack.c.bf16 %v635_v13, %v635_v13  ;;  %v7981_v16 = vpop.f32.mrb[9].mxu0  ;;  %v1315_v6 = vld [vmem:[#allocation2] sm:$0xf]  ;;  %v1319_v13 = vld [vmem:[#allocation2 + $0x8] sm:$0x1] }
 0x102   : > { %v1284_v22 = vmax.f32 %v1278_v14, 0.0  ;;  %v1285_v23 = vmax.f32 %v1281_v15, 0.0  ;;  %v7979_v24 = vadd.f32 %v7059_v54, %v7909_v55  ;;  %v1090_v25 = vsel %vm7928_vm7, %v771_v17, %v1089_v12  ;;  %v7985_v29 = vpop.f32.mrb[10].mxu0 }
 0x103   : > { %v791_v26 = vshrl.u32 %v6427_v18, 16  ;;  %v794_v27 = vshll.u32 %v6427_v18, 16  ;;  %v640_v28 = vmax.f32 %v532_v19, 0.0  ;;  %1091 = vst [vmem:[#allocation2 + $0xc] sm:$0xf] %v1090_v25  ;;  %v774_v34 = vshrl.u32 %v6425_v21, 16 }
 0x104   : > { %v1478_v30 = vld [vmem:[#allocation2 + $0xc0] sm:$0x1]  ;;  %v777_v35 = vshll.u32 %v6425_v21, 16  ;;  %v1287_v36 = vmul.f32 0.0, %v1284_v22  ;;  %v1288_v37 = vmul.f32 0.0, %v1285_v23  ;;  %v638_v44 = vmax.f32 %v7974_v20, 0.0 }
 0x105   : > { %v1479_v38 = vsel %vm7934_vm8, 0, %v1478_v30  ;;  %v1475_v39 = vld [vmem:[#allocation2 + $0xb4] sm:$0x1]  ;;  %v793_v40 = vrot.slane %v791_v26, 7  ;;  %v7995_v42 = vpack.c.bf16 %v640_v28, %v640_v28  ;;  %v7998_v46 = vpop.f32.mrb[11].mxu0  ;;  %v776_v51 = vrot.slane %v774_v34, 7 }
 0x106   : > { %1480 = vst [vmem:[#allocation2 + $0xc0] sm:$0x1] %v1479_v38  ;;  %v1476_v47 = vsel %vm7934_vm8, 0, %v1475_v39  ;;  %v1533_v48 = vld [vmem:[#allocation2 + $0xc8] sm:$0x1]  ;;  %v6456_v52 = vpack.c.bf16 %v1287_v36, %v1287_v36  ;;  %v6457_v53 = vpack.c.bf16 %v1288_v37, %v1288_v37  ;;  %v6428_v5 = vpack.c.bf16 %v638_v44, %v638_v44 }
 0x107   : > { %v1436_v49 = vld [vmem:[#allocation2 + $0x18] sm:$0x1]  ;;  %1477 = vst [vmem:[#allocation2 + $0xb4] sm:$0x1] %v1476_v47  ;;  %v1534_v54 = vsel %vm7989_vm10, 0, %v1533_v48  ;;  %v796_v58 = vor.u32 %v794_v27, %v793_v40  ;;  %v798_v59 = vrot.slane %v793_v40, 4  ;;  %v779_v62 = vor.u32 %v777_v35, %v776_v51 }
 0x108   : > { %v1437_v56 = vsel %vm7934_vm8, 0, %v1436_v49  ;;  %v1530_v57 = vld [vmem:[#allocation2 + $0xbc] sm:$0x1]  ;;  %1535 = vst [vmem:[#allocation2 + $0xc8] sm:$0x1] %v1534_v54  ;;  %v781_v0 = vrot.slane %v776_v51, 4  ;;  %v527_v37 = vadd.f32 %v7909_v55, %v7949_v61  ;;  %v551_v54 = vadd.f32 %v7985_v29, %v7909_v55 }
 0x109   : > { %1438 = vst [vmem:[#allocation2 + $0x18] sm:$0x1] %v1437_v56  ;;  %v1531_v60 = vsel %vm7989_vm10, 0, %v1530_v57  ;;  %v1296_v1 = vshrl.u32 %v6456_v52, 16  ;;  %v797_v2 = vsel %vm7942_vm9, %v789_v63, %v796_v58  ;;  %v1103_v3 = vsel %vm7934_vm8, %v798_v59, %v1102_v32  ;;  %v8014_v8 = vpop.f32.mrb[12].mxu0 }
 0x10a   : > { %1532 = vst [vmem:[#allocation2 + $0xbc] sm:$0x1] %v1531_v60  ;;  %v1299_v4 = vshll.u32 %v6456_v52, 16  ;;  %v1304_v7 = vshrl.u32 %v6457_v53, 16  ;;  %1101 = vst [vmem:[#allocation2 + $0x1c] sm:$0xf] %v797_v2  ;;  %v780_v9 = vsel %vm7942_vm9, %v772_v10, %v779_v62  ;;  %v1096_v45 = vsel %vm7934_vm8, %v781_v0, %v1095_v41 }
 0x10b   : > { %1104 = vst [vmem:[#allocation2 + $0x20] sm:$0x1] %v1103_v3  ;;  %v1298_v12 = vrot.slane %v1296_v1, 7  ;;  %v1307_v63 = vshll.u32 %v6457_v53, 16  ;;  %v8022_v14 = vpop.f32.mrb[13].mxu0  ;;  %v817_v18 = vshrl.u32 %v7995_v42, 16  ;;  %v548_v52 = vadd.f32 %v7976_v11, %v7909_v55 }
 0x10c   : > { %v1433_v15 = vld [vmem:[#allocation2 + $0xc] sm:$0x1]  ;;  %1092 = vst [vmem:[#allocation2 + $0x10] sm:$0xf] %v780_v9  ;;  %1097 = vst [vmem:[#allocation2 + $0x14] sm:$0x1] %v1096_v45  ;;  %v540_v53 = vadd.f32 %v7909_v55, %v7981_v16 }
 0x10d   : > { %v1306_v17 = vrot.slane %v1304_v7, 7  ;;  %v820_v19 = vshll.u32 %v7995_v42, 16  ;;  %v8026_v20 = vpop.f32.mrb[14].mxu0  ;;  %v1434_v10 = vsel %vm7934_vm8, 0, %v1433_v15  ;;  %v1301_v21 = vor.u32 %v1299_v4, %v1298_v12  ;;  %v1112_v30 = vld [vmem:[#allocation2 + $0x30] sm:$0xf] }
 0x10e   : > { %v1302_v22 = vrot.slane %v1298_v12, 4  ;;  %v641_v23 = vmax.f32 %v7979_v24, 0.0  ;;  %v8031_v25 = vpop.f32.mrb[15].mxu0  ;;  %1435 = vst [vmem:[#allocation2 + $0xc] sm:$0x1] %v1434_v10  ;;  %v819_v28 = vrot.slane %v817_v18, 7 }
 0x10f   : > { %v1309_v26 = vor.u32 %v1307_v63, %v1306_v17  ;;  %v1311_v27 = vrot.slane %v1306_v17, 4  ;;  %v800_v32 = vshrl.u32 %v6428_v5, 16  ;;  %v1316_v34 = vsel %vm7928_vm7, %v1301_v21, %v1315_v6  ;;  %v1105_v41 = vld [vmem:[#allocation2 + $0x24] sm:$0xf]  ;;  %v1116_v51 = vld [vmem:[#allocation2 + $0x38] sm:$0x1] }
 0x110   : > { %v803_v35 = vshll.u32 %v6428_v5, 16  ;;  %v6431_v36 = vpack.c.bf16 %v641_v23, %v641_v23  ;;  %1317 = vst [vmem:[#allocation2] sm:$0xf] %v1316_v34  ;;  %v822_v39 = vor.u32 %v820_v19, %v819_v28  ;;  %v823_v40 = vrot.slane %v819_v28, 4  ;;  %v8051_v56 = vpop.f32.mrb[16].mxu0 }
 0x111   : > { %v1310_v24 = vsel %vm7942_vm9, %v1302_v22, %v1309_v26  ;;  %v1320_v38 = vsel %vm7934_vm8, %v1311_v27, %v1319_v13  ;;  %v8041_v42 = vrot.slane %v800_v32, 7  ;;  %v639_v48 = vmax.f32 %v527_v37, 0.0  ;;  %v1109_v17 = vld [vmem:[#allocation2 + $0x2c] sm:$0x1]  ;;  %v1126_v27 = vld [vmem:[#allocation2 + $0x48] sm:$0xf] }
 0x112   : > { %1318 = vst [vmem:[#allocation2 + $0x4] sm:$0xf] %v1310_v24  ;;  %1321 = vst [vmem:[#allocation2 + $0x8] sm:$0x1] %v1320_v38  ;;  %v825_v44 = vshrl.u32 %v6431_v36, 16  ;;  %v828_v47 = vshll.u32 %v6431_v36, 16  ;;  %v1113_v61 = vsel %vm7928_vm7, %v822_v39, %v1112_v30  ;;  %v543_v19 = vadd.f32 %v7909_v55, %v7998_v46 }
 0x113   : > { %v1491_v49 = vld [vmem:[#allocation2 + $0x20] sm:$0x1]  ;;  %v1488_v58 = vld [vmem:[#allocation2 + $0x14] sm:$0x1]  ;;  %1114 = vst [vmem:[#allocation2 + $0x30] sm:$0xf] %v1113_v61  ;;  %v805_v59 = vor.u32 %v803_v35, %v8041_v42  ;;  %v6429_v16 = vpack.c.bf16 %v639_v48, %v639_v48 }
 0x114   : > { %v1492_v57 = vsel %vm7989_vm10, 0, %v1491_v49  ;;  %v806_v60 = vrot.slane %v8041_v42, 4  ;;  %v827_v62 = vrot.slane %v825_v44, 7  ;;  %v1489_v11 = vsel %vm7989_vm10, 0, %v1488_v58  ;;  %v1119_v37 = vld [vmem:[#allocation2 + $0x3c] sm:$0xf] }
 0x115   : > { %1493 = vst [vmem:[#allocation2 + $0x20] sm:$0x1] %v1492_v57  ;;  %v644_v0 = vmax.f32 %v548_v52, 0.0  ;;  %v642_v1 = vmax.f32 %v540_v53, 0.0  ;;  %1490 = vst [vmem:[#allocation2 + $0x14] sm:$0x1] %v1489_v11  ;;  %v1106_v29 = vsel %vm7928_vm7, %v805_v59, %v1105_v41 }
 0x116   : > { %v830_v2 = vor.u32 %v828_v47, %v827_v62  ;;  %v832_v3 = vrot.slane %v827_v62, 4  ;;  %v645_v4 = vmax.f32 %v551_v54, 0.0  ;;  %v7285_v6 = vld [vmem:[#allocation2 + $0xc] sm:$0xff]   ;;  %1107 = vst [vmem:[#allocation2 + $0x24] sm:$0xf] %v1106_v29  ;;  %v808_v7 = vshrl.u32 %v6429_v16, 16 }
 0x117   : > { %v811_v9 = vshll.u32 %v6429_v16, 16  ;;  %v6434_v45 = vpack.c.bf16 %v644_v0, %v644_v0  ;;  %v6432_v12 = vpack.c.bf16 %v642_v1, %v642_v1  ;;  %v1430_v63 = vld [vmem:[#allocation2] sm:$0x1]  ;;  %4862 = vmatprep.mubr.bf16.mxu0 %v7285_v6  ;;  %v1130_v38 = vld [vmem:[#allocation2 + $0x50] sm:$0x1]  ;;  %v643_v42 = vmax.f32 %v543_v19, 0.0 }
 0x118   : > { %v831_v13 = vsel %vm7942_vm9, %v823_v40, %v830_v2  ;;  %v1117_v15 = vsel %vm7934_vm8, %v832_v3, %v1116_v51  ;;  %v6435_v18 = vpack.c.bf16 %v645_v4, %v645_v4  ;;  %v1431_v5 = vsel %vm7934_vm8, 0, %v1430_v63  ;;  %v8079_v51 = vpop.f32.mrb[17].mxu0 }
 0x119   : > { %v1485_v10 = vld [vmem:[#allocation2 + $0x8] sm:$0x1]  ;;  %1115 = vst [vmem:[#allocation2 + $0x34] sm:$0xf] %v831_v13  ;;  %1118 = vst [vmem:[#allocation2 + $0x38] sm:$0x1] %v1117_v15  ;;  %v6433_v62 = vpack.c.bf16 %v643_v42, %v643_v42  ;;  %v564_v3 = vadd.f32 %v8014_v8, %v7909_v55  ;;  %v8110_v19 = vadd.f32 %v7909_v55, %v8031_v25 }
 0x11a   : > { %v810_v21 = vrot.slane %v808_v7, 7  ;;  %v851_v22 = vshrl.u32 %v6434_v45, 16  ;;  %v854_v23 = vshll.u32 %v6434_v45, 16  ;;  %1432 = vst [vmem:[#allocation2] sm:$0x1] %v1431_v5  ;;  %v1486_v26 = vsel %vm7989_vm10, 0, %v1485_v10 }
 0x11b   : > { %v834_v28 = vshrl.u32 %v6432_v12, 16  ;;  %v837_v30 = vshll.u32 %v6432_v12, 16  ;;  %v859_v32 = vshrl.u32 %v6435_v18, 16  ;;  %1487 = vst [vmem:[#allocation2 + $0x8] sm:$0x1] %v1486_v26  ;;  %v862_v24 = vshll.u32 %v6435_v18, 16 }
 0x11c   : > { %v1442_v46 = vld [vmem:[#allocation2 + $0x30] sm:$0x1]  ;;  %v813_v34 = vor.u32 %v811_v9, %v810_v21  ;;  %v815_v35 = vrot.slane %v810_v21, 4  ;;  %v853_v36 = vrot.slane %v851_v22, 7  ;;  %v7294_v44 = vld [vmem:[#allocation2] sm:$0xfe]   ;;  %v556_v45 = vadd.f32 %v7909_v55, %v8022_v14 }
 0x11d   : > { %v1443_v39 = vsel %vm7934_vm8, 0, %v1442_v46  ;;  %v8073_v40 = vrot.slane %v834_v28, 7  ;;  %v861_v41 = vrot.slane %v859_v32, 7  ;;  %v1439_v52 = vld [vmem:[#allocation2 + $0x24] sm:$0x1]  ;;  %v2261_v11 = vrot.slane %v7294_v44, 1 }
 0x11e   : > { %1444 = vst [vmem:[#allocation2 + $0x30] sm:$0x1] %v1443_v39  ;;  %v814_v47 = vsel %vm7942_vm9, %v806_v60, %v813_v34  ;;  %v1110_v48 = vsel %vm7934_vm8, %v815_v35, %v1109_v17  ;;  %v856_v49 = vor.u32 %v854_v23, %v853_v36  ;;  %v857_v61 = vrot.slane %v853_v36, 4  ;;  %v8087_v16 = vpop.f32.mrb[18].mxu0  ;;  %v1123_v12 = vld [vmem:[#allocation2 + $0x44] sm:$0x1] }
 0x11f   : > { %1108 = vst [vmem:[#allocation2 + $0x28] sm:$0xf] %v814_v47  ;;  %1111 = vst [vmem:[#allocation2 + $0x2c] sm:$0x1] %v1110_v48  ;;  %v839_v53 = vor.u32 %v837_v30, %v8073_v40  ;;  %v840_v54 = vrot.slane %v8073_v40, 4  ;;  %v864_v57 = vor.u32 %v862_v24, %v861_v41  ;;  %v866_v58 = vrot.slane %v861_v41, 4 }
 0x120   : > { %v1440_v59 = vsel %vm7934_vm8, 0, %v1439_v52  ;;  %v1127_v60 = vsel %vm7928_vm7, %v856_v49, %v1126_v27  ;;  %v1497_v0 = vld [vmem:[#allocation2 + $0x38] sm:$0x1]  ;;  %v842_v6 = vshrl.u32 %v6433_v62, 16  ;;  %v845_v7 = vshll.u32 %v6433_v62, 16  ;;  %v7355_v8 = vld [vmem:[%s8932_s3 + $0x180] sm:$0xff]  }
 0x121   : > { %1441 = vst [vmem:[#allocation2 + $0x24] sm:$0x1] %v1440_v59  ;;  %1128 = vst [vmem:[#allocation2 + $0x48] sm:$0xf] %v1127_v60  ;;  %v1120_v1 = vsel %vm7928_vm7, %v839_v53, %v1119_v37  ;;  %v865_v29 = vsel %vm7942_vm9, %v857_v61, %v864_v57  ;;  %v1131_v2 = vsel %vm7934_vm8, %v866_v58, %v1130_v38  ;;  %v1498_v4 = vsel %vm7989_vm10, 0, %v1497_v0  ;;  %v7297_v9 = vld [vmem:[#allocation2] sm:$0xff]  }
 0x122   : > { %1121 = vst [vmem:[#allocation2 + $0x3c] sm:$0xf] %v1120_v1  ;;  %1129 = vst [vmem:[#allocation2 + $0x4c] sm:$0xf] %v865_v29  ;;  %v648_v13 = vmax.f32 %v564_v3, 0.0  ;;  %v844_v15 = vrot.slane %v842_v6, 7  ;;  %v8106_v18 = vadd.f32 %v8026_v20, %v7909_v55  ;;  %v8114_v14 = vadd.f32 %v8051_v56, %v7909_v55 }
 0x123   : > { %1132 = vst [vmem:[#allocation2 + $0x50] sm:$0x1] %v1131_v2  ;;  %1499 = vst [vmem:[#allocation2 + $0x38] sm:$0x1] %v1498_v4  ;;  %v1861_v10 = vshrl.u32 %v7297_v9, 16  ;;  %v1863_v21 = vshll.u32 %v7297_v9, 16 }
 0x124   : > { %v7295_v63 = vld [vmem:[#allocation2 + $0x8] ss:$0 sps:$4 sm:$0x11]   ;;  %v6438_v22 = vpack.c.bf16 %v648_v13, %v648_v13  ;;  %v847_v27 = vor.u32 %v845_v7, %v844_v15  ;;  %v849_v20 = vrot.slane %v844_v15, 4  ;;  %v646_v30 = vmax.f32 %v556_v45, 0.0  ;;  %v8119_v32 = vld [vmem:[#allocation2 + $0xc] sm:$0xff]  }
 0x125   : > { %v7298_v17 = vld [vmem:[#allocation2 + $0x8] ss:$0 sps:$4 sm:$0x11]   ;;  %v2262_v5 = vrot.slane %v7295_v63, 1  ;;  %v7296_v34 = vld [vmem:[#allocation2 + $0x18] sm:$0xff]   ;;  %v1865_v35 = vrot.slane %v1863_v21, 1 }
 0x126   : > { %v7368_v23 = vld [vmem:[%s8932_s3 + $0x1c8] sm:$0xff]   ;;  %v1868_v28 = vshll.u32 %v7298_v17, 16  ;;  %v8121_v25 = vld [vmem:[#allocation2 + $0x14] ss:$0 sps:$4 sm:$0x11]   ;;  %v885_v36 = vshrl.u32 %v6438_v22, 16  ;;  %v848_v39 = vsel %vm7942_vm9, %v840_v54, %v847_v27  ;;  %v1124_v40 = vsel %vm7934_vm8, %v849_v20, %v1123_v12 }
 0x127   : > { %v1494_v26 = vld [vmem:[#allocation2 + $0x2c] sm:$0x1]  ;;  %v2263_v46 = vsel %vm2260_vm11, %v2261_v11, %v2262_v5  ;;  %v8126_v37 = vld [vmem:[#allocation2 + $0xc] sm:$0xfe]   ;;  %v888_v42 = vshll.u32 %v6438_v22, 16  ;;  %v7301_v47 = vld [vmem:[%s8932_s3 + $0x100] sm:$0xff]   ;;  %v1866_v54 = vor.u32 %v1865_v35, %v1861_v10  ;;  %v6436_v58 = vpack.c.bf16 %v646_v30, %v646_v30 }
 0x128   : > { %v1495_v56 = vsel %vm7989_vm10, 0, %v1494_v26  ;;  %v7371_v24 = vld [vmem:[%s8932_s3 + $0x188] sm:$0xff]   ;;  %4863 = vmatmul.mubr.bf16.vlgmr.msra.gmra.mrb[28].mxu0 %v2263_v46  ;;  %v1870_v41 = vrot.slane %v1868_v28, 1  ;;  %v1140_v44 = vld [vmem:[#allocation2 + $0x60] sm:$0xf]  ;;  %v7384_v49 = vld [vmem:[%s8932_s3 + $0x1d0] sm:$0xff]  }
 0x129   : > { %1496 = vst [vmem:[#allocation2 + $0x2c] sm:$0x1] %v1495_v56  ;;  %v1448_v38 = vld [vmem:[#allocation2 + $0x48] sm:$0x1]  ;;  %v1445_v52 = vld [vmem:[#allocation2 + $0x3c] sm:$0x1]  ;;  %4870 = vmatprep.mubr.bf16.mxu0 %v7296_v34  ;;  %6898 = vmatpush3.bf16.msra.mxu0 %v7355_v8 }
 0x12a   : > { %v8138_v48 = vld [vmem:[#allocation2 + $0x14] ss:$0 sps:$4 sm:$0x11]   ;;  %v1449_v61 = vsel %vm7934_vm8, 0, %v1448_v38  ;;  %v1503_v53 = vld [vmem:[#allocation2 + $0x50] sm:$0x1]  ;;  %6899 = vmatprep.subr.bf16.mxu0 %v7368_v23  ;;  %v1871_v1 = vsel %vm1859_vm12, %v1866_v54, %v1870_v41  ;;  %v572_v54 = vadd.f32 %v7909_v55, %v8079_v51 }
 0x12b   : > { %1122 = vst [vmem:[#allocation2 + $0x40] sm:$0xf] %v848_v39  ;;  %1125 = vst [vmem:[#allocation2 + $0x44] sm:$0x1] %v1124_v40  ;;  %v8145_v57 = vrot.slane %v885_v36, 7  ;;  %v7313_v59 = vld [vmem:[%s8932_s3 + $0x148] sm:$0xff]   ;;  %4701 = vmatprep.mubr.bf16.mxu1 %v1871_v1 }
 0x12c   : > { %1450 = vst [vmem:[#allocation2 + $0x48] sm:$0x1] %v1449_v61  ;;  %v1446_v60 = vsel %vm7934_vm8, 0, %v1445_v52  ;;  %v1504_v62 = vsel %vm7989_vm10, 0, %v1503_v53  ;;  %v1873_v11 = vshrl.u32 %v8119_v32, 16  ;;  %v1875_v0 = vshll.u32 %v8119_v32, 16 }
 0x12d   : > { %1447 = vst [vmem:[#allocation2 + $0x3c] sm:$0x1] %v1446_v60  ;;  %1505 = vst [vmem:[#allocation2 + $0x50] sm:$0x1] %v1504_v62  ;;  %v890_v29 = vor.u32 %v888_v42, %v8145_v57  ;;  %v891_v2 = vrot.slane %v8145_v57, 4  ;;  %v7300_v3 = vld [vmem:[#allocation2] sm:$0xff]   ;;  %6900 = vmatpush3.bf16.msra.mxu0 %v7371_v24  ;;  %v583_v60 = vadd.f32 %v8087_v16, %v7909_v55 }
 0x12e   : > { %v868_v4 = vshrl.u32 %v6436_v58, 16  ;;  %v8159_v6 = vld [vmem:[#allocation2 + $0x18] sm:$0xff]   ;;  %v871_v7 = vshll.u32 %v6436_v58, 16  ;;  %v1133_v9 = vld [vmem:[#allocation2 + $0x54] sm:$0xf]  ;;  %v1877_v45 = vrot.slane %v1875_v0, 1  ;;  %4702 = vmatmul.mubr.bf16.vlgmr.msra.gmra.mrb[12].mxu1 %v7300_v3  ;;  %6901 = vmatprep.subr.bf16.mxu0 %v7384_v49 }
 0x12f   : > { %v1880_v12 = vshll.u32 %v8121_v25, 16  ;;  %v649_v63 = vmax.f32 %v8106_v18, 0.0  ;;  %v7315_v13 = vld [vmem:[%s8932_s3 + $0x108] sm:$0xff]   ;;  %v1141_v8 = vsel %vm7928_vm7, %v890_v29, %v1140_v44  ;;  %v647_v17 = vmax.f32 %v8110_v19, 0.0  ;;  %v574_v10 = vpop.f32.mrb[19].mxu0  ;;  %v7327_v21 = vld [vmem:[%s8932_s3 + $0x150] sm:$0xff]   ;;  %6786 = vmatpush3.bf16.msra.mxu1 %v7301_v47 }
 0x130   : > { %v8168_v15 = vrot.slane %v868_v4, 7  ;;  %v2264_v5 = vrot.slane %v8126_v37, 1  ;;  %v7387_v18 = vld [vmem:[%s8932_s3 + $0x190] sm:$0xff]   ;;  %1142 = vst [vmem:[#allocation2 + $0x60] sm:$0xf] %v1141_v8  ;;  %v1878_v22 = vor.u32 %v1877_v45, %v1873_v11  ;;  %v2265_v27 = vrot.slane %v8138_v48, 1  ;;  %6787 = vmatprep.subr.bf16.mxu1 %v7313_v59 }
 0x131   : > { %v1882_v23 = vrot.slane %v1880_v12, 1  ;;  %v6439_v26 = vpack.c.bf16 %v649_v63, %v649_v63  ;;  %v6437_v28 = vpack.c.bf16 %v647_v17, %v647_v17  ;;  %v7306_v30 = vld [vmem:[#allocation2 + $0x24] sm:$0xff]   ;;  %v7309_v32 = vld [vmem:[#allocation2 + $0x20] ss:$0 sps:$4 sm:$0x11]   ;;  %v1885_v25 = vshrl.u32 %v8159_v6, 16  ;;  %6902 = vmatpush3.bf16.msra.mxu0 %v7387_v18 }
 0x132   : > { %v873_v19 = vor.u32 %v871_v7, %v8168_v15  ;;  %v874_v20 = vrot.slane %v8168_v15, 4  ;;  %v1500_v56 = vld [vmem:[#allocation2 + $0x44] sm:$0x1]  ;;  %v2266_v36 = vsel %vm2260_vm11, %v2264_v5, %v2265_v27  ;;  %v7329_v37 = vld [vmem:[%s8932_s3 + $0x110] sm:$0xff]   ;;  %v1144_v39 = vld [vmem:[#allocation2 + $0x68] sm:$0x1]  ;;  %v8200_v62 = vadd.f32 %v7909_v55, %v574_v10 }
 0x133   : > { %v1883_v46 = vsel %vm1859_vm12, %v1878_v22, %v1882_v23  ;;  %v893_v34 = vshrl.u32 %v6439_v26, 16  ;;  %v896_v35 = vshll.u32 %v6439_v26, 16  ;;  %v1501_v24 = vsel %vm7989_vm10, 0, %v1500_v56  ;;  %4871 = vmatmul.mubr.bf16.gmra.mrb[32].mxu0 %v2266_v36  ;;  %v7307_v42 = vld [vmem:[#allocation2 + $0xc] sm:$0xff]   ;;  %v7310_v44 = vld [vmem:[#allocation2 + $0x18] sm:$0xfe]   ;;  %6788 = vmatpush3.bf16.msra.mxu1 %v7315_v13 }
 0x134   : > { %v1134_v38 = vsel %vm7928_vm7, %v873_v19, %v1133_v9  ;;  %4709 = vmatprep.mubr.bf16.mxu1 %v1883_v46  ;;  %v876_v40 = vshrl.u32 %v6437_v28, 16  ;;  %v879_v41 = vshll.u32 %v6437_v28, 16  ;;  %v7341_v47 = vld [vmem:[%s8932_s3 + $0x158] sm:$0xff]   ;;  %1502 = vst [vmem:[#allocation2 + $0x44] sm:$0x1] %v1501_v24  ;;  %4878 = vmatprep.mubr.bf16.mxu0 %v7306_v30  ;;  %v1887_v61 = vshll.u32 %v8159_v6, 16 }
 0x135   : > { %1135 = vst [vmem:[#allocation2 + $0x54] sm:$0xf] %v1134_v38  ;;  %v895_v48 = vrot.slane %v893_v34, 7  ;;  %v1137_v49 = vld [vmem:[#allocation2 + $0x5c] sm:$0x1]  ;;  %v1892_v52 = vshll.u32 %v7309_v32, 16  ;;  %6789 = vmatprep.subr.bf16.mxu1 %v7327_v21 }
 0x136   : > { %v7311_v53 = vld [vmem:[#allocation2 + $0x20] ss:$0 sps:$4 sm:$0x11]   ;;  %v878_v58 = vrot.slane %v876_v40, 7  ;;  %v2267_v59 = vrot.slane %v7310_v44, 1  ;;  %v1889_v1 = vrot.slane %v1887_v61, 1  ;;  %4710 = vmatmul.mubr.bf16.gmra.mrb[16].mxu1 %v7307_v42 }
 0x137   : > { %v898_v11 = vor.u32 %v896_v35, %v895_v48  ;;  %v900_v0 = vrot.slane %v895_v48, 4  ;;  %v1894_v29 = vrot.slane %v1892_v52, 1  ;;  %v7316_v3 = vld [vmem:[#allocation2 + $0x24] sm:$0xff]   ;;  %v7343_v4 = vld [vmem:[%s8932_s3 + $0x118] sm:$0xff]   ;;  %v1454_v51 = vld [vmem:[#allocation2 + $0x60] sm:$0x1]  ;;  %6790 = vmatpush3.bf16.msra.mxu1 %v7329_v37 }
 0x138   : > { %v881_v6 = vor.u32 %v879_v41, %v878_v58  ;;  %v883_v7 = vrot.slane %v878_v58, 4  ;;  %v2268_v9 = vrot.slane %v7311_v53, 1  ;;  %v652_v16 = vmax.f32 %v8114_v14, 0.0  ;;  %v7357_v55 = vld [vmem:[%s8932_s3 + $0x160] sm:$0xff]   ;;  %v8217_v8 = vpop.f32.mrb[20].mxu0  ;;  %v7312_v17 = vld [vmem:[#allocation2 + $0x30] sm:$0xff]   ;;  %6791 = vmatprep.subr.bf16.mxu1 %v7341_v47 }
 0x139   : > { %v1455_v45 = vsel %vm7934_vm8, 0, %v1454_v51  ;;  %v899_v12 = vsel %vm7942_vm9, %v891_v2, %v898_v11  ;;  %v1145_v63 = vsel %vm7934_vm8, %v900_v0, %v1144_v39  ;;  %v1890_v13 = vor.u32 %v1889_v1, %v1885_v25  ;;  %v7317_v5 = vld [vmem:[#allocation2 + $0x2c] ss:$0 sps:$4 sm:$0x11]   ;;  %v8225_v23 = vpop.f32.mrb[21].mxu0  ;;  %v7359_v26 = vld [vmem:[%s8932_s3 + $0x120] sm:$0xff]  }
 0x13a   : > { %1456 = vst [vmem:[#allocation2 + $0x60] sm:$0x1] %v1455_v45  ;;  %1143 = vst [vmem:[#allocation2 + $0x64] sm:$0xf] %v899_v12  ;;  %v882_v14 = vsel %vm7942_vm9, %v874_v20, %v881_v6  ;;  %v1138_v15 = vsel %vm7934_vm8, %v883_v7, %v1137_v49  ;;  %v2269_v57 = vsel %vm2260_vm11, %v2267_v59, %v2268_v9  ;;  %v650_v21 = vmax.f32 %v572_v54, 0.0  ;;  %v7373_v32 = vld [vmem:[%s8932_s3 + $0x168] sm:$0xff]  }
 0x13b   : > { %1146 = vst [vmem:[#allocation2 + $0x68] sm:$0x1] %v1145_v63  ;;  %v6442_v2 = vpack.c.bf16 %v652_v16, %v652_v16  ;;  %1136 = vst [vmem:[#allocation2 + $0x58] sm:$0xf] %v882_v14  ;;  %v1895_v10 = vsel %vm1859_vm12, %v1890_v13, %v1894_v29  ;;  %v1897_v18 = vshrl.u32 %v7316_v3, 16  ;;  %v1899_v22 = vshll.u32 %v7316_v3, 16  ;;  %4879 = vmatmul.mubr.bf16.gmra.mrb[36].mxu0 %v2269_v57 }
 0x13c   : > { %1139 = vst [vmem:[#allocation2 + $0x5c] sm:$0x1] %v1138_v15  ;;  %v1451_v27 = vld [vmem:[#allocation2 + $0x54] sm:$0x1]  ;;  %4717 = vmatprep.mubr.bf16.mxu1 %v1895_v10  ;;  %v1904_v28 = vshll.u32 %v7317_v5, 16  ;;  %v653_v30 = vmax.f32 %v583_v60, 0.0  ;;  %4886 = vmatprep.mubr.bf16.mxu0 %v7312_v17  ;;  %v6440_v34 = vpack.c.bf16 %v650_v21, %v650_v21 }
 0x13d   : > { %v919_v19 = vshrl.u32 %v6442_v2, 16  ;;  %v922_v20 = vshll.u32 %v6442_v2, 16  ;;  %v1452_v25 = vsel %vm7934_vm8, 0, %v1451_v27  ;;  %v1154_v56 = vld [vmem:[#allocation2 + $0x78] sm:$0xf]  ;;  %v1901_v35 = vrot.slane %v1899_v22, 1  ;;  %6792 = vmatpush3.bf16.msra.mxu1 %v7343_v4 }
 0x13e   : > { %v7314_v46 = vld [vmem:[#allocation2 + $0x18] sm:$0xff]   ;;  %v651_v36 = vmax.f32 %v8200_v62, 0.0  ;;  %1453 = vst [vmem:[#allocation2 + $0x54] sm:$0x1] %v1452_v25  ;;  %v1906_v24 = vrot.slane %v1904_v28, 1  ;;  %v6443_v38 = vpack.c.bf16 %v653_v30, %v653_v30  ;;  %6793 = vmatprep.subr.bf16.mxu1 %v7357_v55  ;;  %v902_v40 = vshrl.u32 %v6440_v34, 16 }
 0x13f   : > { %v921_v37 = vrot.slane %v919_v19, 7  ;;  %v7318_v39 = vld [vmem:[#allocation2 + $0x24] sm:$0xfe]   ;;  %v905_v41 = vshll.u32 %v6440_v34, 16  ;;  %v1902_v42 = vor.u32 %v1901_v35, %v1897_v18  ;;  %v8236_v48 = vpop.f32.mrb[22].mxu0  ;;  %4718 = vmatmul.mubr.bf16.gmra.mrb[20].mxu1 %v7314_v46  ;;  %v7389_v3 = vld [vmem:[%s8932_s3 + $0x170] sm:$0xff]  }
 0x140   : > { %v6441_v44 = vpack.c.bf16 %v651_v36, %v651_v36  ;;  %v7319_v47 = vld [vmem:[#allocation2 + $0x2c] ss:$0 sps:$4 sm:$0x11]   ;;  %v927_v54 = vshrl.u32 %v6443_v38, 16  ;;  %v930_v58 = vshll.u32 %v6443_v38, 16  ;;  %v8241_v59 = vpop.f32.mrb[23].mxu0 }
 0x141   : > { %v7375_v49 = vld [vmem:[%s8932_s3 + $0x128] sm:$0xff]   ;;  %v924_v61 = vor.u32 %v922_v20, %v921_v37  ;;  %v925_v52 = vrot.slane %v921_v37, 4  ;;  %v904_v62 = vrot.slane %v902_v40, 7  ;;  %v1907_v11 = vsel %vm1859_vm12, %v1902_v42, %v1906_v24  ;;  %v1158_v0 = vld [vmem:[#allocation2 + $0x80] sm:$0x1]  ;;  %6794 = vmatpush3.bf16.msra.mxu1 %v7359_v26  ;;  %v7322_v55 = vld [vmem:[#allocation2 + $0x30] sm:$0xff]  }
 0x142   : > { %v1147_v53 = vld [vmem:[#allocation2 + $0x6c] sm:$0xf]  ;;  %v1509_v60 = vld [vmem:[#allocation2 + $0x68] sm:$0x1]  ;;  %v910_v1 = vshrl.u32 %v6441_v44, 16  ;;  %v913_v29 = vshll.u32 %v6441_v44, 16  ;;  %4725 = vmatprep.mubr.bf16.mxu1 %v1907_v11  ;;  %6795 = vmatprep.subr.bf16.mxu1 %v7373_v32 }
 0x143   : > { %v1510_v4 = vsel %vm7989_vm10, 0, %v1509_v60  ;;  %v1506_v51 = vld [vmem:[#allocation2 + $0x5c] sm:$0x1]  ;;  %v1155_v6 = vsel %vm7928_vm7, %v924_v61, %v1154_v56  ;;  %v929_v7 = vrot.slane %v927_v54, 7  ;;  %v1151_v9 = vld [vmem:[#allocation2 + $0x74] sm:$0x1]  ;;  %v907_v12 = vor.u32 %v905_v41, %v904_v62 }
 0x144   : > { %v2270_v16 = vrot.slane %v7318_v39, 1  ;;  %1511 = vst [vmem:[#allocation2 + $0x68] sm:$0x1] %v1510_v4  ;;  %v1507_v45 = vsel %vm7989_vm10, 0, %v1506_v51  ;;  %1156 = vst [vmem:[#allocation2 + $0x78] sm:$0xf] %v1155_v6 }
 0x145   : > { %v908_v63 = vrot.slane %v904_v62, 4  ;;  %v912_v13 = vrot.slane %v910_v1, 7  ;;  %v7391_v14 = vld [vmem:[%s8932_s3 + $0x130] sm:$0xff]   ;;  %1508 = vst [vmem:[#allocation2 + $0x5c] sm:$0x1] %v1507_v45  ;;  %v932_v15 = vor.u32 %v930_v58, %v929_v7  ;;  %v934_v57 = vrot.slane %v929_v7, 4  ;;  %6796 = vmatpush3.bf16.msra.mxu1 %v7375_v49 }
 0x146   : > { %v2271_v17 = vrot.slane %v7319_v47, 1  ;;  %v7320_v2 = vld [vmem:[#allocation2 + $0x3c] sm:$0xff]   ;;  %v7321_v5 = vld [vmem:[#allocation2 + $0x24] sm:$0xff]   ;;  %v1148_v18 = vsel %vm7928_vm7, %v907_v12, %v1147_v53  ;;  %v1909_v27 = vshrl.u32 %v7322_v55, 16  ;;  %v1911_v32 = vshll.u32 %v7322_v55, 16  ;;  %6797 = vmatprep.subr.bf16.mxu1 %v7389_v3 }
 0x147   : > { %v8259_v10 = vld [vmem:[%s8931_s2] ss:$0 sm:$0xff]  ;;  %v915_v22 = vor.u32 %v913_v29, %v912_v13  ;;  %v917_v26 = vrot.slane %v912_v13, 4  ;;  %1149 = vst [vmem:[#allocation2 + $0x6c] sm:$0xf] %v1148_v18  ;;  %v933_v19 = vsel %vm7942_vm9, %v925_v52, %v932_v15  ;;  %v1159_v20 = vsel %vm7934_vm8, %v934_v57, %v1158_v0  ;;  %4726 = vmatmul.mubr.bf16.gmra.mrb[24].mxu1 %v7321_v5  ;;  %v7326_v61 = vld [vmem:[#allocation2 + $0x48] sm:$0xff]  }
 0x148   : > { %v596_v21 = vadd.f32 %v8259_v10, %v8217_v8  ;;  %v2272_v28 = vsel %vm2260_vm11, %v2270_v16, %v2271_v17  ;;  %v7323_v30 = vld [vmem:[#allocation2 + $0x38] ss:$0 sps:$4 sm:$0x11]   ;;  %1157 = vst [vmem:[#allocation2 + $0x7c] sm:$0xf] %v933_v19  ;;  %v588_v56 = vadd.f32 %v8259_v10, %v8225_v23  ;;  %v1913_v46 = vrot.slane %v1911_v32, 1 }
 0x149   : > { %1160 = vst [vmem:[#allocation2 + $0x80] sm:$0x1] %v1159_v20  ;;  %v916_v8 = vsel %vm7942_vm9, %v908_v63, %v915_v22  ;;  %v1152_v25 = vsel %vm7934_vm8, %v917_v26, %v1151_v9  ;;  %4887 = vmatmul.mubr.bf16.gmra.mrb[40].mxu0 %v2272_v28  ;;  %v1916_v34 = vshll.u32 %v7323_v30, 16  ;;  %v7324_v35 = vld [vmem:[#allocation2 + $0x30] sm:$0xfe]   ;;  %6798 = vmatpush3.bf16.msra.mxu1 %v7391_v14  ;;  %v7330_v47 = vld [vmem:[#allocation2 + $0x3c] sm:$0xff]  }
 0x14a   : > { %1150 = vst [vmem:[#allocation2 + $0x70] sm:$0xf] %v916_v8  ;;  %1153 = vst [vmem:[#allocation2 + $0x74] sm:$0x1] %v1152_v25  ;;  %4894 = vmatprep.mubr.bf16.mxu0 %v7320_v2  ;;  %v656_v37 = vmax.f32 %v596_v21, 0.0  ;;  %v1914_v38 = vor.u32 %v1913_v46, %v1909_v27  ;;  %v2273_v40 = vrot.slane %v7324_v35, 1  ;;  %v599_v62 = vadd.f32 %v8259_v10, %v8236_v48 }
 0x14b   : > { %v7325_v36 = vld [vmem:[#allocation2 + $0x38] ss:$0 sps:$4 sm:$0x11]   ;;  %v1918_v39 = vrot.slane %v1916_v34, 1  ;;  %v654_v23 = vmax.f32 %v588_v56, 0.0  ;;  %v7328_v52 = vld [vmem:[#allocation2 + $0x30] sm:$0xff]   ;;  %v591_v4 = vadd.f32 %v8259_v10, %v8241_v59 }
 0x14c   : > { %v1460_v24 = vld [vmem:[#allocation2 + $0x78] sm:$0x1]  ;;  %v2274_v42 = vrot.slane %v7325_v36, 1  ;;  %v6446_v44 = vpack.c.bf16 %v656_v37, %v656_v37  ;;  %v1168_v29 = vld [vmem:[#allocation2 + $0x90] sm:$0xf]  ;;  %v8286_v51 = vld [vmem:[#allocation2 + $0x48] sm:$0xff]  }
 0x14d   : > { %v1461_v41 = vsel %vm7934_vm8, 0, %v1460_v24  ;;  %v1919_v49 = vsel %vm1859_vm12, %v1914_v38, %v1918_v39  ;;  %v6444_v60 = vpack.c.bf16 %v654_v23, %v654_v23  ;;  %v7331_v3 = vld [vmem:[#allocation2 + $0x44] ss:$0 sps:$4 sm:$0x11]   ;;  %v1921_v59 = vshrl.u32 %v7330_v47, 16  ;;  %v7078_v17 = vpop.f32.mrb[24].mxu0 }
 0x14e   : > { %1462 = vst [vmem:[#allocation2 + $0x78] sm:$0x1] %v1461_v41  ;;  %v1457_v53 = vld [vmem:[#allocation2 + $0x6c] sm:$0x1]  ;;  %4733 = vmatprep.mubr.bf16.mxu1 %v1919_v49  ;;  %v953_v54 = vshrl.u32 %v6446_v44, 16  ;;  %v956_v58 = vshll.u32 %v6446_v44, 16  ;;  %v2275_v1 = vsel %vm2260_vm11, %v2273_v40, %v2274_v42 }
 0x14f   : > { %v1458_v11 = vsel %vm7934_vm8, 0, %v1457_v53  ;;  %v936_v9 = vshrl.u32 %v6444_v60, 16  ;;  %v939_v16 = vshll.u32 %v6444_v60, 16  ;;  %4734 = vmatmul.mubr.bf16.gmra.mrb[28].mxu1 %v7328_v52  ;;  %v1161_v45 = vld [vmem:[#allocation2 + $0x84] sm:$0xf]  ;;  %v1923_v12 = vshll.u32 %v7330_v47, 16 }
 0x150   : > { %v1515_v0 = vld [vmem:[#allocation2 + $0x80] sm:$0x1]  ;;  %1459 = vst [vmem:[#allocation2 + $0x6c] sm:$0x1] %v1458_v11  ;;  %v8290_v48 = vrot.slane %v953_v54, 7  ;;  %v1928_v63 = vshll.u32 %v7331_v3, 16 }
 0x151   : > { %v1516_v6 = vsel %vm7989_vm10, 0, %v1515_v0  ;;  %v1512_v7 = vld [vmem:[#allocation2 + $0x74] sm:$0x1]  ;;  %4895 = vmatmul.mubr.bf16.gmra.mrb[44].mxu0 %v2275_v1  ;;  %v938_v15 = vrot.slane %v936_v9, 7  ;;  %v657_v57 = vmax.f32 %v599_v62, 0.0  ;;  %v1925_v2 = vrot.slane %v1923_v12, 1 }
 0x152   : > { %1517 = vst [vmem:[#allocation2 + $0x80] sm:$0x1] %v1516_v6  ;;  %v1513_v55 = vsel %vm7989_vm10, 0, %v1512_v7  ;;  %4902 = vmatprep.mubr.bf16.mxu0 %v7326_v61  ;;  %v958_v13 = vor.u32 %v956_v58, %v8290_v48  ;;  %v959_v14 = vrot.slane %v8290_v48, 4  ;;  %v1930_v5 = vrot.slane %v1928_v63, 1  ;;  %v7335_v25 = vld [vmem:[#allocation2 + $0x3c] sm:$0xff]  }
 0x153   : > { %1514 = vst [vmem:[#allocation2 + $0x74] sm:$0x1] %v1513_v55  ;;  %v655_v21 = vmax.f32 %v591_v4, 0.0  ;;  %v7332_v18 = vld [vmem:[#allocation2 + $0x3c] sm:$0xfe]   ;;  %v1933_v22 = vshrl.u32 %v8286_v51, 16  ;;  %v941_v27 = vor.u32 %v939_v16, %v938_v15  ;;  %v6447_v20 = vpack.c.bf16 %v657_v57, %v657_v57 }
 0x154   : > { %v1169_v26 = vsel %vm7928_vm7, %v958_v13, %v1168_v29  ;;  %v942_v19 = vrot.slane %v938_v15, 4  ;;  %v7333_v28 = vld [vmem:[#allocation2 + $0x44] ss:$0 sps:$4 sm:$0x11]   ;;  %v1926_v30 = vor.u32 %v1925_v2, %v1921_v59  ;;  %v2276_v8 = vrot.slane %v7332_v18, 1  ;;  %v7334_v37 = vld [vmem:[#allocation2 + $0x54] sm:$0xff]  }
 0x155   : > { %1170 = vst [vmem:[#allocation2 + $0x90] sm:$0xf] %v1169_v26  ;;  %v6445_v32 = vpack.c.bf16 %v655_v21, %v655_v21  ;;  %v1935_v56 = vshll.u32 %v8286_v51, 16  ;;  %v1162_v46 = vsel %vm7928_vm7, %v941_v27, %v1161_v45  ;;  %v961_v34 = vshrl.u32 %v6447_v20, 16  ;;  %v1172_v38 = vld [vmem:[#allocation2 + $0x98] sm:$0x1] }
 0x156   : > { %v964_v35 = vshll.u32 %v6447_v20, 16  ;;  %v2277_v36 = vrot.slane %v7333_v28, 1  ;;  %1163 = vst [vmem:[#allocation2 + $0x84] sm:$0xf] %v1162_v46  ;;  %v1931_v24 = vsel %vm1859_vm12, %v1926_v30, %v1930_v5  ;;  %v1165_v42 = vld [vmem:[#allocation2 + $0x8c] sm:$0x1]  ;;  %v612_v58 = vadd.f32 %v8259_v10, %v7078_v17 }
 0x157   : > { %v944_v39 = vshrl.u32 %v6445_v32, 16  ;;  %v947_v40 = vshll.u32 %v6445_v32, 16  ;;  %4741 = vmatprep.mubr.bf16.mxu1 %v1931_v24  ;;  %v963_v41 = vrot.slane %v961_v34, 7  ;;  %v7337_v23 = vld [vmem:[#allocation2 + $0x50] ss:$0 sps:$4 sm:$0x11]  }
 0x158   : > { %v2278_v44 = vsel %vm2260_vm11, %v2276_v8, %v2277_v36  ;;  %4742 = vmatmul.mubr.bf16.gmra.mrb[32].mxu1 %v7335_v25  ;;  %v1937_v49 = vrot.slane %v1935_v56, 1  ;;  %v1940_v53 = vshll.u32 %v7337_v23, 16  ;;  %v7338_v54 = vld [vmem:[#allocation2 + $0x48] sm:$0xfe]   ;;  %v7340_v59 = vld [vmem:[#allocation2 + $0x60] sm:$0xff]   ;;  %v660_v12 = vmax.f32 %v612_v58, 0.0 }
 0x159   : > { %v946_v47 = vrot.slane %v944_v39, 7  ;;  %4903 = vmatmul.mubr.bf16.gmra.mrb[48].mxu0 %v2278_v44  ;;  %v966_v61 = vor.u32 %v964_v35, %v963_v41  ;;  %v968_v52 = vrot.slane %v963_v41, 4  ;;  %v7339_v0 = vld [vmem:[#allocation2 + $0x50] ss:$0 sps:$4 sm:$0x11]   ;;  %v2279_v51 = vrot.slane %v7338_v54, 1 }
 0x15a   : > { %4910 = vmatprep.mubr.bf16.mxu0 %v7334_v37  ;;  %v1938_v11 = vor.u32 %v1937_v49, %v1933_v22  ;;  %v1942_v4 = vrot.slane %v1940_v53, 1  ;;  %v2280_v9 = vrot.slane %v7339_v0, 1  ;;  %v7342_v16 = vld [vmem:[#allocation2 + $0x48] sm:$0xff]   ;;  %v603_v63 = vpop.f32.mrb[25].mxu0  ;;  %v7344_v15 = vld [vmem:[#allocation2 + $0x54] sm:$0xff]   ;;  %v6450_v17 = vpack.c.bf16 %v660_v12, %v660_v12 }
 0x15b   : > { %v949_v60 = vor.u32 %v947_v40, %v946_v47  ;;  %v951_v62 = vrot.slane %v946_v47, 4  ;;  %v967_v29 = vsel %vm7942_vm9, %v959_v14, %v966_v61  ;;  %v1173_v3 = vsel %vm7934_vm8, %v968_v52, %v1172_v38  ;;  %v7345_v2 = vld [vmem:[#allocation2 + $0x5c] ss:$0 sps:$4 sm:$0x11]   ;;  %v7079_v5 = vpop.f32.mrb[26].mxu0  ;;  %v7350_v52 = vld [vmem:[#allocation2 + $0x60] sm:$0xff]  }
 0x15c   : > { %v1466_v1 = vld [vmem:[#allocation2 + $0x90] sm:$0x1]  ;;  %1171 = vst [vmem:[#allocation2 + $0x94] sm:$0xf] %v967_v29  ;;  %1174 = vst [vmem:[#allocation2 + $0x98] sm:$0x1] %v1173_v3  ;;  %v1943_v45 = vsel %vm1859_vm12, %v1938_v11, %v1942_v4  ;;  %v604_v14 = vadd.f32 %v8259_v10, %v603_v63  ;;  %v2281_v57 = vsel %vm2260_vm11, %v2279_v51, %v2280_v9 }
 0x15d   : > { %v1467_v6 = vsel %vm7934_vm8, 0, %v1466_v1  ;;  %v950_v7 = vsel %vm7942_vm9, %v942_v19, %v949_v60  ;;  %v1166_v48 = vsel %vm7934_vm8, %v951_v62, %v1165_v42  ;;  %v1463_v55 = vld [vmem:[#allocation2 + $0x84] sm:$0x1]  ;;  %4749 = vmatprep.mubr.bf16.mxu1 %v1943_v45  ;;  %v1945_v18 = vshrl.u32 %v7344_v15, 16  ;;  %v606_v27 = vpop.f32.mrb[27].mxu0  ;;  %v7349_v42 = vld [vmem:[#allocation2 + $0x54] sm:$0xff]  }
 0x15e   : > { %1468 = vst [vmem:[#allocation2 + $0x90] sm:$0x1] %v1467_v6  ;;  %1164 = vst [vmem:[#allocation2 + $0x88] sm:$0xf] %v950_v7  ;;  %v1464_v13 = vsel %vm7934_vm8, 0, %v1463_v55  ;;  %v658_v21 = vmax.f32 %v604_v14, 0.0  ;;  %v615_v26 = vadd.f32 %v8259_v10, %v7079_v5  ;;  %v607_v30 = vadd.f32 %v8259_v10, %v606_v27 }
 0x15f   : > { %1167 = vst [vmem:[#allocation2 + $0x8c] sm:$0x1] %v1166_v48  ;;  %1465 = vst [vmem:[#allocation2 + $0x84] sm:$0x1] %v1464_v13  ;;  %v1947_v22 = vshll.u32 %v7344_v15, 16  ;;  %v987_v19 = vshrl.u32 %v6450_v17, 16 }
 0x160   : > { %4750 = vmatmul.mubr.bf16.gmra.mrb[36].mxu1 %v7342_v16  ;;  %v990_v20 = vshll.u32 %v6450_v17, 16  ;;  %v1952_v28 = vshll.u32 %v7345_v2, 16  ;;  %v1182_v32 = vld [vmem:[#allocation2 + $0xa8] sm:$0xf]  ;;  %v6448_v8 = vpack.c.bf16 %v658_v21, %v658_v21  ;;  %v661_v56 = vmax.f32 %v615_v26, 0.0  ;;  %v7348_v29 = vld [vmem:[#allocation2 + $0x6c] sm:$0xff]  }
 0x161   : > { %4911 = vmatmul.mubr.bf16.gmra.mrb[52].mxu0 %v2281_v57  ;;  %v1949_v25 = vrot.slane %v1947_v22, 1  ;;  %v7346_v46 = vld [vmem:[#allocation2 + $0x54] sm:$0xfe]   ;;  %v989_v35 = vrot.slane %v987_v19, 7  ;;  %v659_v37 = vmax.f32 %v607_v30, 0.0  ;;  %v7360_v48 = vld [vmem:[#allocation2 + $0x6c] sm:$0xff]  }
 0x162   : > { %4918 = vmatprep.mubr.bf16.mxu0 %v7340_v59  ;;  %v1954_v36 = vrot.slane %v1952_v28, 1  ;;  %v970_v39 = vshrl.u32 %v6448_v8, 16  ;;  %v973_v40 = vshll.u32 %v6448_v8, 16  ;;  %v1175_v47 = vld [vmem:[#allocation2 + $0x9c] sm:$0xf]  ;;  %v6451_v49 = vpack.c.bf16 %v661_v56, %v661_v56 }
 0x163   : > { %v1521_v34 = vld [vmem:[#allocation2 + $0x98] sm:$0x1]  ;;  %v1950_v41 = vor.u32 %v1949_v25, %v1945_v18  ;;  %v992_v44 = vor.u32 %v990_v20, %v989_v35  ;;  %v993_v23 = vrot.slane %v989_v35, 4  ;;  %v7347_v61 = vld [vmem:[#allocation2 + $0x5c] ss:$0 sps:$4 sm:$0x11]   ;;  %v6449_v58 = vpack.c.bf16 %v659_v37, %v659_v37 }
 0x164   : > { %v1522_v24 = vsel %vm7989_vm10, 0, %v1521_v34  ;;  %v972_v53 = vrot.slane %v970_v39, 7  ;;  %v2282_v60 = vrot.slane %v7346_v46, 1  ;;  %v995_v11 = vshrl.u32 %v6451_v49, 16  ;;  %v1186_v51 = vld [vmem:[#allocation2 + $0xb0] sm:$0x1] }
 0x165   : > { %1523 = vst [vmem:[#allocation2 + $0x98] sm:$0x1] %v1522_v24  ;;  %v1955_v54 = vsel %vm1859_vm12, %v1950_v41, %v1954_v36  ;;  %v1183_v62 = vsel %vm7928_vm7, %v992_v44, %v1182_v32  ;;  %v998_v0 = vshll.u32 %v6451_v49, 16  ;;  %v2283_v1 = vrot.slane %v7347_v61, 1  ;;  %v1179_v16 = vld [vmem:[#allocation2 + $0xa4] sm:$0x1] }
 0x166   : > { %v1518_v38 = vld [vmem:[#allocation2 + $0x8c] sm:$0x1]  ;;  %4757 = vmatprep.mubr.bf16.mxu1 %v1955_v54  ;;  %1184 = vst [vmem:[#allocation2 + $0xa8] sm:$0xf] %v1183_v62  ;;  %v975_v3 = vor.u32 %v973_v40, %v972_v53  ;;  %v976_v4 = vrot.slane %v972_v53, 4  ;;  %v978_v6 = vshrl.u32 %v6449_v58, 16 }
 0x167   : > { %v1519_v10 = vsel %vm7989_vm10, 0, %v1518_v38  ;;  %v981_v7 = vshll.u32 %v6449_v58, 16  ;;  %v997_v9 = vrot.slane %v995_v11, 7  ;;  %v2284_v55 = vsel %vm2260_vm11, %v2282_v60, %v2283_v1  ;;  %v7351_v63 = vld [vmem:[#allocation2 + $0x68] ss:$0 sps:$4 sm:$0x11]  }
 0x168   : > { %1520 = vst [vmem:[#allocation2 + $0x8c] sm:$0x1] %v1519_v10  ;;  %4758 = vmatmul.mubr.bf16.gmra.mrb[40].mxu1 %v7349_v42  ;;  %v1957_v45 = vshrl.u32 %v7350_v52, 16  ;;  %v1176_v59 = vsel %vm7928_vm7, %v975_v3, %v1175_v47  ;;  %v980_v12 = vrot.slane %v978_v6, 7  ;;  %v1959_v13 = vshll.u32 %v7350_v52, 16  ;;  %v7358_v25 = vld [vmem:[#allocation2 + $0x60] sm:$0xff]  }
 0x169   : > { %4919 = vmatmul.mubr.bf16.gmra.mrb[56].mxu0 %v2284_v55  ;;  %v1969_v14 = vshrl.u32 %v7360_v48, 16  ;;  %1177 = vst [vmem:[#allocation2 + $0x9c] sm:$0xf] %v1176_v59  ;;  %v1000_v15 = vor.u32 %v998_v0, %v997_v9  ;;  %v1002_v57 = vrot.slane %v997_v9, 4  ;;  %v1971_v17 = vshll.u32 %v7360_v48, 16  ;;  %v7356_v35 = vld [vmem:[#allocation2 + $0x78] sm:$0xff]  }
 0x16a   : > { %4926 = vmatprep.mubr.bf16.mxu0 %v7348_v29  ;;  %v983_v2 = vor.u32 %v981_v7, %v980_v12  ;;  %v985_v5 = vrot.slane %v980_v12, 4  ;;  %v1961_v21 = vrot.slane %v1959_v13, 1  ;;  %v1964_v18 = vshll.u32 %v7351_v63, 16  ;;  %v7353_v27 = vld [vmem:[#allocation2 + $0x60] sm:$0xfe]   ;;  %v7366_v24 = vld [vmem:[#allocation2 + $0x78] sm:$0xff]  }
 0x16b   : > { %v1001_v22 = vsel %vm7942_vm9, %v993_v23, %v1000_v15  ;;  %v1187_v26 = vsel %vm7934_vm8, %v1002_v57, %v1186_v51  ;;  %v7354_v19 = vld [vmem:[#allocation2 + $0x68] ss:$0 sps:$4 sm:$0x11]   ;;  %v1973_v20 = vrot.slane %v1971_v17, 1  ;;  %v2285_v46 = vrot.slane %v7353_v27, 1  ;;  %v7365_v62 = vld [vmem:[#allocation2 + $0x6c] sm:$0xff]  }
 0x16c   : > { %1185 = vst [vmem:[#allocation2 + $0xac] sm:$0xf] %v1001_v22  ;;  %1188 = vst [vmem:[#allocation2 + $0xb0] sm:$0x1] %v1187_v26  ;;  %v984_v28 = vsel %vm7942_vm9, %v976_v4, %v983_v2  ;;  %v1180_v30 = vsel %vm7934_vm8, %v985_v5, %v1179_v16  ;;  %v1962_v32 = vor.u32 %v1961_v21, %v1957_v45  ;;  %v1966_v8 = vrot.slane %v1964_v18, 1  ;;  %v7364_v3 = vld [vmem:[#allocation2 + $0x84] sm:$0xff]  }
 0x16d   : > { %v1472_v56 = vld [vmem:[#allocation2 + $0xa8] sm:$0x1]  ;;  %1178 = vst [vmem:[#allocation2 + $0xa0] sm:$0xf] %v984_v28  ;;  %1181 = vst [vmem:[#allocation2 + $0xa4] sm:$0x1] %v1180_v30  ;;  %v1974_v44 = vor.u32 %v1973_v20, %v1969_v14 }
 0x16e   : > { %v2286_v34 = vrot.slane %v7354_v19, 1  ;;  %v1473_v36 = vsel %vm7934_vm8, 0, %v1472_v56  ;;  %v1967_v37 = vsel %vm1859_vm12, %v1962_v32, %v1966_v8  ;;  %v7361_v40 = vld [vmem:[#allocation2 + $0x74] ss:$0 sps:$4 sm:$0x11]   ;;  %v1981_v41 = vshrl.u32 %v7366_v24, 16 }
 0x16f   : > { %1474 = vst [vmem:[#allocation2 + $0xa8] sm:$0x1] %v1473_v36  ;;  %4765 = vmatprep.mubr.bf16.mxu1 %v1967_v37  ;;  %v1983_v10 = vshll.u32 %v7366_v24, 16  ;;  %v1976_v23 = vshll.u32 %v7361_v40, 16  ;;  %v7362_v47 = vld [vmem:[#allocation2 + $0x6c] sm:$0xfe]  }
 0x170   : > { %v2287_v38 = vsel %vm2260_vm11, %v2285_v46, %v2286_v34  ;;  %v1469_v39 = vld [vmem:[#allocation2 + $0x9c] sm:$0x1]  ;;  %4766 = vmatmul.mubr.bf16.gmra.mrb[44].mxu1 %v7358_v25  ;;  %v7363_v49 = vld [vmem:[#allocation2 + $0x74] ss:$0 sps:$4 sm:$0x11]   ;;  %v2288_v58 = vrot.slane %v7362_v47, 1 }
 0x171   : > { %4927 = vmatmul.mubr.bf16.gmra.mrb[60].mxu0 %v2287_v38  ;;  %v1470_v42 = vsel %vm7934_vm8, 0, %v1469_v39  ;;  %v1978_v54 = vrot.slane %v1976_v23, 1  ;;  %v2289_v60 = vrot.slane %v7363_v49, 1  ;;  %v1985_v0 = vrot.slane %v1983_v10, 1  ;;  %v7369_v51 = vld [vmem:[#allocation2 + $0x78] sm:$0xfe]  }
 0x172   : > { %4934 = vmatprep.mubr.bf16.mxu0 %v7356_v35  ;;  %1471 = vst [vmem:[#allocation2 + $0x9c] sm:$0x1] %v1470_v42  ;;  %v7367_v4 = vld [vmem:[#allocation2 + $0x80] ss:$0 sps:$4 sm:$0x11]   ;;  %v2291_v9 = vrot.slane %v7369_v51, 1 }
 0x173   : > { %v1527_v61 = vld [vmem:[#allocation2 + $0xb0] sm:$0x1]  ;;  %v1979_v1 = vsel %vm1859_vm12, %v1974_v44, %v1978_v54  ;;  %v2290_v29 = vsel %vm2260_vm11, %v2288_v58, %v2289_v60  ;;  %v1986_v6 = vor.u32 %v1985_v0, %v1981_v41  ;;  %v1988_v7 = vshll.u32 %v7367_v4, 16  ;;  %v7370_v48 = vld [vmem:[#allocation2 + $0x80] ss:$0 sps:$4 sm:$0x11]  }
 0x174   : > { %v1528_v52 = vsel %vm7989_vm10, 0, %v1527_v61  ;;  %v1524_v53 = vld [vmem:[#allocation2 + $0xa4] sm:$0x1]  ;;  %4773 = vmatprep.mubr.bf16.mxu1 %v1979_v1  ;;  %v2292_v55 = vrot.slane %v7370_v48, 1  ;;  %v8352_v59 = vpop.f32.mrb[8].mxu1  ;;  %v7372_v63 = vld [vmem:[#allocation2 + $0x90] sm:$0xff]  }
 0x175   : > { %1529 = vst [vmem:[#allocation2 + $0xb0] sm:$0x1] %v1528_v52  ;;  %v1525_v11 = vsel %vm7989_vm10, 0, %v1524_v53  ;;  %v1990_v16 = vrot.slane %v1988_v7, 1  ;;  %v7376_v45 = vld [vmem:[#allocation2 + $0x84] sm:$0xff]   ;;  %v7374_v13 = vld [vmem:[#allocation2 + $0x78] sm:$0xff]  }
 0x176   : > { %1526 = vst [vmem:[#allocation2 + $0xa4] sm:$0x1] %v1525_v11  ;;  %v7377_v14 = vld [vmem:[#allocation2 + $0x8c] ss:$0 sps:$4 sm:$0x11]   ;;  %v1993_v15 = vshrl.u32 %v7376_v45, 16  ;;  %v2293_v17 = vsel %vm2260_vm11, %v2291_v9, %v2292_v55 }
 0x177   : > { %v1991_v12 = vsel %vm1859_vm12, %v1986_v6, %v1990_v16  ;;  %v1995_v57 = vshll.u32 %v7376_v45, 16  ;;  %v2000_v2 = vshll.u32 %v7377_v14, 16  ;;  %v7378_v5 = vld [vmem:[#allocation2 + $0x84] sm:$0xfe]   ;;  %v7382_v27 = vld [vmem:[#allocation2 + $0x90] sm:$0xff]   ;;  %v7400_v58 = vld [vmem:[%s8932_s3 + $0x1d8] sm:$0xff]  }
 0x178   : > { %4774 = vmatmul.mubr.bf16.gmra.mrb[48].mxu1 %v7365_v62  ;;  %v7379_v21 = vld [vmem:[#allocation2 + $0x8c] ss:$0 sps:$4 sm:$0x11]   ;;  %v2294_v26 = vrot.slane %v7378_v5, 1  ;;  %v2005_v32 = vshrl.u32 %v7382_v27, 16  ;;  %v2007_v8 = vshll.u32 %v7382_v27, 16  ;;  %6903 = vmatprep.subr.bf16.mxu0 %v7400_v58 }
 0x179   : > { %4935 = vmatmul.mubr.bf16.gmra.mrb[64].mxu0 %v2290_v29  ;;  %4781 = vmatprep.mubr.bf16.mxu1 %v1991_v12  ;;  %v1997_v18 = vrot.slane %v1995_v57, 1  ;;  %v2002_v22 = vrot.slane %v2000_v2, 1  ;;  %v2295_v20 = vrot.slane %v7379_v21, 1  ;;  %v7383_v28 = vld [vmem:[#allocation2 + $0x98] ss:$0 sps:$4 sm:$0x11]  }
 0x17a   : > { %4942 = vmatprep.mubr.bf16.mxu0 %v7364_v3  ;;  %v7381_v25 = vld [vmem:[#allocation2 + $0x84] sm:$0xff]   ;;  %v2012_v56 = vshll.u32 %v7383_v28, 16  ;;  %v7385_v46 = vld [vmem:[#allocation2 + $0x90] sm:$0xfe]   ;;  %v2009_v34 = vrot.slane %v2007_v8, 1  ;;  %v7380_v37 = vld [vmem:[#allocation2 + $0x9c] sm:$0xff]  }
 0x17b   : > { %v1998_v19 = vor.u32 %v1997_v18, %v1993_v15  ;;  %v7386_v35 = vld [vmem:[#allocation2 + $0x98] ss:$0 sps:$4 sm:$0x11]   ;;  %v2296_v36 = vsel %vm2260_vm11, %v2294_v26, %v2295_v20  ;;  %v2297_v39 = vrot.slane %v7385_v46, 1  ;;  %v7392_v40 = vld [vmem:[#allocation2 + $0x9c] sm:$0xff]   ;;  %v7398_v53 = vld [vmem:[#allocation2 + $0xa8] sm:$0xff]  }
 0x17c   : > { %v2014_v24 = vrot.slane %v2012_v56, 1  ;;  %v2010_v38 = vor.u32 %v2009_v34, %v2005_v32  ;;  %v2298_v42 = vrot.slane %v7386_v35, 1  ;;  %v2017_v44 = vshrl.u32 %v7392_v40, 16  ;;  %v7394_v47 = vld [vmem:[#allocation2 + $0x9c] sm:$0xfe]   ;;  %v7388_v54 = vld [vmem:[#allocation2 + $0xa8] sm:$0xff]  }
 0x17d   : > { %v2003_v30 = vsel %vm1859_vm12, %v1998_v19, %v2002_v22  ;;  %v7393_v10 = vld [vmem:[#allocation2 + $0xa4] ss:$0 sps:$4 sm:$0x11]   ;;  %v2019_v23 = vshll.u32 %v7392_v40, 16  ;;  %v7390_v60 = vld [vmem:[#allocation2 + $0x90] sm:$0xff]   ;;  %v2029_v29 = vshrl.u32 %v7398_v53, 16 }
 0x17e   : > { %v2015_v41 = vsel %vm1859_vm12, %v2010_v38, %v2014_v24  ;;  %v2024_v61 = vshll.u32 %v7393_v10, 16  ;;  %v7395_v52 = vld [vmem:[#allocation2 + $0xa4] ss:$0 sps:$4 sm:$0x11]   ;;  %v2299_v0 = vsel %vm2260_vm11, %v2297_v39, %v2298_v42  ;;  %v2031_v4 = vshll.u32 %v7398_v53, 16  ;;  %v7401_v51 = vld [vmem:[%s8932_s3 + $0x198] sm:$0xff]  }
 0x17f   : > { %v2021_v49 = vrot.slane %v2019_v23, 1  ;;  %v7399_v1 = vld [vmem:[#allocation2 + $0xb0] ss:$0 sps:$4 sm:$0x11]   ;;  %v2300_v6 = vrot.slane %v7394_v47, 1  ;;  %v2301_v7 = vrot.slane %v7395_v52, 1  ;;  %6904 = vmatpush3.bf16.msra.mxu0 %v7401_v51 }
 0x180   : > { %4782 = vmatmul.mubr.bf16.gmra.mrb[52].mxu1 %v7374_v13  ;;  %v2026_v11 = vrot.slane %v2024_v61, 1  ;;  %v2036_v48 = vshll.u32 %v7399_v1, 16  ;;  %v7404_v9 = vld [vmem:[%s8932_s3 + $0x1e0] sm:$0xff]   ;;  %v2033_v16 = vrot.slane %v2031_v4, 1  ;;  %v7407_v12 = vld [vmem:[%s8932_s3 + $0x178] sm:$0xff]   ;;  %v7094_v57 = vpop.f32.mrb[9].mxu1 }
 0x181   : > { %4943 = vmatmul.mubr.bf16.gmra.mrb[68].mxu0 %v2293_v17  ;;  %4789 = vmatprep.mubr.bf16.mxu1 %v2003_v30  ;;  %v2022_v62 = vor.u32 %v2021_v49, %v2017_v44  ;;  %v7403_v55 = vld [vmem:[#allocation2 + $0xb0] ss:$0 sps:$4 sm:$0x11]   ;;  %v7406_v45 = vld [vmem:[%s8932_s3 + $0x1a0] sm:$0xff]   ;;  %v7409_v15 = vld [vmem:[%s8932_s3 + $0x138] sm:$0xff]   ;;  %v8379_v5 = vpop.f32.mrb[10].mxu1  ;;  %v2302_v27 = vsel %vm2260_vm11, %v2300_v6, %v2301_v7 }
 0x182   : > { %4950 = vmatprep.mubr.bf16.mxu0 %v7372_v63  ;;  %v7402_v63 = vld [vmem:[#allocation2 + $0xa8] sm:$0xfe]   ;;  %6905 = vmatprep.subr.bf16.mxu0 %v7404_v9  ;;  %v2034_v13 = vor.u32 %v2033_v16, %v2029_v29  ;;  %v2038_v14 = vrot.slane %v2036_v48, 1  ;;  %v7396_v17 = vld [vmem:[#allocation2 + $0xb4] sm:$0xff]   ;;  %v7397_v21 = vld [vmem:[#allocation2 + $0x9c] sm:$0xff]   ;;  %v7095_v26 = vpop.f32.mrb[11].mxu1 }
 0x183   : > { %v2027_v3 = vsel %vm1859_vm12, %v2022_v62, %v2026_v11  ;;  %6799 = vmatprep.subr.bf16.mxu1 %v7407_v12  ;;  %v7410_v2 = vld [vmem:[#allocation2 + $0xb4] sm:$0xff]   ;;  %6906 = vmatpush3.bf16.msra.mxu0 %v7406_v45  ;;  %v7411_v18 = vld [vmem:[#allocation2 + $0xbc] ss:$0 sps:$4 sm:$0x11]   ;;  %v7412_v22 = vld [vmem:[%s8932_s3 + $0x1e8] sm:$0xff]   ;;  %v2303_v30 = vrot.slane %v7402_v63, 1 }
 0x184   : > { %6800 = vmatpush3.bf16.msra.mxu1 %v7409_v15  ;;  %v2043_v19 = vshll.u32 %v7410_v2, 16  ;;  %v7413_v20 = vld [vmem:[%s8932_s3 + $0x1a8] sm:$0xff]   ;;  %v2039_v28 = vsel %vm1859_vm12, %v2034_v13, %v2038_v14  ;;  %v2304_v32 = vrot.slane %v7403_v55, 1  ;;  %v2048_v8 = vshll.u32 %v7411_v18, 16  ;;  %v7418_v35 = vld [vmem:[#allocation2 + $0x18] sm:$0xff]   ;;  %6907 = vmatprep.subr.bf16.mxu0 %v7412_v22 }
 0x185   : > { %v2041_v56 = vshrl.u32 %v7410_v2, 16  ;;  %v7415_v34 = vld [vmem:[#allocation2 + $0xbc] ss:$0 sps:$4 sm:$0x11]   ;;  %v3465_v40 = vshll.u32 %v7418_v35, 16  ;;  %v7408_v42 = vld [vmem:[#allocation2 + $0xa8] sm:$0xff]  }
 0x186   : > { %v2045_v46 = vrot.slane %v2043_v19, 1  ;;  %v7419_v24 = vld [vmem:[#allocation2 + $0x20] ss:$0 sps:$4 sm:$0x11]   ;;  %v2050_v39 = vrot.slane %v2048_v8, 1  ;;  %v7423_v47 = vld [vmem:[%s8932_s3 + $0x1f8] sm:$0xff]   ;;  %v2305_v49 = vsel %vm2260_vm11, %v2303_v30, %v2304_v32 }
 0x187   : > { %6908 = vmatpush3.bf16.msra.mxu0 %v7413_v20  ;;  %v3470_v10 = vshll.u32 %v7419_v24, 16  ;;  %v7421_v23 = vld [vmem:[#allocation2 + $0xc] sm:$0xfe]   ;;  %v2307_v61 = vrot.slane %v7415_v34, 1  ;;  %v3463_v52 = vshrl.u32 %v7418_v35, 16  ;;  %v7426_v62 = vld [vmem:[#allocation2 + $0x24] sm:$0xff]  }
 0x188   : > { %4790 = vmatmul.mubr.bf16.gmra.mrb[56].mxu1 %v7381_v25  ;;  %v7416_v25 = vld [vmem:[%s8932_s3 + $0x1f0] sm:$0xff]   ;;  %v2046_v38 = vor.u32 %v2045_v46, %v2041_v56  ;;  %v3061_v1 = vrot.slane %v7421_v23, 1  ;;  %v7427_v29 = vld [vmem:[#allocation2 + $0x2c] ss:$0 sps:$4 sm:$0x11]   ;;  %v3477_v6 = vshll.u32 %v7426_v62, 16 }
 0x189   : > { %4951 = vmatmul.mubr.bf16.gmra.mrb[72].mxu0 %v2296_v36  ;;  %4797 = vmatprep.mubr.bf16.mxu1 %v2015_v41  ;;  %v7414_v36 = vld [vmem:[#allocation2 + $0xb4] sm:$0xfe]   ;;  %v7405_v41 = vld [vmem:[#allocation2 + $0xc0] sm:$0xff]   ;;  %v7422_v53 = vld [vmem:[#allocation2 + $0x14] ss:$0 sps:$4 sm:$0x11]  }
 0x18a   : > { %4958 = vmatprep.mubr.bf16.mxu0 %v7380_v37  ;;  %v7417_v37 = vld [vmem:[%s8932_s3 + $0x1b0] sm:$0xff]   ;;  %6909 = vmatprep.subr.bf16.mxu0 %v7416_v25  ;;  %v2306_v44 = vrot.slane %v7414_v36, 1  ;;  %v2051_v58 = vsel %vm1859_vm12, %v2046_v38, %v2050_v39  ;;  %v3472_v11 = vrot.slane %v3470_v10, 1  ;;  %v3475_v9 = vshrl.u32 %v7426_v62, 16  ;;  %v7431_v14 = vld [vmem:[#allocation2 + $0x18] sm:$0xfe]  }
 0x18b   : > { %6910 = vmatpush3.bf16.msra.mxu0 %v7417_v37  ;;  %v7429_v4 = vld [vmem:[#allocation2 + $0xc] sm:$0xff]   ;;  %v7430_v7 = vld [vmem:[#allocation2 + $0x14] ss:$0 sps:$4 sm:$0x11]   ;;  %v3482_v16 = vshll.u32 %v7427_v29, 16  ;;  %v3479_v2 = vrot.slane %v3477_v6, 1 }
 0x18c   : > { %6911 = vmatprep.subr.bf16.mxu0 %v7423_v47  ;;  %v7420_v48 = vld [vmem:[#allocation2 + $0xb4] sm:$0xff]   ;;  %v2664_v55 = vshll.u32 %v7429_v4, 16  ;;  %v2662_v45 = vshrl.u32 %v7429_v4, 16  ;;  %v2669_v12 = vshll.u32 %v7430_v7, 16  ;;  %v2308_v63 = vsel %vm2260_vm11, %v2306_v44, %v2307_v61  ;;  %v7438_v38 = vld [vmem:[#allocation2 + $0x24] sm:$0xfe]  }
 0x18d   : > { %v7432_v15 = vld [vmem:[#allocation2 + $0x20] ss:$0 sps:$4 sm:$0x11]   ;;  %v3484_v18 = vrot.slane %v3482_v16, 1  ;;  %v3064_v19 = vrot.slane %v7431_v14, 1  ;;  %v7436_v20 = vld [vmem:[#allocation2 + $0x18] sm:$0xff]   ;;  %v3480_v30 = vor.u32 %v3479_v2, %v3475_v9 }
 0x18e   : > { %v2666_v13 = vrot.slane %v2664_v55, 1  ;;  %v2671_v22 = vrot.slane %v2669_v12, 1  ;;  %v7435_v26 = vld [vmem:[#allocation2 + $0x38] ss:$0 sps:$4 sm:$0x11]   ;;  %v3065_v25 = vrot.slane %v7432_v15, 1 }
 0x18f   : > { %v7437_v8 = vld [vmem:[#allocation2 + $0x20] ss:$0 sps:$4 sm:$0x11]   ;;  %v3494_v46 = vshll.u32 %v7435_v26, 16  ;;  %v2676_v34 = vshll.u32 %v7436_v20, 16  ;;  %v2674_v35 = vshrl.u32 %v7436_v20, 16 }
 0x190   : > { %4798 = vmatmul.mubr.bf16.gmra.mrb[60].mxu1 %v7390_v60  ;;  %v3467_v60 = vrot.slane %v3465_v40, 1  ;;  %v2681_v36 = vshll.u32 %v7437_v8, 16  ;;  %v7439_v39 = vld [vmem:[#allocation2 + $0x2c] ss:$0 sps:$4 sm:$0x11]   ;;  %v3485_v40 = vsel %vm1859_vm12, %v3480_v30, %v3484_v18  ;;  %v3066_v10 = vsel %vm2260_vm11, %v3064_v19, %v3065_v25  ;;  %v7444_v62 = vld [vmem:[#allocation2 + $0x24] sm:$0xff]  }
 0x191   : > { %4959 = vmatmul.mubr.bf16.gmra.mrb[76].mxu0 %v2299_v0  ;;  %4805 = vmatprep.mubr.bf16.mxu1 %v2027_v3  ;;  %v7428_v0 = vld [vmem:[%s8932_s3 + $0x200] sm:$0xff]   ;;  %v3062_v3 = vrot.slane %v7422_v53, 1  ;;  %v2678_v24 = vrot.slane %v2676_v34, 1  ;;  %v3496_v44 = vrot.slane %v3494_v46, 1  ;;  %v3067_v47 = vrot.slane %v7438_v38, 1  ;;  %v7443_v53 = vld [vmem:[%s8932_s3 + $0x208] sm:$0xff]  }
 0x192   : > { %4966 = vmatprep.mubr.bf16.mxu0 %v7388_v54  ;;  %v7424_v54 = vld [vmem:[%s8932_s3 + $0x1b8] sm:$0xff]   ;;  %7096 = vmatprep.subr.bf16.mxu1 %v7428_v0  ;;  %v3468_v51 = vor.u32 %v3467_v60, %v3463_v52  ;;  %v2683_v23 = vrot.slane %v2681_v36, 1  ;;  %v3068_v60 = vrot.slane %v7439_v39, 1  ;;  %v2688_v4 = vshll.u32 %v7444_v62, 16  ;;  %v7446_v7 = vld [vmem:[#allocation2 + $0x30] sm:$0xfe]  }
 0x193   : > { %6912 = vmatpush3.bf16.msra.mxu0 %v7424_v54  ;;  %v2679_v61 = vor.u32 %v2678_v24, %v2674_v35  ;;  %v7433_v54 = vld [vmem:[#allocation2 + $0x24] sm:$0xff]   ;;  %v3070_v14 = vrot.slane %v7446_v7, 1  ;;  %v7450_v2 = vld [vmem:[#allocation2 + $0x50] ss:$0 sps:$4 sm:$0x11]   ;;  %v7456_v35 = vld [vmem:[#allocation2 + $0x54] sm:$0xff]  }
 0x194   : > { %v3473_v57 = vsel %vm1859_vm12, %v3468_v51, %v3472_v11  ;;  %v3069_v16 = vsel %vm2260_vm11, %v3067_v47, %v3068_v60  ;;  %v2690_v55 = vrot.slane %v2688_v4, 1  ;;  %v7452_v19 = vld [vmem:[#allocation2 + $0x38] ss:$0 sps:$4 sm:$0x11]   ;;  %v7453_v25 = vld [vmem:[#allocation2 + $0x3c] sm:$0xfe]  }
 0x195   : > { %v2684_v51 = vsel %vm1859_vm12, %v2679_v61, %v2683_v23  ;;  %v2705_v8 = vshll.u32 %v7452_v19, 16  ;;  %v7454_v34 = vld [vmem:[#allocation2 + $0x44] ss:$0 sps:$4 sm:$0x11]   ;;  %v3073_v39 = vrot.slane %v7453_v25, 1  ;;  %v3523_v47 = vshrl.u32 %v7456_v35, 16 }
 0x196   : > { %v7457_v24 = vld [vmem:[#allocation2 + $0x5c] ss:$0 sps:$4 sm:$0x11]   ;;  %v3074_v23 = vrot.slane %v7454_v34, 1  ;;  %v7471_v34 = vld [vmem:[#allocation2 + $0x6c] sm:$0xff]   ;;  %v7486_v31 = vld [vmem:[#allocation2 + $0x84] sm:$0xff]  }
 0x197   : > { %v3530_v61 = vshll.u32 %v7457_v24, 16  ;;  %v7473_v24 = vld [vmem:[%s8932_s3 + $0x218] sm:$0xff]   ;;  %v7476_v33 = vld [vmem:[#allocation2 + $0x60] sm:$0xfe]  }
 0x198   : > { %4806 = vmatmul.mubr.bf16.gmra.mrb[64].mxu1 %v7397_v21  ;;  %v7434_v21 = vld [vmem:[#allocation2 + $0x30] sm:$0xff]  }
 0x199   : > { %4967 = vmatmul.mubr.bf16.gmra.mrb[80].mxu0 %v2302_v27  ;;  %4813 = vmatprep.mubr.bf16.mxu1 %v2039_v28  ;;  %v2667_v27 = vor.u32 %v2666_v13, %v2662_v45  ;;  %v7425_v28 = vld [vmem:[#allocation2 + $0x18] sm:$0xff]   ;;  %v3489_v32 = vshll.u32 %v7434_v21, 16  ;;  %v3487_v56 = vshrl.u32 %v7434_v21, 16  ;;  %v7449_v45 = vld [vmem:[#allocation2 + $0x48] sm:$0xff]   ;;  %v7451_v13 = vld [vmem:[#allocation2 + $0x30] sm:$0xff]   ;;  %v3532_v4 = vrot.slane %v3530_v61, 1 }
 0x19a   : > { %4974 = vmatprep.mubr.bf16.mxu0 %v7396_v17  ;;  %v3063_v17 = vsel %vm2260_vm11, %v3061_v1, %v3062_v3  ;;  %v2686_v3 = vshrl.u32 %v7444_v62, 16  ;;  %v3513_v15 = vshll.u32 %v7449_v45, 16  ;;  %v7440_v21 = vld [vmem:[#allocation2 + $0x30] sm:$0xff]   ;;  %v2700_v26 = vshll.u32 %v7451_v13, 16 }
 0x19b   : > { %v2672_v37 = vsel %vm1859_vm12, %v2667_v27, %v2671_v22  ;;  %v3511_v22 = vshrl.u32 %v7449_v45, 16  ;;  %v3518_v27 = vshll.u32 %v7450_v2, 16 }
 0x19c   : > { %v3515_v20 = vrot.slane %v3513_v15, 1  ;;  %v7465_v15 = vld [vmem:[#allocation2 + $0x68] ss:$0 sps:$4 sm:$0x11]  }
 0x19d   : > { %v3520_v36 = vrot.slane %v3518_v27, 1 }
 0x1a0   : > { %4814 = vmatmul.mubr.bf16.gmra.mrb[68].mxu1 %v7408_v42  ;;  %v7441_v42 = vld [vmem:[#allocation2 + $0x3c] sm:$0xff]  }
 0x1a1   : > { %4975 = vmatmul.mubr.bf16.gmra.mrb[84].mxu0 %v2305_v49  ;;  %4821 = vmatprep.mubr.bf16.mxu1 %v2051_v58  ;;  %v7442_v49 = vld [vmem:[#allocation2 + $0x44] ss:$0 sps:$4 sm:$0x11]   ;;  %v3501_v52 = vshll.u32 %v7441_v42, 16  ;;  %v3499_v1 = vshrl.u32 %v7441_v42, 16  ;;  %v7459_v42 = vld [vmem:[#allocation2 + $0x3c] sm:$0xff]  }
 0x1a2   : > { %4982 = vmatprep.mubr.bf16.mxu0 %v7405_v41  ;;  %v3491_v41 = vrot.slane %v3489_v32, 1  ;;  %v3506_v11 = vshll.u32 %v7442_v49, 16  ;;  %v2702_v32 = vrot.slane %v2700_v26, 1 }
 0x1a3   : > { %v3503_v29 = vrot.slane %v3501_v52, 1  ;;  %v7460_v52 = vld [vmem:[#allocation2 + $0x44] ss:$0 sps:$4 sm:$0x11]  }
 0x1a4   : > { %v3492_v58 = vor.u32 %v3491_v41, %v3487_v56  ;;  %v3508_v12 = vrot.slane %v3506_v11, 1  ;;  %v7458_v41 = vld [vmem:[%s8932_s3 + $0x210] sm:$0xff]   ;;  %v2717_v11 = vshll.u32 %v7460_v52, 16 }
 0x1a5   : > { %v3504_v18 = vor.u32 %v3503_v29, %v3499_v1  ;;  %v3075_v29 = vsel %vm2260_vm11, %v3073_v39, %v3074_v23 }
 0x1a6   : > { %v3497_v9 = vsel %vm1859_vm12, %v3492_v58, %v3496_v44  ;;  %v3516_v44 = vor.u32 %v3515_v20, %v3511_v22  ;;  %v7464_v58 = vld [vmem:[#allocation2 + $0x60] sm:$0xff]   ;;  %v2719_v7 = vrot.slane %v2717_v11, 1  ;;  %v7466_v22 = vld [vmem:[#allocation2 + $0x48] sm:$0xff]  }
 0x1a7   : > { %v3509_v56 = vsel %vm1859_vm12, %v3504_v18, %v3508_v12  ;;  %v2724_v25 = vshll.u32 %v7466_v22, 16 }
 0x1a8   : > { %4822 = vmatmul.mubr.bf16.gmra.mrb[72].mxu1 %v7420_v48  ;;  %v7447_v48 = vld [vmem:[#allocation2 + $0x38] ss:$0 sps:$4 sm:$0x11]   ;;  %v3521_v1 = vsel %vm1859_vm12, %v3516_v44, %v3520_v36 }
 0x1a9   : > { %4983 = vmatmul.mubr.bf16.gmra.mrb[88].mxu0 %v2308_v63  ;;  %5023 = vmatprep.mubr.bf16.mxu1 %v3063_v17  ;;  %v3071_v17 = vrot.slane %v7447_v48, 1 }
 0x1aa   : > { %5184 = vmatprep.mubr.bf16.mxu0 %v3473_v57  ;;  %v2691_v57 = vor.u32 %v2690_v55, %v2686_v3  ;;  %v7462_v3 = vld [vmem:[#allocation2 + $0x50] ss:$0 sps:$4 sm:$0x11]  }
 0x1ab   : > { %v3072_v46 = vsel %vm2260_vm11, %v3070_v14, %v3071_v17 }
 0x1b0   : > { %5024 = vmatmul.mubr.bf16.vlgmr.msra.gmra.mrb[76].mxu1 %v2672_v37  ;;  %v2707_v37 = vrot.slane %v2705_v8, 1 }
 0x1b1   : > { %5185 = vmatmul.mubr.bf16.vlgmr.msra.gmra.mrb[92].mxu0 %v7425_v28  ;;  %7097 = vmatpush3.bf16.msra.mxu1 %v7428_v0  ;;  %v7445_v0 = vld [vmem:[#allocation2 + $0x2c] ss:$0 sps:$4 sm:$0x11]   ;;  %v2698_v28 = vshrl.u32 %v7451_v13, 16 }
 0x1b2   : > { %5192 = vmatprep.mubr.bf16.mxu0 %v3485_v40  ;;  %5031 = vmatprep.mubr.bf16.mxu1 %v3066_v10  ;;  %v2693_v6 = vshll.u32 %v7445_v0, 16  ;;  %v3525_v40 = vshll.u32 %v7456_v35, 16  ;;  %v7448_v10 = vld [vmem:[#allocation2 + $0x3c] sm:$0xff]   ;;  %v7461_v0 = vld [vmem:[#allocation2 + $0x48] sm:$0xfe]  }
 0x1b3   : > { %7098 = vmatprep.subr.bf16.mxu1 %v7443_v53  ;;  %v2703_v38 = vor.u32 %v2702_v32, %v2698_v28  ;;  %v3076_v12 = vrot.slane %v7461_v0, 1  ;;  %v7455_v13 = vld [vmem:[#allocation2 + $0x48] sm:$0xff]   ;;  %v7468_v32 = vld [vmem:[#allocation2 + $0x54] sm:$0xfe]  }
 0x1b4   : > { %v2695_v63 = vrot.slane %v2693_v6, 1  ;;  %v3527_v49 = vrot.slane %v3525_v40, 1  ;;  %v3535_v6 = vshrl.u32 %v7464_v58, 16  ;;  %v1427_v40 = vld [vmem:[#allocation2 + $0xd4] sm:$0x1] }
 0x1b5   : > { %7099 = vmatpush3.bf16.msra.mxu1 %v7443_v53  ;;  %v2712_v53 = vshll.u32 %v7459_v42, 16  ;;  %v2708_v60 = vsel %vm1859_vm12, %v2703_v38, %v2707_v37  ;;  %v1423_v38 = vld [vmem:[#allocation2 + $0xcc] sm:$0xf] }
 0x1b6   : > { %v2696_v30 = vsel %vm1859_vm12, %v2691_v57, %v2695_v63  ;;  %7100 = vmatprep.subr.bf16.mxu1 %v7458_v41  ;;  %v3528_v55 = vor.u32 %v3527_v49, %v3523_v47  ;;  %v3077_v63 = vrot.slane %v7462_v3, 1  ;;  %v3547_v49 = vshrl.u32 %v7471_v34, 16 }
 0x1b7   : > { %v2714_v62 = vrot.slane %v2712_v53, 1  ;;  %v3549_v53 = vshll.u32 %v7471_v34, 16 }
 0x1b8   : > { %5032 = vmatmul.mubr.bf16.gmra.mrb[80].mxu1 %v2684_v51  ;;  %v6082_v51 = vld [vmem:[%s8931_s2] ss:$0 sm:$0xff]  ;;  %v3533_v26 = vsel %vm1859_vm12, %v3528_v55, %v3532_v4  ;;  %v3078_v27 = vsel %vm2260_vm11, %v3076_v12, %v3077_v63 }
 0x1b9   : > { %5193 = vmatmul.mubr.bf16.gmra.mrb[96].mxu0 %v7433_v54  ;;  %5039 = vmatprep.mubr.bf16.mxu1 %v3069_v16  ;;  %v2710_v54 = vshrl.u32 %v7459_v42, 16  ;;  %v1385_v48 = vadd.f32 %v6082_v51, %v8352_v59  ;;  %v1388_v16 = vadd.f32 %v6082_v51, %v8379_v5  ;;  %v7467_v5 = vld [vmem:[#allocation2 + $0x50] ss:$0 sps:$4 sm:$0x11]   ;;  %v3551_v4 = vrot.slane %v3549_v53, 1 }
 0x1ba   : > { %5200 = vmatprep.mubr.bf16.mxu0 %v3497_v9  ;;  %7101 = vmatpush3.bf16.msra.mxu1 %v7458_v41  ;;  %v3537_v9 = vshll.u32 %v7464_v58, 16  ;;  %v2726_v41 = vrot.slane %v2724_v25, 1  ;;  %v7463_v58 = vld [vmem:[#allocation2 + $0x54] sm:$0xff]  }
 0x1bb   : > { %v2715_v45 = vor.u32 %v2714_v62, %v2710_v54  ;;  %v1391_v14 = vmax.f32 %v1385_v48, 0.0  ;;  %v1392_v17 = vmax.f32 %v1388_v16, 0.0  ;;  %7102 = vmatprep.subr.bf16.mxu1 %v7473_v24  ;;  %v7474_v54 = vld [vmem:[#allocation2 + $0x54] sm:$0xff]   ;;  %v7475_v16 = vld [vmem:[#allocation2 + $0x5c] ss:$0 sps:$4 sm:$0x11]   ;;  %v3552_v50 = vor.u32 %v3551_v4, %v3547_v49 }
 0x1bc   : > { %v3539_v57 = vrot.slane %v3537_v9, 1  ;;  %v2734_v51 = vshrl.u32 %v7474_v54, 16  ;;  %v2736_v55 = vshll.u32 %v7474_v54, 16  ;;  %v2741_v63 = vshll.u32 %v7475_v16, 16  ;;  %v7485_v4 = vld [vmem:[#allocation2 + $0x78] sm:$0xff]  }
 0x1bd   : > { %v1394_v2 = vmul.f32 0.0, %v1391_v14  ;;  %v1395_v18 = vmul.f32 0.0, %v1392_v17  ;;  %v2720_v59 = vsel %vm1859_vm12, %v2715_v45, %v2719_v7  ;;  %v7479_v45 = vld [vmem:[#allocation2 + $0x78] sm:$0xff]   ;;  %v7477_v14 = vld [vmem:[#allocation2 + $0x68] ss:$0 sps:$4 sm:$0x11]  }
 0x1be   : > { %v3540_v8 = vor.u32 %v3539_v57, %v3535_v6  ;;  %7103 = vmatpush3.bf16.msra.mxu1 %v7473_v24  ;;  %v3082_v57 = vrot.slane %v7476_v33, 1  ;;  %v7470_v17 = vld [vmem:[#allocation2 + $0x60] sm:$0xff]   ;;  %v7478_v24 = vld [vmem:[#allocation2 + $0x6c] sm:$0xff]  }
 0x1bf   : > { %v6458_v19 = vpack.c.bf16 %v1394_v2, %v1394_v2  ;;  %v6459_v28 = vpack.c.bf16 %v1395_v18, %v1395_v18  ;;  %v7480_v18 = vld [vmem:[#allocation2 + $0x80] ss:$0 sps:$4 sm:$0x11]  }
 0x1c0   : > { %5040 = vmatmul.mubr.bf16.gmra.mrb[84].mxu1 %v2696_v30  ;;  %v2722_v30 = vshrl.u32 %v7466_v22, 16  ;;  %v3561_v22 = vshll.u32 %v7479_v45, 16 }
 0x1c1   : > { %5201 = vmatmul.mubr.bf16.gmra.mrb[100].mxu0 %v7440_v21  ;;  %5047 = vmatprep.mubr.bf16.mxu1 %v3072_v46  ;;  %v3542_v21 = vshll.u32 %v7465_v15, 16  ;;  %v7469_v46 = vld [vmem:[#allocation2 + $0x5c] ss:$0 sps:$4 sm:$0x11]   ;;  %v1403_v35 = vshrl.u32 %v6458_v19, 16  ;;  %v1406_v36 = vshll.u32 %v6458_v19, 16 }
 0x1c2   : > { %5208 = vmatprep.mubr.bf16.mxu0 %v3509_v56  ;;  %v2729_v56 = vshll.u32 %v7467_v5, 16  ;;  %v1411_v37 = vshrl.u32 %v6459_v28, 16  ;;  %v1414_v39 = vshll.u32 %v6459_v28, 16  ;;  %v3080_v47 = vrot.slane %v7469_v46, 1 }
 0x1c3   : > { %v3544_v20 = vrot.slane %v3542_v21, 1  ;;  %v1405_v44 = vrot.slane %v1403_v35, 7  ;;  %v2727_v52 = vor.u32 %v2726_v41, %v2722_v30  ;;  %v2743_v15 = vrot.slane %v2741_v63, 1  ;;  %v7495_v63 = vld [vmem:[#allocation2 + $0x98] ss:$0 sps:$4 sm:$0x11]  }
 0x1c4   : > { %v2731_v42 = vrot.slane %v2729_v56, 1  ;;  %v1413_v23 = vrot.slane %v1411_v37, 7  ;;  %v3083_v21 = vrot.slane %v7477_v14, 1  ;;  %v3563_v30 = vrot.slane %v3561_v22, 1  ;;  %v7483_v37 = vld [vmem:[#allocation2 + $0x6c] sm:$0xfe]  }
 0x1c5   : > { %v3545_v61 = vsel %vm1859_vm12, %v3540_v8, %v3544_v20  ;;  %v1409_v62 = vrot.slane %v1405_v44, 4  ;;  %v7482_v56 = vld [vmem:[#allocation2 + $0x68] ss:$0 sps:$4 sm:$0x11]   ;;  %v3085_v43 = vrot.slane %v7483_v37, 1 }
 0x1c6   : > { %v1416_v11 = vor.u32 %v1414_v39, %v1413_v23  ;;  %v1418_v0 = vrot.slane %v1413_v23, 4  ;;  %v3084_v28 = vsel %vm2260_vm11, %v3082_v57, %v3083_v21  ;;  %v7488_v23 = vld [vmem:[%s8932_s3 + $0x220] sm:$0xff]   ;;  %v7496_v57 = vld [vmem:[#allocation2 + $0x78] sm:$0xff]  }
 0x1c7   : > { %7104 = vmatprep.subr.bf16.mxu1 %v7488_v23  ;;  %v2772_v22 = vshll.u32 %v7496_v57, 16 }
 0x1c8   : > { %5048 = vmatmul.mubr.bf16.gmra.mrb[88].mxu1 %v2708_v60  ;;  %v1408_v60 = vor.u32 %v1406_v36, %v1405_v44  ;;  %v1417_v7 = vsel %vm7942_vm9, %v1409_v62, %v1416_v11  ;;  %v1428_v48 = vsel %vm7934_vm8, %v1418_v0, %v1427_v40  ;;  %v2753_v36 = vshll.u32 %v7482_v56, 16  ;;  %v7484_v40 = vld [vmem:[#allocation2 + $0x74] ss:$0 sps:$4 sm:$0x11]  }
 0x1c9   : > { %5209 = vmatmul.mubr.bf16.gmra.mrb[104].mxu0 %v7448_v10  ;;  %5055 = vmatprep.mubr.bf16.mxu1 %v3075_v29  ;;  %v3079_v10 = vrot.slane %v7468_v32, 1  ;;  %v2732_v29 = vsel %vm1859_vm12, %v2727_v52, %v2731_v42  ;;  %1426 = vst [vmem:[#allocation2 + $0xd0] sm:$0xf] %v1417_v7  ;;  %1429 = vst [vmem:[#allocation2 + $0xd4] sm:$0x1] %v1428_v48  ;;  %v3566_v32 = vshll.u32 %v7480_v18, 16 }
 0x1ca   : > { %5216 = vmatprep.mubr.bf16.mxu0 %v3521_v1  ;;  %v7472_v1 = vld [vmem:[#allocation2 + $0x74] ss:$0 sps:$4 sm:$0x11]   ;;  %v1424_v6 = vsel %vm7928_vm7, %v1408_v60, %v1423_v38  ;;  %v2755_v41 = vrot.slane %v2753_v36, 1  ;;  %v3573_v52 = vshll.u32 %v7486_v31, 16  ;;  %7105 = vmatpush3.bf16.msra.mxu1 %v7488_v23  ;;  %v2770_v18 = vshrl.u32 %v7496_v57, 16 }
 0x1cb   : > { %v3081_v3 = vsel %vm2260_vm11, %v3079_v10, %v3080_v47  ;;  %v3554_v9 = vshll.u32 %v7472_v1, 16  ;;  %1425 = vst [vmem:[#allocation2 + $0xcc] sm:$0xf] %v1424_v6  ;;  %v3568_v35 = vrot.slane %v3566_v32, 1  ;;  %v3086_v10 = vrot.slane %v7484_v40, 1  ;;  %v7494_v11 = vld [vmem:[#allocation2 + $0x90] sm:$0xff]  }
 0x1cc   : > { %v7487_v44 = vld [vmem:[#allocation2 + $0x8c] ss:$0 sps:$4 sm:$0x11]   ;;  %v7490_v60 = vld [vmem:[#allocation2 + $0x74] ss:$0 sps:$4 sm:$0x11]  }
 0x1cd   : > { %v3556_v12 = vrot.slane %v3554_v9, 1  ;;  %v3087_v53 = vsel %vm2260_vm11, %v3085_v43, %v3086_v10  ;;  %v3578_v54 = vshll.u32 %v7487_v44, 16  ;;  %v3575_v62 = vrot.slane %v3573_v52, 1  ;;  %v7491_v6 = vld [vmem:[#allocation2 + $0x78] sm:$0xfe]   ;;  %v7500_v10 = vld [vmem:[#allocation2 + $0x90] sm:$0xff]  }
 0x1ce   : > { %v7492_v7 = vld [vmem:[#allocation2 + $0x80] ss:$0 sps:$4 sm:$0x11]   ;;  %v3583_v48 = vshrl.u32 %v7494_v11, 16  ;;  %v3585_v33 = vshll.u32 %v7494_v11, 16 }
 0x1cf   : > { %v3557_v20 = vsel %vm1859_vm12, %v3552_v50, %v3556_v12  ;;  %v3580_v0 = vrot.slane %v3578_v54, 1  ;;  %v7502_v56 = vld [vmem:[#allocation2 + $0xa4] ss:$0 sps:$4 sm:$0x11]   ;;  %v7509_v54 = vld [vmem:[#allocation2 + $0xa8] sm:$0xff]  }
 0x1d0   : > { %5056 = vmatmul.mubr.bf16.gmra.mrb[92].mxu1 %v2720_v59  ;;  %v3559_v59 = vshrl.u32 %v7479_v45, 16  ;;  %v1536_v19 = vld [vmem:[#allocation2 + $0xd4] sm:$0x1]  ;;  %v3089_v45 = vrot.slane %v7492_v7, 1  ;;  %v3587_v50 = vrot.slane %v3585_v33, 1  ;;  %v3607_v7 = vshrl.u32 %v7509_v54, 16 }
 0x1d1   : > { %5217 = vmatmul.mubr.bf16.gmra.mrb[108].mxu0 %v7455_v13  ;;  %5063 = vmatprep.mubr.bf16.mxu1 %v3078_v27  ;;  %v2738_v13 = vrot.slane %v2736_v55, 1  ;;  %v7481_v27 = vld [vmem:[#allocation2 + $0x60] sm:$0xff]   ;;  %v1537_v25 = vsel %vm7989_vm10, 0, %v1536_v19  ;;  %v3088_v55 = vrot.slane %v7491_v6, 1 }
 0x1d2   : > { %5224 = vmatprep.mubr.bf16.mxu0 %v3533_v26  ;;  %v1481_v5 = vld [vmem:[#allocation2 + $0xcc] sm:$0x1]  ;;  %1538 = vst [vmem:[#allocation2 + $0xd4] sm:$0x1] %v1537_v25  ;;  %v2746_v46 = vshrl.u32 %v7481_v27, 16  ;;  %v2748_v34 = vshll.u32 %v7481_v27, 16  ;;  %v3564_v38 = vor.u32 %v3563_v30, %v3559_v59  ;;  %v3588_v27 = vor.u32 %v3587_v50, %v3583_v48 }
 0x1d3   : > { %v2739_v2 = vor.u32 %v2738_v13, %v2734_v51  ;;  %v1482_v8 = vsel %vm7934_vm8, 0, %v1481_v5  ;;  %v7493_v59 = vld [vmem:[#allocation2 + $0x84] sm:$0xff]   ;;  %v7499_v19 = vld [vmem:[#allocation2 + $0x8c] ss:$0 sps:$4 sm:$0x11]   ;;  %v7501_v25 = vld [vmem:[#allocation2 + $0x9c] sm:$0xff]  }
 0x1d4   : > { %1483 = vst [vmem:[#allocation2 + $0xcc] sm:$0x1] %v1482_v8  ;;  %v2750_v39 = vrot.slane %v2748_v34, 1  ;;  %v3569_v47 = vsel %vm1859_vm12, %v3564_v38, %v3568_v35  ;;  %v3092_v32 = vrot.slane %v7499_v19, 1  ;;  %v3595_v36 = vshrl.u32 %v7501_v25, 16  ;;  %v7504_v38 = vld [vmem:[#allocation2 + $0x84] sm:$0xff]  }
 0x1d5   : > { %v2744_v26 = vsel %vm1859_vm12, %v2739_v2, %v2743_v15  ;;  %v3590_v15 = vshll.u32 %v7495_v63, 16  ;;  %v3090_v2 = vsel %vm2260_vm11, %v3088_v55, %v3089_v45  ;;  %v3597_v37 = vshll.u32 %v7501_v25, 16  ;;  %v7505_v40 = vld [vmem:[#allocation2 + $0x8c] ss:$0 sps:$4 sm:$0x11]  }
 0x1d6   : > { %v2751_v42 = vor.u32 %v2750_v39, %v2746_v46  ;;  %v7503_v46 = vld [vmem:[%s8932_s3 + $0x228] sm:$0xff]   ;;  %v2782_v43 = vshrl.u32 %v7504_v38, 16  ;;  %v2789_v23 = vshll.u32 %v7505_v40, 16  ;;  %v8473_v6 = vld [vmem:[%s8933_s4] ss:$0 sm:$0xff]  ;;  %v3609_v48 = vshll.u32 %v7509_v54, 16 }
 0x1d7   : > { %v3592_v21 = vrot.slane %v3590_v15, 1  ;;  %7106 = vmatprep.subr.bf16.mxu1 %v7503_v46  ;;  %v7510_v55 = vld [vmem:[#allocation2 + $0xb0] ss:$0 sps:$4 sm:$0x11]  }
 0x1d8   : > { %5064 = vmatmul.mubr.bf16.gmra.mrb[96].mxu1 %v2732_v29  ;;  %v2756_v49 = vsel %vm1859_vm12, %v2751_v42, %v2755_v41  ;;  %v3599_v41 = vrot.slane %v3597_v37, 1  ;;  %v2784_v42 = vshll.u32 %v7504_v38, 16  ;;  %v3611_v63 = vrot.slane %v3609_v48, 1  ;;  %v7512_v50 = vld [vmem:[#allocation2 + $0x98] ss:$0 sps:$4 sm:$0x11]  }
 0x1d9   : > { %5225 = vmatmul.mubr.bf16.gmra.mrb[112].mxu0 %v7463_v58  ;;  %5071 = vmatprep.mubr.bf16.mxu1 %v3081_v3  ;;  %v7489_v58 = vld [vmem:[#allocation2 + $0x6c] sm:$0xff]   ;;  %v2765_v3 = vshll.u32 %v7490_v60, 16  ;;  %v3593_v34 = vsel %vm1859_vm12, %v3588_v27, %v3592_v21  ;;  %v2801_v27 = vshll.u32 %v7512_v50, 16 }
 0x1da   : > { %5232 = vmatprep.mubr.bf16.mxu0 %v3545_v61  ;;  %v3571_v61 = vshrl.u32 %v7486_v31, 16  ;;  %v2758_v1 = vshrl.u32 %v7489_v58, 16  ;;  %v2760_v29 = vshll.u32 %v7489_v58, 16  ;;  %7107 = vmatpush3.bf16.msra.mxu1 %v7503_v46  ;;  %v2791_v58 = vrot.slane %v2789_v23, 1 }
 0x1db   : > { %v2767_v16 = vrot.slane %v2765_v3, 1 }
 0x1dc   : > { %v3576_v51 = vor.u32 %v3575_v62, %v3571_v61  ;;  %v2762_v9 = vrot.slane %v2760_v29, 1  ;;  %v2786_v61 = vrot.slane %v2784_v42, 1  ;;  %v7517_v42 = vld [vmem:[#allocation2 + $0xbc] ss:$0 sps:$4 sm:$0x11]  }
 0x1dd   : > { %v3626_v54 = vshll.u32 %v7517_v42, 16 }
 0x1de   : > { %v2763_v12 = vor.u32 %v2762_v9, %v2758_v1  ;;  %v3581_v13 = vsel %vm1859_vm12, %v3576_v51, %v3580_v0  ;;  %v7511_v0 = vld [vmem:[#allocation2 + $0x90] sm:$0xff]   ;;  %v2787_v1 = vor.u32 %v2786_v61, %v2782_v43  ;;  %v7515_v61 = vld [vmem:[#allocation2 + $0xa8] sm:$0xff]  }
 0x1df   : > { %v2794_v15 = vshrl.u32 %v7511_v0, 16 }
 0x1e0   : > { %5072 = vmatmul.mubr.bf16.gmra.mrb[100].mxu1 %v2744_v26  ;;  %v2768_v14 = vsel %vm1859_vm12, %v2763_v12, %v2767_v16  ;;  %v7498_v26 = vld [vmem:[#allocation2 + $0x84] sm:$0xfe]   ;;  %v2792_v9 = vsel %vm1859_vm12, %v2787_v1, %v2791_v58  ;;  %v7519_v58 = vld [vmem:[#allocation2 + $0x9c] sm:$0xff]  }
 0x1e1   : > { %5233 = vmatmul.mubr.bf16.gmra.mrb[116].mxu0 %v7470_v17  ;;  %5079 = vmatprep.mubr.bf16.mxu1 %v3084_v28  ;;  %v7497_v17 = vld [vmem:[#allocation2 + $0x80] ss:$0 sps:$4 sm:$0x11]   ;;  %v3091_v28 = vrot.slane %v7498_v26, 1 }
 0x1e2   : > { %5240 = vmatprep.mubr.bf16.mxu0 %v3557_v20  ;;  %v2777_v5 = vshll.u32 %v7497_v17, 16  ;;  %v2774_v20 = vrot.slane %v2772_v22, 1  ;;  %v3612_v17 = vor.u32 %v3611_v63, %v3607_v7 }
 0x1e3   : > { %v3093_v39 = vsel %vm2260_vm11, %v3091_v28, %v3092_v32 }
 0x1e4   : > { %v2779_v30 = vrot.slane %v2777_v5, 1  ;;  %v2775_v8 = vor.u32 %v2774_v20, %v2770_v18  ;;  %v7508_v18 = vld [vmem:[#allocation2 + $0x9c] sm:$0xff]  }
 0x1e5   : > { %v7513_v20 = vld [vmem:[#allocation2 + $0x9c] sm:$0xfe]  }
 0x1e6   : > { %v2780_v35 = vsel %vm1859_vm12, %v2775_v8, %v2779_v30  ;;  %v2803_v30 = vrot.slane %v2801_v27, 1  ;;  %v7514_v8 = vld [vmem:[#allocation2 + $0xa4] ss:$0 sps:$4 sm:$0x11]  }
 0x1e8   : > { %5080 = vmatmul.mubr.bf16.gmra.mrb[104].mxu1 %v2756_v49  ;;  %v3600_v49 = vor.u32 %v3599_v41, %v3595_v36 }
 0x1e9   : > { %5241 = vmatmul.mubr.bf16.gmra.mrb[120].mxu0 %v7478_v24  ;;  %5087 = vmatprep.mubr.bf16.mxu1 %v3087_v53  ;;  %v3602_v24 = vshll.u32 %v7502_v56, 16  ;;  %v7507_v53 = vld [vmem:[#allocation2 + $0x98] ss:$0 sps:$4 sm:$0x11]  }
 0x1ea   : > { %5248 = vmatprep.mubr.bf16.mxu0 %v3569_v47  ;;  %v7506_v47 = vld [vmem:[#allocation2 + $0x90] sm:$0xfe]   ;;  %v3095_v29 = vrot.slane %v7507_v53, 1 }
 0x1eb   : > { %v3604_v31 = vrot.slane %v3602_v24, 1  ;;  %v3094_v62 = vrot.slane %v7506_v47, 1  ;;  %v7516_v56 = vld [vmem:[#allocation2 + $0xb4] sm:$0xff]   ;;  %v3098_v24 = vrot.slane %v7514_v8, 1 }
 0x1ed   : > { %v3096_v45 = vsel %vm2260_vm11, %v3094_v62, %v3095_v29  ;;  %v3628_v29 = vrot.slane %v3626_v54, 1 }
 0x1f0   : > { %5088 = vmatmul.mubr.bf16.gmra.mrb[108].mxu1 %v2768_v14  ;;  %v3614_v14 = vshll.u32 %v7510_v55, 16 }
 0x1f1   : > { %5249 = vmatmul.mubr.bf16.gmra.mrb[124].mxu0 %v7485_v4  ;;  %5095 = vmatprep.mubr.bf16.mxu1 %v3090_v2  ;;  %v3605_v4 = vsel %vm1859_vm12, %v3600_v49, %v3604_v31  ;;  %v2796_v2 = vshll.u32 %v7511_v0, 16  ;;  %v3621_v31 = vshll.u32 %v7516_v56, 16  ;;  %v7518_v49 = vld [vmem:[%s8932_s3 + $0x230] sm:$0xff]   ;;  %v7520_v0 = vld [vmem:[#allocation2 + $0xa4] ss:$0 sps:$4 sm:$0x11]  }
 0x1f2   : > { %5256 = vmatprep.mubr.bf16.mxu0 %v3581_v13  ;;  %v3616_v26 = vrot.slane %v3614_v14, 1  ;;  %7108 = vmatprep.subr.bf16.mxu1 %v7518_v49  ;;  %v2813_v48 = vshll.u32 %v7520_v0, 16 }
 0x1f3   : > { %v2798_v5 = vrot.slane %v2796_v2, 1  ;;  %v3623_v53 = vrot.slane %v3621_v31, 1  ;;  %7109 = vmatpush3.bf16.msra.mxu1 %v7518_v49  ;;  %v7531_v31 = vld [vmem:[#allocation2 + $0xcc] sm:$0xff]  }
 0x1f4   : > { %v3617_v46 = vsel %vm1859_vm12, %v3612_v17, %v3616_v26  ;;  %v2815_v14 = vrot.slane %v2813_v48, 1  ;;  %v7524_v17 = vld [vmem:[#allocation2 + $0xc0] sm:$0xff]  }
 0x1f8   : > { %5096 = vmatmul.mubr.bf16.gmra.mrb[112].mxu1 %v2780_v35  ;;  %v3097_v35 = vrot.slane %v7513_v20, 1  ;;  %v7525_v20 = vld [vmem:[#allocation2 + $0xc8] ss:$0 sps:$4 sm:$0x11]  }
 0x1f9   : > { %5257 = vmatmul.mubr.bf16.gmra.mrb[128].mxu0 %v7493_v59  ;;  %5103 = vmatprep.mubr.bf16.mxu1 %v3093_v39 }
 0x1fa   : > { %5264 = vmatprep.mubr.bf16.mxu0 %v3593_v34  ;;  %v2799_v34 = vor.u32 %v2798_v5, %v2794_v15  ;;  %v7523_v5 = vld [vmem:[#allocation2 + $0xb4] sm:$0xff]  }
 0x1fb   : > { %v6689_v44 = vpop.f32.mrb[28].mxu0 }
 0x1fc   : > { %v6690_v52 = vpop.f32.mrb[29].mxu0  ;;  %v2804_v41 = vsel %vm1859_vm12, %v2799_v34, %v2803_v30  ;;  %v7526_v30 = vld [vmem:[#allocation2 + $0xa8] sm:$0xff]   ;;  %v3638_v34 = vshll.u32 %v7525_v20, 16 }
 0x1fd   : > { %v6691_v60 = vadd.f32 %v6690_v52, %v6689_v44  ;;  %v6692_v11 = vpop.f32.mrb[30].mxu0  ;;  %v3099_v44 = vsel %vm2260_vm11, %v3097_v35, %v3098_v24  ;;  %v7527_v35 = vld [vmem:[#allocation2 + $0xb0] ss:$0 sps:$4 sm:$0x11]   ;;  %v2818_v24 = vshrl.u32 %v7526_v30, 16 }
 0x1fe   : > { %v6693_v3 = vpop.f32.mrb[31].mxu0 }
 0x1ff   : > { %v6694_v51 = vadd.f32 %v6693_v3, %v6692_v11  ;;  %v2806_v3 = vshrl.u32 %v7519_v58, 16 }
 0x200   : > { %5104 = vmatmul.mubr.bf16.gmra.mrb[116].mxu1 %v2792_v9 }
 0x201   : > { %5265 = vmatmul.mubr.bf16.gmra.mrb[132].mxu0 %v7500_v10  ;;  %v6577_v16 = vpop.f32.mrb[12].mxu1  ;;  %5111 = vmatprep.mubr.bf16.mxu1 %v3096_v45  ;;  %v3619_v10 = vshrl.u32 %v7516_v56, 16  ;;  %v3631_v56 = vshrl.u32 %v7524_v17, 16 }
 0x202   : > { %5272 = vmatprep.mubr.bf16.mxu0 %v3605_v4  ;;  %v6578_v12 = vpop.f32.mrb[13].mxu1  ;;  %v2808_v4 = vshll.u32 %v7519_v58, 16 }
 0x203   : > { %v6579_v33 = vadd.f32 %v6578_v12, %v6577_v16  ;;  %v6580_v13 = vpop.f32.mrb[14].mxu1  ;;  %v3624_v1 = vor.u32 %v3623_v53, %v3619_v10  ;;  %v7521_v16 = vld [vmem:[#allocation2 + $0xa8] sm:$0xfe]   ;;  %v2825_v10 = vshll.u32 %v7527_v35, 16 }
 0x204   : > { %v6581_v57 = vpop.f32.mrb[15].mxu1  ;;  %v2810_v63 = vrot.slane %v2808_v4, 1  ;;  %v3100_v50 = vrot.slane %v7521_v16, 1 }
 0x205   : > { %v4704_v21 = vadd.f32 %v6579_v33, %v8473_v6  ;;  %v6582_v22 = vadd.f32 %v6581_v57, %v6580_v13  ;;  %v3629_v12 = vsel %vm1859_vm12, %v3624_v1, %v3628_v29  ;;  %v7522_v33 = vld [vmem:[#allocation2 + $0xb0] ss:$0 sps:$4 sm:$0x11]   ;;  %v2827_v54 = vrot.slane %v2825_v10, 1 }
 0x206   : > { %v6695_v59 = vpop.f32.mrb[32].mxu0 }
 0x207   : > { %v6696_v19 = vpop.f32.mrb[33].mxu0  ;;  %v4707_v28 = vadd.f32 %v6582_v22, %v8473_v6  ;;  %v8480_v37 = vadd.f32 %v6691_v60, %v4704_v21  ;;  %v2811_v21 = vor.u32 %v2810_v63, %v2806_v3  ;;  %v3645_v63 = vshll.u32 %v7531_v31, 16 }
 0x208   : > { %v6697_v32 = vadd.f32 %v6696_v19, %v6695_v59  ;;  %v6698_v25 = vpop.f32.mrb[34].mxu0  ;;  %5112 = vmatmul.mubr.bf16.gmra.mrb[120].mxu1 %v2804_v41 }
 0x209   : > { %5273 = vmatmul.mubr.bf16.gmra.mrb[136].mxu0 %v7508_v18  ;;  %v6699_v36 = vpop.f32.mrb[35].mxu0  ;;  %v6583_v38 = vpop.f32.mrb[16].mxu1  ;;  %v8482_v40 = vadd.f32 %v6694_v51, %v4707_v28  ;;  %5119 = vmatprep.mubr.bf16.mxu1 %v3099_v44  ;;  %v3101_v18 = vrot.slane %v7522_v33, 1  ;;  %v2816_v27 = vsel %vm1859_vm12, %v2811_v21, %v2815_v14  ;;  %v3633_v28 = vshll.u32 %v7524_v17, 16  ;;  %v7534_v33 = vld [vmem:[#allocation2 + $0xb4] sm:$0xff]   ;;  %v7530_v14 = vld [vmem:[#allocation2 + $0xc0] sm:$0xff]  }
 0x20a   : > { %5280 = vmatprep.mubr.bf16.mxu0 %v3617_v46  ;;  %v6700_v39 = vadd.f32 %v6699_v36, %v6698_v25  ;;  %v6584_v43 = vpop.f32.mrb[17].mxu1  ;;  %v2830_v17 = vshrl.u32 %v7534_v33, 16 }
 0x20b   : > { %v6585_v23 = vadd.f32 %v6584_v43, %v6583_v38  ;;  %v6586_v47 = vpop.f32.mrb[18].mxu1  ;;  %v3635_v46 = vrot.slane %v3633_v28, 1  ;;  %v2820_v38 = vshll.u32 %v7526_v30, 16  ;;  %v3640_v43 = vrot.slane %v3638_v34, 1 }
 0x20c   : > { %v6587_v52 = vpop.f32.mrb[19].mxu1 }
 0x20d   : > { %v4712_v60 = vadd.f32 %v6585_v23, %v8473_v6  ;;  %v6588_v62 = vadd.f32 %v6587_v52, %v6586_v47  ;;  %v3636_v41 = vor.u32 %v3635_v46, %v3631_v56  ;;  %v2822_v44 = vrot.slane %v2820_v38, 1  ;;  %v7528_v47 = vld [vmem:[#allocation2 + $0xb4] sm:$0xfe]   ;;  %v7536_v56 = vld [vmem:[#allocation2 + $0xc0] sm:$0xfe]  }
 0x20e   : > { %v6701_v11 = vpop.f32.mrb[36].mxu0  ;;  %v3103_v1 = vrot.slane %v7528_v47, 1  ;;  %v7537_v46 = vld [vmem:[#allocation2 + $0xc8] ss:$0 sps:$4 sm:$0x11]   ;;  %v7538_v47 = vld [vmem:[#allocation2 + $0xcc] sm:$0xff]  }
 0x20f   : > { %v6702_v51 = vpop.f32.mrb[37].mxu0  ;;  %v4715_v7 = vadd.f32 %v6588_v62, %v8473_v6  ;;  %v8491_v45 = vadd.f32 %v6697_v32, %v4712_v60  ;;  %v3102_v32 = vsel %vm2260_vm11, %v3100_v50, %v3101_v18  ;;  %v3641_v53 = vsel %vm1859_vm12, %v3636_v41, %v3640_v43  ;;  %v7529_v60 = vld [vmem:[#allocation2 + $0xbc] ss:$0 sps:$4 sm:$0x11]  }
 0x210   : > { %v6703_v9 = vadd.f32 %v6702_v51, %v6701_v11  ;;  %v6704_v55 = vpop.f32.mrb[38].mxu0  ;;  %5120 = vmatmul.mubr.bf16.gmra.mrb[124].mxu1 %v2816_v27  ;;  %v2823_v0 = vor.u32 %v2822_v44, %v2818_v24  ;;  %v3643_v51 = vshrl.u32 %v7531_v31, 16  ;;  %v7532_v50 = vld [vmem:[#allocation2 + $0xd4] ss:$0 sps:$4 sm:$0x11]   ;;  %v3106_v43 = vrot.slane %v7536_v56, 1 }
 0x211   : > { %5281 = vmatmul.mubr.bf16.gmra.mrb[140].mxu0 %v7515_v61  ;;  %v6705_v13 = vpop.f32.mrb[39].mxu0  ;;  %v8494_v2 = vadd.f32 %v6700_v39, %v4715_v7  ;;  %5127 = vmatprep.mubr.bf16.mxu1 %v3102_v32  ;;  %v7533_v61 = vld [vmem:[%s8932_s3 + $0x238] sm:$0xff]   ;;  %v3104_v7 = vrot.slane %v7529_v60, 1  ;;  %v3650_v18 = vshll.u32 %v7532_v50, 16  ;;  %v7539_v44 = vld [vmem:[#allocation2 + $0xc0] sm:$0xff]  }
 0x212   : > { %5288 = vmatprep.mubr.bf16.mxu0 %v3629_v12  ;;  %v6589_v15 = vpop.f32.mrb[20].mxu1  ;;  %v6706_v57 = vadd.f32 %v6705_v13, %v6704_v55  ;;  %7110 = vmatprep.subr.bf16.mxu1 %v7533_v61  ;;  %v2828_v16 = vsel %vm1859_vm12, %v2823_v0, %v2827_v54  ;;  %v2844_v60 = vshll.u32 %v7539_v44, 16  ;;  %v2842_v0 = vshrl.u32 %v7539_v44, 16 }
 0x213   : > { %v6590_v22 = vpop.f32.mrb[21].mxu1  ;;  %7111 = vmatpush3.bf16.msra.mxu1 %v7533_v61  ;;  %v3105_v13 = vsel %vm2260_vm11, %v3103_v1, %v3104_v7  ;;  %v3652_v28 = vrot.slane %v3650_v18, 1 }
 0x214   : > { %v6591_v26 = vadd.f32 %v6590_v22, %v6589_v15  ;;  %v6592_v59 = vpop.f32.mrb[22].mxu1 }
 0x215   : > { %v6593_v19 = vpop.f32.mrb[23].mxu1 }
 0x216   : > { %v4720_v8 = vadd.f32 %v6591_v26, %v8473_v6  ;;  %v6594_v25 = vadd.f32 %v6593_v19, %v6592_v59  ;;  %v7535_v26 = vld [vmem:[#allocation2 + $0xbc] ss:$0 sps:$4 sm:$0x11]   ;;  %v2832_v59 = vshll.u32 %v7534_v33, 16 }
 0x217   : > { %v2837_v32 = vshll.u32 %v7535_v26, 16 }
 0x218   : > { %v4723_v36 = vadd.f32 %v6594_v25, %v8473_v6  ;;  %v8500_v39 = vadd.f32 %v6703_v9, %v4720_v8  ;;  %5128 = vmatmul.mubr.bf16.gmra.mrb[128].mxu1 %v2828_v16  ;;  %v2834_v30 = vrot.slane %v2832_v59, 1  ;;  %v7543_v59 = vld [vmem:[#allocation2 + $0x24] sm:$0xfe]  }
 0x219   : > { %5289 = vmatmul.mubr.bf16.gmra.mrb[144].mxu0 %v7523_v5  ;;  %5135 = vmatprep.mubr.bf16.mxu1 %v3105_v13  ;;  %v2839_v24 = vrot.slane %v2837_v32, 1 }
 0x21a   : > { %v6595_v49 = vpop.f32.mrb[24].mxu1  ;;  %v8505_v52 = vadd.f32 %v6706_v57, %v4723_v36  ;;  %5296 = vmatprep.mubr.bf16.mxu0 %v3641_v53  ;;  %v3647_v57 = vrot.slane %v3645_v63, 1  ;;  %v2835_v36 = vor.u32 %v2834_v30, %v2830_v17  ;;  %v7545_v30 = vld [vmem:[#allocation2 + $0x30] sm:$0xfe]  }
 0x21b   : > { %v6596_v11 = vpop.f32.mrb[25].mxu1 }
 0x21c   : > { %v6707_v42 = vpop.f32.mrb[40].mxu0  ;;  %v6597_v3 = vadd.f32 %v6596_v11, %v6595_v49  ;;  %v6598_v4 = vpop.f32.mrb[26].mxu1  ;;  %v3648_v27 = vor.u32 %v3647_v57, %v3643_v51  ;;  %v2846_v51 = vrot.slane %v2844_v60, 1  ;;  %v7549_v60 = vld [vmem:[#allocation2 + $0x48] sm:$0xfe]  }
 0x21d   : > { %v6708_v23 = vpop.f32.mrb[41].mxu0  ;;  %v6599_v9 = vpop.f32.mrb[27].mxu1 }
 0x21e   : > { %v6709_v58 = vadd.f32 %v6708_v23, %v6707_v42  ;;  %v6710_v62 = vpop.f32.mrb[42].mxu0  ;;  %v4728_v55 = vadd.f32 %v6597_v3, %v8473_v6  ;;  %v6600_v12 = vadd.f32 %v6599_v9, %v6598_v4  ;;  %v3653_v35 = vsel %vm1859_vm12, %v3648_v27, %v3652_v28 }
 0x21f   : > { %v6711_v29 = vpop.f32.mrb[43].mxu0  ;;  %v3107_v42 = vrot.slane %v7537_v46, 1  ;;  %v2840_v23 = vsel %vm1859_vm12, %v2835_v36, %v2839_v24 }
 0x220   : > { %v6712_v48 = vadd.f32 %v6711_v29, %v6710_v62  ;;  %v4731_v15 = vadd.f32 %v6600_v12, %v8473_v6  ;;  %v8512_v21 = vadd.f32 %v6709_v58, %v4728_v55  ;;  %5136 = vmatmul.mubr.bf16.gmra.mrb[132].mxu1 %v2840_v23  ;;  %v7540_v58 = vld [vmem:[#allocation2 + $0xc8] ss:$0 sps:$4 sm:$0x11]   ;;  %v7541_v29 = vld [vmem:[#allocation2 + $0x18] sm:$0xfe]  }
 0x221   : > { %5297 = vmatmul.mubr.bf16.gmra.mrb[148].mxu0 %v7530_v14  ;;  %v3108_v61 = vsel %vm2260_vm11, %v3106_v43, %v3107_v42  ;;  %v2849_v1 = vshll.u32 %v7540_v58, 16  ;;  %v3862_v12 = vrot.slane %v7541_v29, 1  ;;  %v2847_v14 = vor.u32 %v2846_v51, %v2842_v0 }
 0x222   : > { %v6601_v19 = vpop.f32.mrb[28].mxu1  ;;  %v8514_v20 = vadd.f32 %v6712_v48, %v4731_v15  ;;  %5304 = vmatprep.mubr.bf16.mxu0 %v3653_v35  ;;  %5143 = vmatprep.mubr.bf16.mxu1 %v3108_v61  ;;  %v7542_v48 = vld [vmem:[#allocation2 + $0x20] ss:$0 sps:$4 sm:$0x11]  }
 0x223   : > { %v6602_v41 = vpop.f32.mrb[29].mxu1  ;;  %v2851_v16 = vrot.slane %v2849_v1, 1  ;;  %v3863_v50 = vrot.slane %v7542_v48, 1 }
 0x224   : > { %v6713_v22 = vpop.f32.mrb[44].mxu0  ;;  %v6603_v10 = vadd.f32 %v6602_v41, %v6601_v19  ;;  %v6604_v31 = vpop.f32.mrb[30].mxu1  ;;  %v3868_v41 = vrot.slane %v7545_v30, 1  ;;  %v7554_v30 = vld [vmem:[#allocation2 + $0x68] ss:$0 sps:$4 sm:$0x11]  }
 0x225   : > { %v6714_v5 = vpop.f32.mrb[45].mxu0  ;;  %v6605_v49 = vpop.f32.mrb[31].mxu1  ;;  %v2852_v27 = vsel %vm1859_vm12, %v2847_v14, %v2851_v16  ;;  %v3864_v19 = vsel %vm2260_vm11, %v3862_v12, %v3863_v50  ;;  %v3874_v16 = vrot.slane %v7549_v60, 1  ;;  %v7551_v14 = vld [vmem:[#allocation2 + $0x54] sm:$0xfe]  }
 0x226   : > { %v6715_v8 = vadd.f32 %v6714_v5, %v6713_v22  ;;  %v6716_v25 = vpop.f32.mrb[46].mxu0  ;;  %v4736_v53 = vadd.f32 %v6603_v10, %v8473_v6  ;;  %v6606_v54 = vadd.f32 %v6605_v49, %v6604_v31  ;;  %v7544_v5 = vld [vmem:[#allocation2 + $0x2c] ss:$0 sps:$4 sm:$0x11]  }
 0x227   : > { %v6717_v34 = vpop.f32.mrb[47].mxu0  ;;  %v3866_v35 = vrot.slane %v7544_v5, 1  ;;  %v7552_v50 = vld [vmem:[#allocation2 + $0x5c] ss:$0 sps:$4 sm:$0x11]  }
 0x228   : > { %v6718_v38 = vadd.f32 %v6717_v34, %v6716_v25  ;;  %v4739_v62 = vadd.f32 %v6606_v54, %v8473_v6  ;;  %v8521_v4 = vadd.f32 %v6715_v8, %v4736_v53  ;;  %5144 = vmatmul.mubr.bf16.gmra.mrb[136].mxu1 %v2852_v27  ;;  %v7546_v8 = vld [vmem:[#allocation2 + $0x38] ss:$0 sps:$4 sm:$0x11]   ;;  %v3865_v34 = vrot.slane %v7543_v59, 1  ;;  %v7547_v54 = vld [vmem:[#allocation2 + $0x3c] sm:$0xfe]  }
 0x229   : > { %5305 = vmatmul.mubr.bf16.gmra.mrb[152].mxu0 %v7538_v47  ;;  %7112 = vmatprep.mubr.bf16.mxu1 %v3864_v19  ;;  %v3869_v43 = vrot.slane %v7546_v8, 1  ;;  %v7548_v47 = vld [vmem:[#allocation2 + $0x44] ss:$0 sps:$4 sm:$0x11]   ;;  %v3871_v51 = vrot.slane %v7547_v54, 1 }
 0x22a   : > { %v8523_v17 = vadd.f32 %v6718_v38, %v4739_v62  ;;  %v3867_v58 = vsel %vm2260_vm11, %v3865_v34, %v3866_v35  ;;  %v7550_v62 = vld [vmem:[#allocation2 + $0x50] ss:$0 sps:$4 sm:$0x11]   ;;  %v7553_v27 = vld [vmem:[#allocation2 + $0x60] sm:$0xfe]   ;;  %v3878_v34 = vrot.slane %v7552_v50, 1 }
 0x22b   : > { %v6607_v3 = vpop.f32.mrb[32].mxu1  ;;  %v7555_v54 = vld [vmem:[#allocation2 + $0x6c] sm:$0xfe]  }
 0x22c   : > { %v6719_v11 = vpop.f32.mrb[48].mxu0  ;;  %v6608_v9 = vpop.f32.mrb[33].mxu1 }
 0x22d   : > { %v6720_v7 = vpop.f32.mrb[49].mxu0  ;;  %v6609_v33 = vadd.f32 %v6608_v9, %v6607_v3  ;;  %v6610_v13 = vpop.f32.mrb[34].mxu1 }
 0x22e   : > { %v6721_v55 = vadd.f32 %v6720_v7, %v6719_v11  ;;  %v6722_v63 = vpop.f32.mrb[50].mxu0  ;;  %v6611_v57 = vpop.f32.mrb[35].mxu1  ;;  %v3870_v11 = vsel %vm2260_vm11, %v3868_v41, %v3869_v43  ;;  %v3872_v7 = vrot.slane %v7548_v47, 1  ;;  %v7558_v47 = vld [vmem:[#allocation2 + $0x80] ss:$0 sps:$4 sm:$0x11]  }
 0x22f   : > { %v6723_v15 = vpop.f32.mrb[51].mxu0  ;;  %v4744_v22 = vadd.f32 %v6609_v33, %v8473_v6  ;;  %v6612_v26 = vadd.f32 %v6611_v57, %v6610_v13 }
 0x230   : > { %v6724_v18 = vadd.f32 %v6723_v15, %v6722_v63  ;;  %7113 = vmatmul.mubr.bf16.vlgmr.msra.gmra.mrb[140].mxu1 %v3867_v58 }
 0x231   : > { %v4747_v28 = vadd.f32 %v6612_v26, %v8473_v6  ;;  %v8529_v32 = vadd.f32 %v6721_v55, %v4744_v22  ;;  %7116 = vmatprep.mubr.bf16.mxu1 %v3870_v11  ;;  %v3875_v55 = vrot.slane %v7550_v62, 1  ;;  %v3873_v26 = vsel %vm2260_vm11, %v3871_v51, %v3872_v7 }
 0x232   : > { %v3883_v7 = vrot.slane %v7555_v54, 1 }
 0x233   : > { %v6613_v56 = vpop.f32.mrb[36].mxu1  ;;  %v8531_v46 = vadd.f32 %v6724_v18, %v4747_v28  ;;  %v3876_v5 = vsel %vm2260_vm11, %v3874_v16, %v3875_v55  ;;  %v3887_v55 = vrot.slane %v7558_v47, 1  ;;  %v7564_v47 = vld [vmem:[#allocation2 + $0xa4] ss:$0 sps:$4 sm:$0x11]  }
 0x234   : > { %v6725_v25 = vpop.f32.mrb[52].mxu0  ;;  %v6614_v24 = vpop.f32.mrb[37].mxu1 }
 0x235   : > { %v6726_v36 = vpop.f32.mrb[53].mxu0  ;;  %v6615_v10 = vadd.f32 %v6614_v24, %v6613_v56  ;;  %v6616_v31 = vpop.f32.mrb[38].mxu1  ;;  %v3877_v56 = vrot.slane %v7551_v14, 1  ;;  %v3881_v24 = vrot.slane %v7554_v30, 1 }
 0x236   : > { %v6727_v38 = vadd.f32 %v6726_v36, %v6725_v25  ;;  %v6728_v42 = vpop.f32.mrb[54].mxu0  ;;  %v6617_v23 = vpop.f32.mrb[39].mxu1  ;;  %v3880_v36 = vrot.slane %v7553_v27, 1  ;;  %v7560_v14 = vld [vmem:[#allocation2 + $0x8c] ss:$0 sps:$4 sm:$0x11]  }
 0x237   : > { %v6729_v44 = vpop.f32.mrb[55].mxu0  ;;  %v4752_v61 = vadd.f32 %v6615_v10, %v8473_v6  ;;  %v6618_v53 = vadd.f32 %v6617_v23, %v6616_v31 }
 0x238   : > { %v6730_v49 = vadd.f32 %v6729_v44, %v6728_v42  ;;  %7117 = vmatmul.mubr.bf16.gmra.mrb[144].mxu1 %v3873_v26  ;;  %v7556_v42 = vld [vmem:[#allocation2 + $0x74] ss:$0 sps:$4 sm:$0x11]   ;;  %v3882_v58 = vsel %vm2260_vm11, %v3880_v36, %v3881_v24 }
 0x239   : > { %v4755_v0 = vadd.f32 %v6618_v53, %v8473_v6  ;;  %v8537_v1 = vadd.f32 %v6727_v38, %v4752_v61  ;;  %7120 = vmatprep.mubr.bf16.mxu1 %v3876_v5  ;;  %v7562_v5 = vld [vmem:[#allocation2 + $0x98] ss:$0 sps:$4 sm:$0x11]  }
 0x23b   : > { %v6619_v29 = vpop.f32.mrb[40].mxu1  ;;  %v8539_v3 = vadd.f32 %v6730_v49, %v4755_v0  ;;  %v3879_v49 = vsel %vm2260_vm11, %v3877_v56, %v3878_v34  ;;  %v7557_v0 = vld [vmem:[#allocation2 + $0x78] sm:$0xfe]   ;;  %v7561_v34 = vld [vmem:[#allocation2 + $0x90] sm:$0xfe]  }
 0x23c   : > { %v6620_v48 = vpop.f32.mrb[41].mxu1  ;;  %v6731_v9 = vpop.f32.mrb[56].mxu0  ;;  %v3886_v16 = vrot.slane %v7557_v0, 1  ;;  %v5522_v0 = vld [vmem:[%s8934_s5] sm:$0x3] }
 0x23d   : > { %v6621_v12 = vadd.f32 %v6620_v48, %v6619_v29  ;;  %v6622_v63 = vpop.f32.mrb[42].mxu1  ;;  %v6732_v33 = vpop.f32.mrb[57].mxu0  ;;  %v3884_v48 = vrot.slane %v7556_v42, 1  ;;  %v3893_v42 = vrot.slane %v7562_v5, 1  ;;  %7180 = vmatprep.subr.msk.bf16.mxu0 %vm5579_vm13, %v5522_v0 }
 0x23e   : > { %v6623_v13 = vpop.f32.mrb[43].mxu1  ;;  %v6733_v15 = vadd.f32 %v6732_v33, %v6731_v9  ;;  %v6734_v57 = vpop.f32.mrb[58].mxu0 }
 0x23f   : > { %v4760_v18 = vadd.f32 %v6621_v12, %v8473_v6  ;;  %v6624_v22 = vadd.f32 %v6623_v13, %v6622_v63  ;;  %v6735_v59 = vpop.f32.mrb[59].mxu0  ;;  %v3885_v26 = vsel %vm2260_vm11, %v3883_v7, %v3884_v48 }
 0x240   : > { %v6736_v19 = vadd.f32 %v6735_v59, %v6734_v57  ;;  %7121 = vmatmul.mubr.bf16.gmra.mrb[148].mxu1 %v3879_v49 }
 0x241   : > { %v4763_v28 = vadd.f32 %v6624_v22, %v8473_v6  ;;  %v8545_v8 = vadd.f32 %v6733_v15, %v4760_v18  ;;  %7124 = vmatprep.mubr.bf16.mxu1 %v3882_v58  ;;  %v7559_v22 = vld [vmem:[#allocation2 + $0x84] sm:$0xfe]  }
 0x242   : > { %v3889_v24 = vrot.slane %v7559_v22, 1 }
 0x243   : > { %v8547_v25 = vadd.f32 %v6736_v19, %v4763_v28  ;;  %v6625_v38 = vpop.f32.mrb[44].mxu1  ;;  %v3888_v19 = vsel %vm2260_vm11, %v3886_v16, %v3887_v55  ;;  %v7565_v16 = vld [vmem:[#allocation2 + $0xa8] sm:$0xfe]   ;;  %v7566_v55 = vld [vmem:[#allocation2 + $0xb0] ss:$0 sps:$4 sm:$0x11]  }
 0x244   : > { %v6737_v35 = vpop.f32.mrb[60].mxu0  ;;  %v6626_v43 = vpop.f32.mrb[45].mxu1 }
 0x245   : > { %v6738_v41 = vpop.f32.mrb[61].mxu0  ;;  %v6627_v44 = vadd.f32 %v6626_v43, %v6625_v38  ;;  %v6628_v23 = vpop.f32.mrb[46].mxu1  ;;  %v3890_v38 = vrot.slane %v7560_v14, 1  ;;  %v3892_v43 = vrot.slane %v7561_v34, 1 }
 0x246   : > { %v6739_v10 = vadd.f32 %v6738_v41, %v6737_v35  ;;  %v6740_v31 = vpop.f32.mrb[62].mxu0  ;;  %v6629_v53 = vpop.f32.mrb[47].mxu1 }
 0x247   : > { %v6741_v61 = vpop.f32.mrb[63].mxu0  ;;  %v4768_v62 = vadd.f32 %v6627_v44, %v8473_v6  ;;  %v6630_v11 = vadd.f32 %v6629_v53, %v6628_v23  ;;  %v3891_v58 = vsel %vm2260_vm11, %v3889_v24, %v3890_v38  ;;  %v7568_v24 = vld [vmem:[#allocation2 + $0xbc] ss:$0 sps:$4 sm:$0x11]  }
 0x248   : > { %v6742_v60 = vadd.f32 %v6741_v61, %v6740_v31  ;;  %7125 = vmatmul.mubr.bf16.gmra.mrb[152].mxu1 %v3885_v26 }
 0x249   : > { %v4771_v29 = vadd.f32 %v6630_v11, %v8473_v6  ;;  %v8553_v51 = vadd.f32 %v6739_v10, %v4768_v62  ;;  %7128 = vmatprep.mubr.bf16.mxu1 %v3888_v19  ;;  %v7563_v11 = vld [vmem:[#allocation2 + $0x9c] sm:$0xfe]  }
 0x24a   : > { %v3895_v14 = vrot.slane %v7563_v11, 1 }
 0x24b   : > { %v6631_v12 = vpop.f32.mrb[48].mxu1  ;;  %v8555_v63 = vadd.f32 %v6742_v60, %v4771_v29  ;;  %v3894_v29 = vsel %vm2260_vm11, %v3892_v43, %v3893_v42 }
 0x24c   : > { %v6743_v9 = vpop.f32.mrb[64].mxu0  ;;  %v6632_v13 = vpop.f32.mrb[49].mxu1 }
 0x24d   : > { %v6744_v33 = vpop.f32.mrb[65].mxu0  ;;  %v6633_v57 = vadd.f32 %v6632_v13, %v6631_v12  ;;  %v6634_v18 = vpop.f32.mrb[50].mxu1  ;;  %v5581_v12 = vsel %vm5579_vm13, %v5522_v0, 0 }
 0x24e   : > { %v6745_v50 = vadd.f32 %v6744_v33, %v6743_v9  ;;  %v6746_v15 = vpop.f32.mrb[66].mxu0  ;;  %v6635_v27 = vpop.f32.mrb[51].mxu1  ;;  %7145 = vmatpush3.bf16.msra.mxu0 %v5581_v12 }
 0x24f   : > { %v6747_v59 = vpop.f32.mrb[67].mxu0  ;;  %v4776_v30 = vadd.f32 %v6633_v57, %v8473_v6  ;;  %v6636_v56 = vadd.f32 %v6635_v27, %v6634_v18  ;;  %v3898_v57 = vrot.slane %v7565_v16, 1  ;;  %v3899_v18 = vrot.slane %v7566_v55, 1  ;;  %v7571_v55 = vld [vmem:[#allocation2 + $0xcc] sm:$0xfe]  }
 0x250   : > { %v6748_v28 = vadd.f32 %v6747_v59, %v6746_v15  ;;  %7129 = vmatmul.mubr.bf16.gmra.mrb[156].mxu1 %v3891_v58 }
 0x251   : > { %v4779_v35 = vadd.f32 %v6636_v56, %v8473_v6  ;;  %v8561_v36 = vadd.f32 %v6745_v50, %v4776_v30  ;;  %7132 = vmatprep.mubr.bf16.mxu1 %v3894_v29  ;;  %v3896_v50 = vrot.slane %v7564_v47, 1  ;;  %v3900_v38 = vsel %vm2260_vm11, %v3898_v57, %v3899_v18  ;;  %v7569_v47 = vld [vmem:[#allocation2 + $0xc0] sm:$0xfe]   ;;  %v7574_v57 = vld [vmem:[%s8933_s4] ss:$0 sm:$0xff] }
 0x253   : > { %v6637_v10 = vpop.f32.mrb[52].mxu1  ;;  %v8563_v31 = vadd.f32 %v6748_v28, %v4779_v35  ;;  %v3897_v56 = vsel %vm2260_vm11, %v3895_v14, %v3896_v50  ;;  %v7572_v14 = vld [vmem:[#allocation2 + $0xd4] ss:$0 sps:$4 sm:$0x11]  }
 0x254   : > { %v6749_v41 = vpop.f32.mrb[68].mxu0  ;;  %v6638_v23 = vpop.f32.mrb[53].mxu1 }
 0x255   : > { %v6750_v44 = vpop.f32.mrb[69].mxu0  ;;  %v6639_v53 = vadd.f32 %v6638_v23, %v6637_v10  ;;  %v6640_v54 = vpop.f32.mrb[54].mxu1  ;;  %v7570_v10 = vld [vmem:[#allocation2 + $0xc8] ss:$0 sps:$4 sm:$0x11]  }
 0x256   : > { %v6751_v49 = vadd.f32 %v6750_v44, %v6749_v41  ;;  %v6752_v61 = vpop.f32.mrb[70].mxu0  ;;  %v6641_v62 = vpop.f32.mrb[55].mxu1  ;;  %v7567_v44 = vld [vmem:[#allocation2 + $0xb4] sm:$0xfe]  }
 0x257   : > { %v6753_v60 = vpop.f32.mrb[71].mxu0  ;;  %v4784_v48 = vadd.f32 %v6639_v53, %v8473_v6  ;;  %v6642_v9 = vadd.f32 %v6641_v62, %v6640_v54  ;;  %v3905_v54 = vrot.slane %v7570_v10, 1  ;;  %v3901_v62 = vrot.slane %v7567_v44, 1 }
 0x258   : > { %v6754_v7 = vadd.f32 %v6753_v60, %v6752_v61  ;;  %7133 = vmatmul.mubr.bf16.gmra.mrb[160].mxu1 %v3897_v56  ;;  %v3902_v61 = vrot.slane %v7568_v24, 1 }
 0x259   : > { %v4787_v33 = vadd.f32 %v6642_v9, %v8473_v6  ;;  %v8572_v13 = vadd.f32 %v6751_v49, %v4784_v48  ;;  %7136 = vmatprep.mubr.bf16.mxu1 %v3900_v38 }
 0x25b   : > { %v6643_v22 = vpop.f32.mrb[56].mxu1  ;;  %v8574_v26 = vadd.f32 %v6754_v7, %v4787_v33  ;;  %v3904_v7 = vrot.slane %v7569_v47, 1 }
 0x25c   : > { %v6755_v15 = vpop.f32.mrb[72].mxu0  ;;  %v6644_v27 = vpop.f32.mrb[57].mxu1 }
 0x25d   : > { %v6756_v59 = vpop.f32.mrb[73].mxu0  ;;  %v6645_v28 = vadd.f32 %v6644_v27, %v6643_v22  ;;  %v6646_v30 = vpop.f32.mrb[58].mxu1  ;;  %v3906_v50 = vsel %vm2260_vm11, %v3904_v7, %v3905_v54 }
 0x25e   : > { %v6757_v5 = vadd.f32 %v6756_v59, %v6755_v15  ;;  %v6758_v19 = vpop.f32.mrb[74].mxu0  ;;  %v6647_v35 = vpop.f32.mrb[59].mxu1 }
 0x25f   : > { %v6759_v34 = vpop.f32.mrb[75].mxu0  ;;  %v4792_v43 = vadd.f32 %v6645_v28, %v8473_v6  ;;  %v6648_v42 = vadd.f32 %v6647_v35, %v6646_v30 }
 0x260   : > { %v6760_v41 = vadd.f32 %v6759_v34, %v6758_v19  ;;  %v3908_v19 = vrot.slane %v7572_v14, 1 }
 0x261   : > { %v4795_v23 = vadd.f32 %v6648_v42, %v8473_v6  ;;  %v8580_v49 = vadd.f32 %v6757_v5, %v4792_v43  ;;  %v3903_v6 = vsel %vm2260_vm11, %v3901_v62, %v3902_v61  ;;  %v3907_v5 = vrot.slane %v7571_v55, 1 }
 0x262   : > { %7137 = vmatmul.mubr.bf16.gmra.mrb[164].mxu1 %v3903_v6 }
 0x263   : > { %v6649_v58 = vpop.f32.mrb[60].mxu1  ;;  %v8582_v60 = vadd.f32 %v6760_v41, %v4795_v23  ;;  %7140 = vmatprep.mubr.bf16.mxu1 %v3906_v50  ;;  %v3909_v42 = vsel %vm2260_vm11, %v3907_v5, %v3908_v19 }
 0x264   : > { %v6761_v53 = vpop.f32.mrb[76].mxu0  ;;  %v6650_v0 = vpop.f32.mrb[61].mxu1 }
 0x265   : > { %v6762_v11 = vpop.f32.mrb[77].mxu0  ;;  %v6651_v9 = vadd.f32 %v6650_v0, %v6649_v58  ;;  %v6652_v16 = vpop.f32.mrb[62].mxu1 }
 0x266   : > { %v6763_v29 = vadd.f32 %v6762_v11, %v6761_v53  ;;  %v6764_v48 = vpop.f32.mrb[78].mxu0  ;;  %v6653_v33 = vpop.f32.mrb[63].mxu1 }
 0x267   : > { %v6765_v12 = vpop.f32.mrb[79].mxu0  ;;  %v4800_v18 = vadd.f32 %v7574_v57, %v6651_v9  ;;  %v6654_v22 = vadd.f32 %v6653_v33, %v6652_v16 }
 0x268   : > { %v6766_v15 = vadd.f32 %v6765_v12, %v6764_v48 }
 0x269   : > { %v4803_v59 = vadd.f32 %v7574_v57, %v6654_v22  ;;  %v8589_v27 = vadd.f32 %v6763_v29, %v4800_v18 }
 0x26a   : > { %7141 = vmatmul.mubr.bf16.gmra.mrb[168].mxu1 %v3909_v42 }
 0x26b   : > { %v6655_v30 = vpop.f32.mrb[64].mxu1  ;;  %v8591_v35 = vadd.f32 %v6766_v15, %v4803_v59 }
 0x26c   : > { %v6767_v28 = vpop.f32.mrb[80].mxu0  ;;  %v6656_v34 = vpop.f32.mrb[65].mxu1 }
 0x26d   : > { %v6768_v56 = vpop.f32.mrb[81].mxu0  ;;  %v6657_v41 = vadd.f32 %v6656_v34, %v6655_v30  ;;  %v6658_v43 = vpop.f32.mrb[66].mxu1 }
 0x26e   : > { %v6769_v24 = vadd.f32 %v6768_v56, %v6767_v28  ;;  %v6770_v38 = vpop.f32.mrb[82].mxu0  ;;  %v6659_v44 = vpop.f32.mrb[67].mxu1 }
 0x26f   : > { %v6771_v10 = vpop.f32.mrb[83].mxu0  ;;  %v4808_v47 = vadd.f32 %v7574_v57, %v6657_v41  ;;  %v6660_v61 = vadd.f32 %v6659_v44, %v6658_v43 }
 0x270   : > { %v6772_v23 = vadd.f32 %v6771_v10, %v6770_v38 }
 0x271   : > { %v4811_v53 = vadd.f32 %v7574_v57, %v6660_v61  ;;  %v8594_v54 = vadd.f32 %v6769_v24, %v4808_v47 }
 0x273   : > { %v6661_v62 = vpop.f32.mrb[68].mxu1  ;;  %v8596_v16 = vadd.f32 %v6772_v23, %v4811_v53 }
 0x274   : > { %v6773_v58 = vpop.f32.mrb[84].mxu0  ;;  %v6662_v0 = vpop.f32.mrb[69].mxu1 }
 0x275   : > { %v6774_v11 = vpop.f32.mrb[85].mxu0  ;;  %v6663_v48 = vadd.f32 %v6662_v0, %v6661_v62  ;;  %v6664_v9 = vpop.f32.mrb[70].mxu1 }
 0x276   : > { %v6775_v29 = vadd.f32 %v6774_v11, %v6773_v58  ;;  %v6776_v7 = vpop.f32.mrb[86].mxu0  ;;  %v6665_v6 = vpop.f32.mrb[71].mxu1 }
 0x277   : > { %v6777_v55 = vpop.f32.mrb[87].mxu0  ;;  %v4816_v33 = vadd.f32 %v7574_v57, %v6663_v48  ;;  %v6666_v14 = vadd.f32 %v6665_v6, %v6664_v9 }
 0x278   : > { %v6778_v12 = vadd.f32 %v6777_v55, %v6776_v7 }
 0x279   : > { %v4819_v50 = vadd.f32 %v7574_v57, %v6666_v14  ;;  %v8598_v15 = vadd.f32 %v6775_v29, %v4816_v33 }
 0x27b   : > { %v6667_v22 = vpop.f32.mrb[72].mxu1  ;;  %v8600_v38 = vadd.f32 %v6778_v12, %v4819_v50 }
 0x27c   : > { %v6779_v18 = vpop.f32.mrb[88].mxu0  ;;  %v6668_v5 = vpop.f32.mrb[73].mxu1 }
 0x27d   : > { %v6780_v59 = vpop.f32.mrb[89].mxu0  ;;  %v6669_v30 = vadd.f32 %v6668_v5, %v6667_v22  ;;  %v6670_v56 = vpop.f32.mrb[74].mxu1 }
 0x27e   : > { %v6781_v19 = vadd.f32 %v6780_v59, %v6779_v18  ;;  %v6782_v28 = vpop.f32.mrb[90].mxu0  ;;  %v6671_v24 = vpop.f32.mrb[75].mxu1 }
 0x27f   : > { %v6783_v34 = vpop.f32.mrb[91].mxu0  ;;  %v4824_v43 = vadd.f32 %v7574_v57, %v6669_v30  ;;  %v6672_v42 = vadd.f32 %v6671_v24, %v6670_v56 }
 0x280   : > { %v6784_v41 = vadd.f32 %v6783_v34, %v6782_v28 }
 0x281   : > { %v4827_v10 = vadd.f32 %v7574_v57, %v6672_v42  ;;  %v8602_v44 = vadd.f32 %v6781_v19, %v4824_v43 }
 0x283   : > { %v6801_v47 = vpop.f32.mrb[76].mxu1  ;;  %v8604_v48 = vadd.f32 %v6784_v41, %v4827_v10 }
 0x284   : > { %v6913_v23 = vpop.f32.mrb[92].mxu0  ;;  %v6802_v53 = vpop.f32.mrb[77].mxu1 }
 0x285   : > { %v6914_v61 = vpop.f32.mrb[93].mxu0  ;;  %v6803_v11 = vadd.f32 %v6802_v53, %v6801_v47  ;;  %v6804_v0 = vpop.f32.mrb[78].mxu1 }
 0x286   : > { %v6915_v58 = vadd.f32 %v6914_v61, %v6913_v23  ;;  %v6916_v62 = vpop.f32.mrb[94].mxu0  ;;  %v6805_v7 = vpop.f32.mrb[79].mxu1 }
 0x287   : > { %v6917_v29 = vpop.f32.mrb[95].mxu0  ;;  %v5026_v55 = vadd.f32 %v6803_v11, %v8480_v37  ;;  %v6806_v6 = vadd.f32 %v6805_v7, %v6804_v0 }
 0x288   : > { %v6918_v9 = vadd.f32 %v6917_v29, %v6916_v62 }
 0x289   : > { %v5029_v57 = vadd.f32 %v6806_v6, %v8482_v40  ;;  %v8608_v19 = vadd.f32 %v6915_v58, %v5026_v55 }
 0x28b   : > { %v6807_v33 = vpop.f32.mrb[80].mxu1  ;;  %v8614_v40 = vadd.f32 %v6918_v9, %v5029_v57 }
 0x28c   : > { %v6919_v12 = vpop.f32.mrb[96].mxu0  ;;  %v6808_v50 = vpop.f32.mrb[81].mxu1 }
 0x28d   : > { %v6920_v14 = vpop.f32.mrb[97].mxu0  ;;  %v6809_v59 = vadd.f32 %v6808_v50, %v6807_v33  ;;  %v6810_v5 = vpop.f32.mrb[82].mxu1 }
 0x28e   : > { %v6921_v18 = vadd.f32 %v6920_v14, %v6919_v12  ;;  %v6922_v22 = vpop.f32.mrb[98].mxu0  ;;  %v6811_v30 = vpop.f32.mrb[83].mxu1 }
 0x28f   : > { %v6923_v28 = vpop.f32.mrb[99].mxu0  ;;  %v5034_v34 = vadd.f32 %v6809_v59, %v8491_v45  ;;  %v6812_v24 = vadd.f32 %v6811_v30, %v6810_v5 }
 0x290   : > { %v6924_v56 = vadd.f32 %v6923_v28, %v6922_v22 }
 0x291   : > { %v5037_v37 = vadd.f32 %v6812_v24, %v8494_v2  ;;  %v8612_v41 = vadd.f32 %v6921_v18, %v5034_v34 }
 0x293   : > { %v6813_v42 = vpop.f32.mrb[84].mxu1  ;;  %v8616_v10 = vadd.f32 %v6924_v56, %v5037_v37 }
 0x294   : > { %v6925_v43 = vpop.f32.mrb[100].mxu0  ;;  %v6814_v47 = vpop.f32.mrb[85].mxu1 }
 0x295   : > { %v6926_v23 = vpop.f32.mrb[101].mxu0  ;;  %v6815_v58 = vadd.f32 %v6814_v47, %v6813_v42  ;;  %v6816_v62 = vpop.f32.mrb[86].mxu1 }
 0x296   : > { %v6927_v61 = vadd.f32 %v6926_v23, %v6925_v43  ;;  %v6928_v53 = vpop.f32.mrb[102].mxu0  ;;  %v6817_v0 = vpop.f32.mrb[87].mxu1 }
 0x297   : > { %v6929_v11 = vpop.f32.mrb[103].mxu0  ;;  %v5042_v29 = vadd.f32 %v6815_v58, %v8500_v39  ;;  %v6818_v2 = vadd.f32 %v6817_v0, %v6816_v62 }
 0x298   : > { %v6930_v45 = vadd.f32 %v6929_v11, %v6928_v53 }
 0x299   : > { %v5045_v7 = vadd.f32 %v6818_v2, %v8505_v52  ;;  %v8620_v9 = vadd.f32 %v6927_v61, %v5042_v29 }
 0x29b   : > { %v6819_v6 = vpop.f32.mrb[88].mxu1  ;;  %v8622_v57 = vadd.f32 %v6930_v45, %v5045_v7 }
 0x29c   : > { %v6931_v55 = vpop.f32.mrb[104].mxu0  ;;  %v6820_v33 = vpop.f32.mrb[89].mxu1 }
 0x29d   : > { %v6932_v12 = vpop.f32.mrb[105].mxu0  ;;  %v6821_v18 = vadd.f32 %v6820_v33, %v6819_v6  ;;  %v6822_v22 = vpop.f32.mrb[90].mxu1 }
 0x29e   : > { %v6933_v14 = vadd.f32 %v6932_v12, %v6931_v55  ;;  %v6934_v50 = vpop.f32.mrb[106].mxu0  ;;  %v6823_v5 = vpop.f32.mrb[91].mxu1 }
 0x29f   : > { %v6935_v59 = vpop.f32.mrb[107].mxu0  ;;  %v5050_v39 = vadd.f32 %v6821_v18, %v8512_v21  ;;  %v6824_v30 = vadd.f32 %v6823_v5, %v6822_v22 }
 0x2a0   : > { %v6936_v28 = vadd.f32 %v6935_v59, %v6934_v50 }
 0x2a1   : > { %v5053_v52 = vadd.f32 %v6824_v30, %v8514_v20  ;;  %v8626_v56 = vadd.f32 %v6933_v14, %v5050_v39 }
 0x2a3   : > { %v6825_v24 = vpop.f32.mrb[92].mxu1  ;;  %v8628_v37 = vadd.f32 %v6936_v28, %v5053_v52 }
 0x2a4   : > { %v6937_v34 = vpop.f32.mrb[108].mxu0  ;;  %v6826_v42 = vpop.f32.mrb[93].mxu1 }
 0x2a5   : > { %v6938_v43 = vpop.f32.mrb[109].mxu0  ;;  %v6827_v61 = vadd.f32 %v6826_v42, %v6825_v24  ;;  %v6828_v53 = vpop.f32.mrb[94].mxu1 }
 0x2a6   : > { %v6939_v23 = vadd.f32 %v6938_v43, %v6937_v34  ;;  %v6940_v47 = vpop.f32.mrb[110].mxu0  ;;  %v6829_v62 = vpop.f32.mrb[95].mxu1 }
 0x2a7   : > { %v6941_v58 = vpop.f32.mrb[111].mxu0  ;;  %v5058_v21 = vadd.f32 %v6827_v61, %v8521_v4  ;;  %v6830_v0 = vadd.f32 %v6829_v62, %v6828_v53 }
 0x2a8   : > { %v6942_v11 = vadd.f32 %v6941_v58, %v6940_v47 }
 0x2a9   : > { %v5061_v20 = vadd.f32 %v6830_v0, %v8523_v17  ;;  %v8632_v45 = vadd.f32 %v6939_v23, %v5058_v21 }
 0x2ab   : > { %v6831_v2 = vpop.f32.mrb[96].mxu1  ;;  %v8634_v7 = vadd.f32 %v6942_v11, %v5061_v20 }
 0x2ac   : > { %v6943_v29 = vpop.f32.mrb[112].mxu0  ;;  %v6832_v6 = vpop.f32.mrb[97].mxu1 }
 0x2ad   : > { %v6944_v55 = vpop.f32.mrb[113].mxu0  ;;  %v6833_v14 = vadd.f32 %v6832_v6, %v6831_v2  ;;  %v6834_v50 = vpop.f32.mrb[98].mxu1 }
 0x2ae   : > { %v6945_v12 = vadd.f32 %v6944_v55, %v6943_v29  ;;  %v6946_v33 = vpop.f32.mrb[114].mxu0  ;;  %v6835_v22 = vpop.f32.mrb[99].mxu1 }
 0x2af   : > { %v6947_v18 = vpop.f32.mrb[115].mxu0  ;;  %v5066_v4 = vadd.f32 %v6833_v14, %v8529_v32  ;;  %v6836_v5 = vadd.f32 %v6835_v22, %v6834_v50 }
 0x2b0   : > { %v6948_v59 = vadd.f32 %v6947_v18, %v6946_v33 }
 0x2b1   : > { %v5069_v17 = vadd.f32 %v6836_v5, %v8531_v46  ;;  %v8638_v28 = vadd.f32 %v6945_v12, %v5066_v4 }
 0x2b3   : > { %v6837_v30 = vpop.f32.mrb[100].mxu1  ;;  %v8640_v52 = vadd.f32 %v6948_v59, %v5069_v17 }
 0x2b4   : > { %v6949_v39 = vpop.f32.mrb[116].mxu0  ;;  %v6838_v24 = vpop.f32.mrb[101].mxu1 }
 0x2b5   : > { %v6950_v34 = vpop.f32.mrb[117].mxu0  ;;  %v6839_v23 = vadd.f32 %v6838_v24, %v6837_v30  ;;  %v6840_v47 = vpop.f32.mrb[102].mxu1 }
 0x2b6   : > { %v6951_v43 = vadd.f32 %v6950_v34, %v6949_v39  ;;  %v6952_v42 = vpop.f32.mrb[118].mxu0  ;;  %v6841_v53 = vpop.f32.mrb[103].mxu1 }
 0x2b7   : > { %v6953_v61 = vpop.f32.mrb[119].mxu0  ;;  %v5074_v32 = vadd.f32 %v6839_v23, %v8537_v1  ;;  %v6842_v62 = vadd.f32 %v6841_v53, %v6840_v47 }
 0x2b8   : > { %v6954_v58 = vadd.f32 %v6953_v61, %v6952_v42 }
 0x2b9   : > { %v5077_v46 = vadd.f32 %v6842_v62, %v8539_v3  ;;  %v8644_v11 = vadd.f32 %v6951_v43, %v5074_v32 }
 0x2bb   : > { %v8646_v0 = vadd.f32 %v6954_v58, %v5077_v46  ;;  %v6843_v29 = vpop.f32.mrb[104].mxu1 }
 0x2bc   : > { %v6955_v21 = vpop.f32.mrb[120].mxu0  ;;  %v6844_v6 = vpop.f32.mrb[105].mxu1 }
 0x2bd   : > { %v6956_v20 = vpop.f32.mrb[121].mxu0  ;;  %v6845_v33 = vadd.f32 %v6844_v6, %v6843_v29  ;;  %v6846_v14 = vpop.f32.mrb[106].mxu1 }
 0x2be   : > { %v6957_v2 = vadd.f32 %v6956_v20, %v6955_v21  ;;  %v6958_v55 = vpop.f32.mrb[122].mxu0  ;;  %v6847_v18 = vpop.f32.mrb[107].mxu1 }
 0x2bf   : > { %v6959_v12 = vpop.f32.mrb[123].mxu0  ;;  %v5082_v1 = vadd.f32 %v6845_v33, %v8545_v8  ;;  %v6848_v22 = vadd.f32 %v6847_v18, %v6846_v14 }
 0x2c0   : > { %v6960_v50 = vadd.f32 %v6959_v12, %v6958_v55 }
 0x2c1   : > { %v5085_v3 = vadd.f32 %v6848_v22, %v8547_v25  ;;  %v8650_v59 = vadd.f32 %v6957_v2, %v5082_v1 }
 0x2c3   : > { %v8652_v17 = vadd.f32 %v6960_v50, %v5085_v3  ;;  %v6849_v34 = vpop.f32.mrb[108].mxu1 }
 0x2c4   : > { %v6961_v4 = vpop.f32.mrb[124].mxu0  ;;  %v6850_v43 = vpop.f32.mrb[109].mxu1 }
 0x2c5   : > { %v6962_v5 = vpop.f32.mrb[125].mxu0  ;;  %v6851_v23 = vadd.f32 %v6850_v43, %v6849_v34  ;;  %v6852_v47 = vpop.f32.mrb[110].mxu1 }
 0x2c6   : > { %v6963_v39 = vadd.f32 %v6962_v5, %v6961_v4  ;;  %v6964_v30 = vpop.f32.mrb[126].mxu0  ;;  %v6853_v61 = vpop.f32.mrb[111].mxu1 }
 0x2c7   : > { %v6965_v24 = vpop.f32.mrb[127].mxu0  ;;  %v5090_v8 = vadd.f32 %v6851_v23, %v8553_v51  ;;  %v6854_v53 = vadd.f32 %v6853_v61, %v6852_v47 }
 0x2c8   : > { %v6966_v42 = vadd.f32 %v6965_v24, %v6964_v30 }
 0x2c9   : > { %v5093_v25 = vadd.f32 %v6854_v53, %v8555_v63  ;;  %v8656_v32 = vadd.f32 %v6963_v39, %v5090_v8 }
 0x2cb   : > { %v6855_v20 = vpop.f32.mrb[112].mxu1  ;;  %v8658_v29 = vadd.f32 %v6966_v42, %v5093_v25 }
 0x2cc   : > { %v6967_v58 = vpop.f32.mrb[128].mxu0  ;;  %v6856_v55 = vpop.f32.mrb[113].mxu1 }
 0x2cd   : > { %v6968_v62 = vpop.f32.mrb[129].mxu0  ;;  %v6857_v12 = vadd.f32 %v6856_v55, %v6855_v20  ;;  %v6858_v33 = vpop.f32.mrb[114].mxu1 }
 0x2ce   : > { %v6969_v46 = vadd.f32 %v6968_v62, %v6967_v58  ;;  %v6970_v21 = vpop.f32.mrb[130].mxu0  ;;  %v6859_v14 = vpop.f32.mrb[115].mxu1 }
 0x2cf   : > { %v6971_v2 = vpop.f32.mrb[131].mxu0  ;;  %v5098_v51 = vadd.f32 %v6857_v12, %v8561_v36  ;;  %v6860_v50 = vadd.f32 %v6859_v14, %v6858_v33 }
 0x2d0   : > { %v6972_v6 = vadd.f32 %v6971_v2, %v6970_v21 }
 0x2d1   : > { %v5101_v63 = vadd.f32 %v6860_v50, %v8563_v31  ;;  %v8662_v1 = vadd.f32 %v6969_v46, %v5098_v51 }
 0x2d3   : > { %v6861_v5 = vpop.f32.mrb[116].mxu1  ;;  %v8664_v39 = vadd.f32 %v6972_v6, %v5101_v63 }
 0x2d4   : > { %v6973_v18 = vpop.f32.mrb[132].mxu0  ;;  %v6862_v34 = vpop.f32.mrb[117].mxu1 }
 0x2d5   : > { %v6974_v22 = vpop.f32.mrb[133].mxu0  ;;  %v6863_v43 = vadd.f32 %v6862_v34, %v6861_v5  ;;  %v6864_v42 = vpop.f32.mrb[118].mxu1 }
 0x2d6   : > { %v6975_v3 = vadd.f32 %v6974_v22, %v6973_v18  ;;  %v6976_v4 = vpop.f32.mrb[134].mxu0  ;;  %v6865_v23 = vpop.f32.mrb[119].mxu1 }
 0x2d7   : > { %v6977_v30 = vpop.f32.mrb[135].mxu0  ;;  %v5106_v36 = vadd.f32 %v6863_v43, %v8572_v13  ;;  %v6866_v47 = vadd.f32 %v6865_v23, %v6864_v42 }
 0x2d8   : > { %v6978_v24 = vadd.f32 %v6977_v30, %v6976_v4 }
 0x2d9   : > { %v5109_v31 = vadd.f32 %v6866_v47, %v8574_v26  ;;  %v8668_v8 = vadd.f32 %v6975_v3, %v5106_v36 }
 0x2db   : > { %v8670_v62 = vadd.f32 %v6978_v24, %v5109_v31  ;;  %v6867_v46 = vpop.f32.mrb[120].mxu1 }
 0x2dc   : > { %v6979_v61 = vpop.f32.mrb[136].mxu0  ;;  %v6868_v2 = vpop.f32.mrb[121].mxu1 }
 0x2dd   : > { %v6980_v53 = vpop.f32.mrb[137].mxu0  ;;  %v6869_v55 = vadd.f32 %v6868_v2, %v6867_v46  ;;  %v6870_v6 = vpop.f32.mrb[122].mxu1 }
 0x2de   : > { %v6981_v25 = vadd.f32 %v6980_v53, %v6979_v61  ;;  %v6982_v58 = vpop.f32.mrb[138].mxu0  ;;  %v6871_v12 = vpop.f32.mrb[123].mxu1 }
 0x2df   : > { %v6983_v21 = vpop.f32.mrb[139].mxu0  ;;  %v5114_v13 = vadd.f32 %v6869_v55, %v8580_v49  ;;  %v6872_v33 = vadd.f32 %v6871_v12, %v6870_v6 }
 0x2e0   : > { %v6984_v20 = vadd.f32 %v6983_v21, %v6982_v58 }
 0x2e1   : > { %v5117_v26 = vadd.f32 %v6872_v33, %v8582_v60  ;;  %v8674_v50 = vadd.f32 %v6981_v25, %v5114_v13 }
 0x2e3   : > { %v8676_v3 = vadd.f32 %v6984_v20, %v5117_v26  ;;  %v6873_v5 = vpop.f32.mrb[124].mxu1 }
 0x2e4   : > { %v6985_v14 = vpop.f32.mrb[140].mxu0  ;;  %v6874_v30 = vpop.f32.mrb[125].mxu1 }
 0x2e5   : > { %v6986_v51 = vpop.f32.mrb[141].mxu0  ;;  %v6875_v34 = vadd.f32 %v6874_v30, %v6873_v5  ;;  %v6876_v24 = vpop.f32.mrb[126].mxu1 }
 0x2e6   : > { %v6987_v63 = vadd.f32 %v6986_v51, %v6985_v14  ;;  %v6988_v18 = vpop.f32.mrb[142].mxu0  ;;  %v6877_v43 = vpop.f32.mrb[127].mxu1 }
 0x2e7   : > { %v6989_v22 = vpop.f32.mrb[143].mxu0  ;;  %v5122_v49 = vadd.f32 %v6875_v34, %v8589_v27  ;;  %v6878_v23 = vadd.f32 %v6877_v43, %v6876_v24 }
 0x2e8   : > { %v6990_v4 = vadd.f32 %v6989_v22, %v6988_v18 }
 0x2e9   : > { %v5125_v31 = vadd.f32 %v6878_v23, %v8591_v35  ;;  %v8680_v53 = vadd.f32 %v6987_v63, %v5122_v49 }
 0x2eb   : > { %v8682_v58 = vadd.f32 %v6990_v4, %v5125_v31  ;;  %v6879_v46 = vpop.f32.mrb[128].mxu1 }
 0x2ec   : > { %v6991_v42 = vpop.f32.mrb[144].mxu0  ;;  %v6880_v21 = vpop.f32.mrb[129].mxu1 }
 0x2ed   : > { %v6992_v36 = vpop.f32.mrb[145].mxu0  ;;  %v6881_v20 = vadd.f32 %v6880_v21, %v6879_v46  ;;  %v6882_v2 = vpop.f32.mrb[130].mxu1 }
 0x2ee   : > { %v6993_v60 = vadd.f32 %v6992_v36, %v6991_v42  ;;  %v6994_v47 = vpop.f32.mrb[146].mxu0  ;;  %v6883_v6 = vpop.f32.mrb[131].mxu1 }
 0x2ef   : > { %v6995_v61 = vpop.f32.mrb[147].mxu0  ;;  %v5130_v27 = vadd.f32 %v6881_v20, %v8594_v54  ;;  %v6884_v13 = vadd.f32 %v6883_v6, %v6882_v2 }
 0x2f0   : > { %v6996_v25 = vadd.f32 %v6995_v61, %v6994_v47 }
 0x2f1   : > { %v5133_v35 = vadd.f32 %v6884_v13, %v8596_v16  ;;  %v8686_v63 = vadd.f32 %v6993_v60, %v5130_v27 }
 0x2f3   : > { %v8688_v18 = vadd.f32 %v6996_v25, %v5133_v35  ;;  %v6885_v22 = vpop.f32.mrb[132].mxu1 }
 0x2f4   : > { %v6997_v55 = vpop.f32.mrb[148].mxu0  ;;  %v6886_v4 = vpop.f32.mrb[133].mxu1 }
 0x2f5   : > { %v6998_v12 = vpop.f32.mrb[149].mxu0  ;;  %v6887_v30 = vadd.f32 %v6886_v4, %v6885_v22  ;;  %v6888_v34 = vpop.f32.mrb[134].mxu1 }
 0x2f6   : > { %v6999_v33 = vadd.f32 %v6998_v12, %v6997_v55  ;;  %v7000_v14 = vpop.f32.mrb[150].mxu0  ;;  %v6889_v43 = vpop.f32.mrb[135].mxu1 }
 0x2f7   : > { %v7001_v26 = vpop.f32.mrb[151].mxu0  ;;  %v5138_v49 = vadd.f32 %v6887_v30, %v8598_v15  ;;  %v6890_v23 = vadd.f32 %v6889_v43, %v6888_v34 }
 0x2f8   : > { %v7002_v51 = vadd.f32 %v7001_v26, %v7000_v14 }
 0x2f9   : > { %v5141_v16 = vadd.f32 %v6890_v23, %v8600_v38  ;;  %v8692_v60 = vadd.f32 %v6999_v33, %v5138_v49 }
 0x2fb   : > { %v6891_v31 = vpop.f32.mrb[136].mxu1  ;;  %v8694_v61 = vadd.f32 %v7002_v51, %v5141_v16 }
 0x2fc   : > { %v7003_v5 = vpop.f32.mrb[152].mxu0  ;;  %v6892_v25 = vpop.f32.mrb[137].mxu1 }
 0x2fd   : > { %v7004_v24 = vpop.f32.mrb[153].mxu0  ;;  %v6893_v46 = vadd.f32 %v6892_v25, %v6891_v31  ;;  %v6894_v21 = vpop.f32.mrb[138].mxu1 }
 0x2fe   : > { %v7005_v42 = vadd.f32 %v7004_v24, %v7003_v5  ;;  %v7006_v54 = vpop.f32.mrb[154].mxu0  ;;  %v6895_v20 = vpop.f32.mrb[139].mxu1 }
 0x2ff   : > { %v7007_v36 = vpop.f32.mrb[155].mxu0  ;;  %v5146_v2 = vadd.f32 %v6893_v46, %v8602_v44  ;;  %v6896_v55 = vadd.f32 %v6895_v20, %v6894_v21 }
 0x300   : > { %v7008_v47 = vadd.f32 %v7007_v36, %v7006_v54 }
 0x301   : > { %v5149_v6 = vadd.f32 %v6896_v55, %v8604_v48  ;;  %v8698_v15 = vadd.f32 %v7005_v42, %v5146_v2 }
 0x303   : > { %v7114_v12 = vpop.f32.mrb[140].mxu1  ;;  %v8700_v27 = vadd.f32 %v7008_v47, %v5149_v6 }
 0x304   : > { %v5356_v38 = vadd.f32 %v7114_v12, %v8612_v41  ;;  %v5347_v13 = vpop.f32.mrb[141].mxu1 }
 0x305   : > { %v5348_v33 = vadd.f32 %v5347_v13, %v8608_v19  ;;  %v7115_v14 = vpop.f32.mrb[142].mxu1 }
 0x306   : > { %v5359_v26 = vadd.f32 %v7115_v14, %v8616_v10  ;;  %v5350_v35 = vpop.f32.mrb[143].mxu1  ;;  %v5476_v44 = vmax.f32 %v5356_v38, 0.0 }
 0x307   : > { %v5351_v51 = vadd.f32 %v5350_v35, %v8614_v40  ;;  %v5474_v4 = vmax.f32 %v5348_v33, 0.0 }
 0x308   : > { %v5477_v22 = vmax.f32 %v5359_v26, 0.0 }
 0x309   : > { %v5475_v48 = vmax.f32 %v5351_v51, 0.0 }
 0x30a   : > { %v5507_v5 = vpack.c.bf16 %v5477_v22, %v5476_v44 }
 0x30b   : > { %v5506_v30 = vpack.c.bf16 %v5475_v48, %v5474_v4  ;;  %v7118_v34 = vpop.f32.mrb[144].mxu1 }
 0x30c   : > { %v5372_v24 = vadd.f32 %v7118_v34, %v8626_v56  ;;  %v5363_v41 = vpop.f32.mrb[145].mxu1 }
 0x30d   : > { %v5364_v43 = vadd.f32 %v5363_v41, %v8620_v9  ;;  %v7119_v19 = vpop.f32.mrb[146].mxu1  ;;  %7146 = vmatprep.mubr.msk.bf16.mxu0 %vm5530_vm14, %v5506_v30 }
 0x30e   : > { %v5375_v10 = vadd.f32 %v7119_v19, %v8628_v37  ;;  %v5366_v42 = vpop.f32.mrb[147].mxu1  ;;  %7147 = vmatmul.mubr.msk.bf16.vlgmr.msra.gmra.mrb[156].mxu0 %vm5530_vm14, %v5507_v5  ;;  %v5480_v54 = vmax.f32 %v5372_v24, 0.0 }
 0x30f   : > { %v5367_v40 = vadd.f32 %v5366_v42, %v8622_v57  ;;  %v5478_v23 = vmax.f32 %v5364_v43, 0.0 }
 0x310   : > { %v5481_v49 = vmax.f32 %v5375_v10, 0.0 }
 0x311   : > { %v5479_v36 = vmax.f32 %v5367_v40, 0.0 }
 0x312   : > { %v5509_v47 = vpack.c.bf16 %v5481_v49, %v5480_v54 }
 0x313   : > { %v5508_v16 = vpack.c.bf16 %v5479_v36, %v5478_v23  ;;  %v7122_v56 = vpop.f32.mrb[148].mxu1 }
 0x314   : > { %v5388_v31 = vadd.f32 %v7122_v56, %v8638_v28  ;;  %v5379_v9 = vpop.f32.mrb[149].mxu1 }
 0x315   : > { %v5380_v25 = vadd.f32 %v5379_v9, %v8632_v45  ;;  %v7123_v46 = vpop.f32.mrb[150].mxu1  ;;  %7150 = vmatprep.mubr.msk.bf16.mxu0 %vm5530_vm14, %v5508_v16 }
 0x316   : > { %v5391_v37 = vadd.f32 %v7123_v46, %v8640_v52  ;;  %v5382_v21 = vpop.f32.mrb[151].mxu1  ;;  %7151 = vmatmul.mubr.msk.bf16.gmra.mrb[160].mxu0 %vm5530_vm14, %v5509_v47  ;;  %v5484_v20 = vmax.f32 %v5388_v31, 0.0 }
 0x317   : > { %v5383_v57 = vadd.f32 %v5382_v21, %v8634_v7  ;;  %v5482_v55 = vmax.f32 %v5380_v25, 0.0 }
 0x318   : > { %v5485_v2 = vmax.f32 %v5391_v37, 0.0 }
 0x319   : > { %v5483_v6 = vmax.f32 %v5383_v57, 0.0 }
 0x31a   : > { %v5511_v12 = vpack.c.bf16 %v5485_v2, %v5484_v20 }
 0x31b   : > { %v5510_v38 = vpack.c.bf16 %v5483_v6, %v5482_v55  ;;  %v7126_v28 = vpop.f32.mrb[152].mxu1 }
 0x31c   : > { %v5404_v13 = vadd.f32 %v7126_v28, %v8650_v59  ;;  %v5395_v45 = vpop.f32.mrb[153].mxu1 }
 0x31d   : > { %v5396_v33 = vadd.f32 %v5395_v45, %v8644_v11  ;;  %v7127_v14 = vpop.f32.mrb[154].mxu1  ;;  %7154 = vmatprep.mubr.msk.bf16.mxu0 %vm5530_vm14, %v5510_v38 }
 0x31e   : > { %v5407_v52 = vadd.f32 %v7127_v14, %v8652_v17  ;;  %v5398_v26 = vpop.f32.mrb[155].mxu1  ;;  %7155 = vmatmul.mubr.msk.bf16.gmra.mrb[164].mxu0 %vm5530_vm14, %v5511_v12  ;;  %v5488_v35 = vmax.f32 %v5404_v13, 0.0 }
 0x31f   : > { %v5399_v7 = vadd.f32 %v5398_v26, %v8646_v0  ;;  %v5486_v44 = vmax.f32 %v5396_v33, 0.0 }
 0x320   : > { %v5489_v51 = vmax.f32 %v5407_v52, 0.0 }
 0x321   : > { %v5487_v22 = vmax.f32 %v5399_v7, 0.0 }
 0x322   : > { %v5513_v4 = vpack.c.bf16 %v5489_v51, %v5488_v35  ;;  %v6462_v51 = vld [vmem:[%s7766_s23] sm:$0xff]  }
 0x323   : > { %v5512_v48 = vpack.c.bf16 %v5487_v22, %v5486_v44  ;;  %v7130_v59 = vpop.f32.mrb[156].mxu1  ;;  %v6463_v22 = vunpack.c.l.bf16 %v6462_v51 }
 0x324   : > { %v5420_v5 = vadd.f32 %v7130_v59, %v8662_v1  ;;  %v5411_v11 = vpop.f32.mrb[157].mxu1 }
 0x325   : > { %v5412_v30 = vadd.f32 %v5411_v11, %v8656_v32  ;;  %v7131_v34 = vpop.f32.mrb[158].mxu1  ;;  %7158 = vmatprep.mubr.msk.bf16.mxu0 %vm5530_vm14, %v5512_v48 }
 0x326   : > { %v5423_v17 = vadd.f32 %v7131_v34, %v8664_v39  ;;  %v5414_v24 = vpop.f32.mrb[159].mxu1  ;;  %7159 = vmatmul.mubr.msk.bf16.gmra.mrb[168].mxu0 %vm5530_vm14, %v5513_v4  ;;  %v5492_v41 = vmax.f32 %v5420_v5, 0.0 }
 0x327   : > { %v5415_v0 = vadd.f32 %v5414_v24, %v8658_v29  ;;  %v5490_v19 = vmax.f32 %v5412_v30, 0.0  ;;  %v6464_v30 = vunpack.c.h.bf16 %v6462_v51 }
 0x328   : > { %v5493_v43 = vmax.f32 %v5423_v17, 0.0 }
 0x329   : > { %v5491_v10 = vmax.f32 %v5415_v0, 0.0 }
 0x32a   : > { %v5515_v42 = vpack.c.bf16 %v5493_v43, %v5492_v41  ;;  %v6527_v43 = vld [vmem:[%s7766_s23 + $0x18] sm:$0xff]  }
 0x32b   : > { %v5514_v40 = vpack.c.bf16 %v5491_v10, %v5490_v19  ;;  %v7134_v1 = vpop.f32.mrb[160].mxu1 }
 0x32c   : > { %v5436_v54 = vadd.f32 %v7134_v1, %v8674_v50  ;;  %v5427_v32 = vpop.f32.mrb[161].mxu1 }
 0x32d   : > { %v5428_v49 = vadd.f32 %v5427_v32, %v8668_v8  ;;  %v7135_v23 = vpop.f32.mrb[162].mxu1  ;;  %7162 = vmatprep.mubr.msk.bf16.mxu0 %vm5530_vm14, %v5514_v40  ;;  %v6475_v32 = vunpack.c.l.bf16 %v6527_v43 }
 0x32e   : > { %v5439_v39 = vadd.f32 %v7135_v23, %v8676_v3  ;;  %v5430_v36 = vpop.f32.mrb[163].mxu1  ;;  %7163 = vmatmul.mubr.msk.bf16.gmra.mrb[172].mxu0 %vm5530_vm14, %v5515_v42  ;;  %v5496_v47 = vmax.f32 %v5436_v54, 0.0  ;;  %v6526_v42 = vld [vmem:[%s7766_s23 + $0x10] sm:$0xff]  }
 0x32f   : > { %v5431_v29 = vadd.f32 %v5430_v36, %v8670_v62  ;;  %v5494_v56 = vmax.f32 %v5428_v49, 0.0 }
 0x330   : > { %v5497_v16 = vmax.f32 %v5439_v39, 0.0  ;;  %v6471_v39 = vunpack.c.l.bf16 %v6526_v42 }
 0x331   : > { %v5495_v31 = vmax.f32 %v5431_v29, 0.0 }
 0x332   : > { %v5517_v9 = vpack.c.bf16 %v5497_v16, %v5496_v47  ;;  %v6476_v47 = vunpack.c.h.bf16 %v6527_v43 }
 0x333   : > { %v5516_v25 = vpack.c.bf16 %v5495_v31, %v5494_v56  ;;  %v6472_v31 = vunpack.c.h.bf16 %v6526_v42  ;;  %v6533_v42 = vld [vmem:[%s7766_s23 + $0x48] sm:$0xff]  }
 0x335   : > { %v7138_v50 = vpop.f32.mrb[164].mxu1  ;;  %7166 = vmatprep.mubr.msk.bf16.mxu0 %vm5530_vm14, %v5516_v25 }
 0x336   : > { %v5452_v46 = vadd.f32 %v7138_v50, %v8686_v63  ;;  %v5443_v8 = vpop.f32.mrb[165].mxu1  ;;  %7167 = vmatmul.mubr.msk.bf16.gmra.mrb[176].mxu0 %vm5530_vm14, %v5517_v9 }
 0x337   : > { %v5444_v37 = vadd.f32 %v5443_v8, %v8680_v53  ;;  %v7139_v21 = vpop.f32.mrb[166].mxu1 }
 0x338   : > { %v5455_v3 = vadd.f32 %v7139_v21, %v8688_v18  ;;  %v5446_v57 = vpop.f32.mrb[167].mxu1  ;;  %v5500_v20 = vmax.f32 %v5452_v46, 0.0 }
 0x339   : > { %v5447_v62 = vadd.f32 %v5446_v57, %v8682_v58  ;;  %v5498_v55 = vmax.f32 %v5444_v37, 0.0  ;;  %v6529_v37 = vld [vmem:[%s7766_s23 + $0x28] sm:$0xff]   ;;  %v6528_v57 = vld [vmem:[%s7766_s23 + $0x20] sm:$0xff]  }
 0x33a   : > { %v5501_v2 = vmax.f32 %v5455_v3, 0.0 }
 0x33b   : > { %v5499_v6 = vmax.f32 %v5447_v62, 0.0 }
 0x33c   : > { %v5519_v12 = vpack.c.bf16 %v5501_v2, %v5500_v20 }
 0x33d   : > { %v5518_v38 = vpack.c.bf16 %v5499_v6, %v5498_v55  ;;  %v7142_v63 = vpop.f32.mrb[168].mxu1  ;;  %v6483_v55 = vunpack.c.l.bf16 %v6529_v37 }
 0x33e   : > { %v5468_v28 = vadd.f32 %v7142_v63, %v8698_v15  ;;  %v5459_v53 = vpop.f32.mrb[169].mxu1 }
 0x33f   : > { %v5460_v13 = vadd.f32 %v5459_v53, %v8692_v60  ;;  %v7143_v18 = vpop.f32.mrb[170].mxu1  ;;  %7170 = vmatprep.mubr.msk.bf16.mxu0 %vm5530_vm14, %v5518_v38  ;;  %v6525_v60 = vld [vmem:[%s7766_s23 + $0x8] sm:$0xff]   ;;  %v6479_v38 = vunpack.c.l.bf16 %v6528_v57  ;;  %v6484_v53 = vunpack.c.h.bf16 %v6529_v37 }
 0x340   : > { %v5471_v58 = vadd.f32 %v7143_v18, %v8700_v27  ;;  %v5462_v45 = vpop.f32.mrb[171].mxu1  ;;  %7171 = vmatmul.mubr.msk.bf16.gmra.mrb[180].mxu0 %vm5530_vm14, %v5519_v12  ;;  %v5504_v14 = vmax.f32 %v5468_v28, 0.0  ;;  %v8756_v27 = vld [vmem:[%s8935_s6] ss:$0 sm:$0xff]  ;;  %v6468_v59 = vunpack.c.h.bf16 %v6525_v60 }
 0x341   : > { %v5463_v33 = vadd.f32 %v5462_v45, %v8694_v61  ;;  %v5502_v15 = vmax.f32 %v5460_v13, 0.0  ;;  %v6467_v61 = vunpack.c.l.bf16 %v6525_v60  ;;  %v6530_v60 = vld [vmem:[%s7766_s23 + $0x30] sm:$0xff]  }
 0x342   : > { %v5505_v52 = vmax.f32 %v5471_v58, 0.0  ;;  %v6480_v58 = vunpack.c.h.bf16 %v6528_v57  ;;  %v6535_v57 = vld [vmem:[%s7766_s23 + $0x58] sm:$0xff]  }
 0x343   : > { %v5503_v26 = vmax.f32 %v5463_v33, 0.0 }
 0x344   : > { %v5521_v7 = vpack.c.bf16 %v5505_v52, %v5504_v14 }
 0x345   : > { %v5520_v35 = vpack.c.bf16 %v5503_v26, %v5502_v15  ;;  %v6531_v26 = vld [vmem:[%s7766_s23 + $0x38] sm:$0xff]  }
 0x347   : > { %7174 = vmatprep.mubr.msk.bf16.mxu0 %vm5530_vm14, %v5520_v35 }
 0x348   : > { %7175 = vmatmul.mubr.msk.bf16.gmra.mrb[184].mxu0 %vm5530_vm14, %v5521_v7 }
 0x3e1   : > { %v7148_v44 = vpop.f32.mrb[156].mxu0 }
 0x3e2   : > { %v5626_v4 = vadd.f32 %v7148_v44, %v8756_v27  ;;  %v5617_v48 = vpop.f32.mrb[157].mxu0 }
 0x3e3   : > { %v5618_v5 = vadd.f32 %v8756_v27, %v5617_v48  ;;  %v7149_v11 = vpop.f32.mrb[158].mxu0 }
 0x3e4   : > { %v5810_v34 = vadd.f32 %v6467_v61, %v5626_v4  ;;  %v5629_v17 = vadd.f32 %v7149_v11, %v8756_v27  ;;  %v5620_v24 = vpop.f32.mrb[159].mxu0 }
 0x3e5   : > { %v5808_v0 = vadd.f32 %v6463_v22, %v5618_v5  ;;  %v5621_v41 = vadd.f32 %v8756_v27, %v5620_v24  ;;  %v6491_v22 = vunpack.c.l.bf16 %v6531_v26  ;;  %v6488_v24 = vunpack.c.h.bf16 %v6530_v60 }
 0x3e6   : > { %v5842_v19 = vmax.f32 %v5810_v34, 0.0  ;;  %v5811_v10 = vadd.f32 %v6468_v59, %v5629_v17  ;;  %v6487_v59 = vunpack.c.l.bf16 %v6530_v60  ;;  %v6537_v60 = vld [vmem:[%s7766_s23 + $0x68] sm:$0xff]  }
 0x3e7   : > { %v5840_v40 = vmax.f32 %v5808_v0, 0.0  ;;  %v5809_v1 = vadd.f32 %v6464_v30, %v5621_v41  ;;  %v6492_v30 = vunpack.c.h.bf16 %v6531_v26 }
 0x3e8   : > { %5874 = vst.msk [vmem:[%s8766_s17 + $0x10] sm:$0xff] %vm424_vm0, %v5842_v19  ;;  %v5843_v54 = vmax.f32 %v5811_v10, 0.0 }
 0x3e9   : > { %5872 = vst.msk [vmem:[%s8766_s17] sm:$0xff] %vm424_vm0, %v5840_v40  ;;  %v5841_v49 = vmax.f32 %v5809_v1, 0.0  ;;  %v7152_v23 = vpop.f32.mrb[160].mxu0 }
 0x3ea   : > { %5875 = vst.msk [vmem:[%s8766_s17 + $0x18] sm:$0xff] %vm424_vm0, %v5843_v54  ;;  %v5642_v36 = vadd.f32 %v7152_v23, %v8756_v27  ;;  %v5633_v29 = vpop.f32.mrb[161].mxu0  ;;  %v6532_v54 = vld [vmem:[%s7766_s23 + $0x40] sm:$0xff]  }
 0x3eb   : > { %5873 = vst.msk [vmem:[%s8766_s17 + $0x8] sm:$0xff] %vm424_vm0, %v5841_v49  ;;  %v5634_v16 = vadd.f32 %v8756_v27, %v5633_v29  ;;  %v7153_v56 = vpop.f32.mrb[162].mxu0 }
 0x3ec   : > { %v5814_v9 = vadd.f32 %v6475_v32, %v5642_v36  ;;  %v5645_v25 = vadd.f32 %v7153_v56, %v8756_v27  ;;  %v5636_v50 = vpop.f32.mrb[163].mxu0 }
 0x3ed   : > { %v5812_v46 = vadd.f32 %v6471_v39, %v5634_v16  ;;  %v5637_v8 = vadd.f32 %v8756_v27, %v5636_v50  ;;  %v6499_v39 = vunpack.c.l.bf16 %v6533_v42  ;;  %v6496_v50 = vunpack.c.h.bf16 %v6532_v54 }
 0x3ee   : > { %v5846_v21 = vmax.f32 %v5814_v9, 0.0  ;;  %v5815_v3 = vadd.f32 %v6476_v47, %v5645_v25  ;;  %v6495_v47 = vunpack.c.l.bf16 %v6532_v54  ;;  %v6539_v54 = vld [vmem:[%s7766_s23 + $0x78] sm:$0xff]  }
 0x3ef   : > { %v5844_v62 = vmax.f32 %v5812_v46, 0.0  ;;  %v5813_v20 = vadd.f32 %v6472_v31, %v5637_v8  ;;  %v6500_v31 = vunpack.c.h.bf16 %v6533_v42 }
 0x3f0   : > { %5878 = vst.msk [vmem:[%s8766_s17 + $0x30] sm:$0xff] %vm424_vm0, %v5846_v21  ;;  %v5847_v2 = vmax.f32 %v5815_v3, 0.0 }
 0x3f1   : > { %5876 = vst.msk [vmem:[%s8766_s17 + $0x20] sm:$0xff] %vm424_vm0, %v5844_v62  ;;  %v5845_v6 = vmax.f32 %v5813_v20, 0.0  ;;  %v7156_v12 = vpop.f32.mrb[164].mxu0 }
 0x3f2   : > { %5879 = vst.msk [vmem:[%s8766_s17 + $0x38] sm:$0xff] %vm424_vm0, %v5847_v2  ;;  %v5658_v63 = vadd.f32 %v7156_v12, %v8756_v27  ;;  %v5649_v28 = vpop.f32.mrb[165].mxu0  ;;  %v6534_v2 = vld [vmem:[%s7766_s23 + $0x50] sm:$0xff]  }
 0x3f3   : > { %5877 = vst.msk [vmem:[%s8766_s17 + $0x28] sm:$0xff] %vm424_vm0, %v5845_v6  ;;  %v5650_v13 = vadd.f32 %v8756_v27, %v5649_v28  ;;  %v7157_v18 = vpop.f32.mrb[166].mxu0 }
 0x3f4   : > { %v5818_v45 = vadd.f32 %v6483_v55, %v5658_v63  ;;  %v5661_v33 = vadd.f32 %v7157_v18, %v8756_v27  ;;  %v5652_v14 = vpop.f32.mrb[167].mxu0 }
 0x3f5   : > { %v5816_v52 = vadd.f32 %v6479_v38, %v5650_v13  ;;  %v5653_v15 = vadd.f32 %v8756_v27, %v5652_v14  ;;  %v6507_v38 = vunpack.c.l.bf16 %v6535_v57  ;;  %v6504_v14 = vunpack.c.h.bf16 %v6534_v2 }
 0x3f6   : > { %v5850_v7 = vmax.f32 %v5818_v45, 0.0  ;;  %v5819_v35 = vadd.f32 %v6484_v53, %v5661_v33  ;;  %v6503_v53 = vunpack.c.l.bf16 %v6534_v2 }
 0x3f7   : > { %v5848_v51 = vmax.f32 %v5816_v52, 0.0  ;;  %v5817_v61 = vadd.f32 %v6480_v58, %v5653_v15  ;;  %v6508_v58 = vunpack.c.h.bf16 %v6535_v57 }
 0x3f8   : > { %5882 = vst.msk [vmem:[%s8766_s17 + $0x50] sm:$0xff] %vm424_vm0, %v5850_v7  ;;  %v5851_v44 = vmax.f32 %v5819_v35, 0.0 }
 0x3f9   : > { %5880 = vst.msk [vmem:[%s8766_s17 + $0x40] sm:$0xff] %vm424_vm0, %v5848_v51  ;;  %v5849_v4 = vmax.f32 %v5817_v61, 0.0  ;;  %v7160_v48 = vpop.f32.mrb[168].mxu0 }
 0x3fa   : > { %5883 = vst.msk [vmem:[%s8766_s17 + $0x58] sm:$0xff] %vm424_vm0, %v5851_v44  ;;  %v5674_v5 = vadd.f32 %v7160_v48, %v8756_v27  ;;  %v5665_v11 = vpop.f32.mrb[169].mxu0  ;;  %v6536_v44 = vld [vmem:[%s7766_s23 + $0x60] sm:$0xff]  }
 0x3fb   : > { %5881 = vst.msk [vmem:[%s8766_s17 + $0x48] sm:$0xff] %vm424_vm0, %v5849_v4  ;;  %v5666_v34 = vadd.f32 %v8756_v27, %v5665_v11  ;;  %v7161_v17 = vpop.f32.mrb[170].mxu0 }
 0x3fc   : > { %v5822_v0 = vadd.f32 %v6491_v22, %v5674_v5  ;;  %v5677_v41 = vadd.f32 %v7161_v17, %v8756_v27  ;;  %v5668_v43 = vpop.f32.mrb[171].mxu0 }
 0x3fd   : > { %v5820_v19 = vadd.f32 %v6487_v59, %v5666_v34  ;;  %v5669_v10 = vadd.f32 %v8756_v27, %v5668_v43  ;;  %v6515_v59 = vunpack.c.l.bf16 %v6537_v60  ;;  %v6512_v43 = vunpack.c.h.bf16 %v6536_v44 }
 0x3fe   : > { %v5854_v40 = vmax.f32 %v5822_v0, 0.0  ;;  %v5823_v1 = vadd.f32 %v6492_v30, %v5677_v41  ;;  %v6511_v30 = vunpack.c.l.bf16 %v6536_v44 }
 0x3ff   : > { %v5852_v32 = vmax.f32 %v5820_v19, 0.0  ;;  %v5821_v49 = vadd.f32 %v6488_v24, %v5669_v10  ;;  %v6516_v24 = vunpack.c.h.bf16 %v6537_v60 }
 0x400   : > { %5886 = vst.msk [vmem:[%s8766_s17 + $0x70] sm:$0xff] %vm424_vm0, %v5854_v40  ;;  %v5855_v23 = vmax.f32 %v5823_v1, 0.0 }
 0x401   : > { %5884 = vst.msk [vmem:[%s8766_s17 + $0x60] sm:$0xff] %vm424_vm0, %v5852_v32  ;;  %v5853_v36 = vmax.f32 %v5821_v49, 0.0  ;;  %v7164_v29 = vpop.f32.mrb[172].mxu0 }
 0x402   : > { %5887 = vst.msk [vmem:[%s8766_s17 + $0x78] sm:$0xff] %vm424_vm0, %v5855_v23  ;;  %v5690_v16 = vadd.f32 %v7164_v29, %v8756_v27  ;;  %v5681_v56 = vpop.f32.mrb[173].mxu0  ;;  %v6538_v23 = vld [vmem:[%s7766_s23 + $0x70] sm:$0xff]   ;;  %s6460_s23 = sshll.u32 %s7645_s27, 12  ;;  %s8883_s27 = scalar_lea.sflag [#allocation5], %s283_s10 }
 0x403   : > { %5885 = vst.msk [vmem:[%s8766_s17 + $0x68] sm:$0xff] %vm424_vm0, %v5853_v36  ;;  %v5682_v9 = vadd.f32 %v8756_v27, %v5681_v56  ;;  %v7165_v25 = vpop.f32.mrb[174].mxu0  ;;  %s8871_s21 = scalar_lea.hbm %s8936_s7, %s6460_s23 }
 0x404   : > { %v5826_v46 = vadd.f32 %v6499_v39, %v5690_v16  ;;  %v5693_v8 = vadd.f32 %v7165_v25, %v8756_v27  ;;  %v5684_v37 = vpop.f32.mrb[175].mxu0 }
 0x405   : > { %v5824_v21 = vadd.f32 %v6495_v47, %v5682_v9  ;;  %v5685_v3 = vadd.f32 %v8756_v27, %v5684_v37  ;;  %v6523_v47 = vunpack.c.l.bf16 %v6539_v54  ;;  %v6520_v37 = vunpack.c.h.bf16 %v6538_v23 }
 0x406   : > { %v5858_v62 = vmax.f32 %v5826_v46, 0.0  ;;  %v5827_v20 = vadd.f32 %v6500_v31, %v5693_v8  ;;  %v6519_v31 = vunpack.c.l.bf16 %v6538_v23 }
 0x407   : > { %v5856_v55 = vmax.f32 %v5824_v21, 0.0  ;;  %v5825_v6 = vadd.f32 %v6496_v50, %v5685_v3  ;;  %v6524_v50 = vunpack.c.h.bf16 %v6539_v54 }
 0x408   : > { %5890 = vst.msk [vmem:[%s8766_s17 + $0x90] sm:$0xff] %vm424_vm0, %v5858_v62  ;;  %v5859_v12 = vmax.f32 %v5827_v20, 0.0 }
 0x409   : > { %5888 = vst.msk [vmem:[%s8766_s17 + $0x80] sm:$0xff] %vm424_vm0, %v5856_v55  ;;  %v5857_v63 = vmax.f32 %v5825_v6, 0.0  ;;  %v7168_v28 = vpop.f32.mrb[176].mxu0 }
 0x40a   : > { %5891 = vst.msk [vmem:[%s8766_s17 + $0x98] sm:$0xff] %vm424_vm0, %v5859_v12  ;;  %v5706_v13 = vadd.f32 %v7168_v28, %v8756_v27  ;;  %v5697_v18 = vpop.f32.mrb[177].mxu0 }
 0x40b   : > { %5889 = vst.msk [vmem:[%s8766_s17 + $0x88] sm:$0xff] %vm424_vm0, %v5857_v63  ;;  %v5698_v45 = vadd.f32 %v8756_v27, %v5697_v18  ;;  %v7169_v33 = vpop.f32.mrb[178].mxu0 }
 0x40c   : > { %v5830_v52 = vadd.f32 %v6507_v38, %v5706_v13  ;;  %v5709_v15 = vadd.f32 %v7169_v33, %v8756_v27  ;;  %v5700_v26 = vpop.f32.mrb[179].mxu0 }
 0x40d   : > { %v5828_v7 = vadd.f32 %v6503_v53, %v5698_v45  ;;  %v5701_v35 = vadd.f32 %v8756_v27, %v5700_v26 }
 0x40e   : > { %v5862_v51 = vmax.f32 %v5830_v52, 0.0  ;;  %v5831_v61 = vadd.f32 %v6508_v58, %v5709_v15 }
 0x40f   : > { %v5860_v22 = vmax.f32 %v5828_v7, 0.0  ;;  %v5829_v4 = vadd.f32 %v6504_v14, %v5701_v35 }
 0x410   : > { %5894 = vst.msk [vmem:[%s8766_s17 + $0xb0] sm:$0xff] %vm424_vm0, %v5862_v51  ;;  %v5863_v48 = vmax.f32 %v5831_v61, 0.0 }
 0x411   : > { %5892 = vst.msk [vmem:[%s8766_s17 + $0xa0] sm:$0xff] %vm424_vm0, %v5860_v22  ;;  %v5861_v5 = vmax.f32 %v5829_v4, 0.0 }
 0x412   : > { %5895 = vst.msk [vmem:[%s8766_s17 + $0xb8] sm:$0xff] %vm424_vm0, %v5863_v48 }
 0x413   : > { %v7172_v11 = vpop.f32.mrb[180].mxu0  ;;  %5893 = vst.msk [vmem:[%s8766_s17 + $0xa8] sm:$0xff] %vm424_vm0, %v5861_v5 }
 0x414   : > { %v5722_v34 = vadd.f32 %v7172_v11, %v8756_v27  ;;  %v5713_v17 = vpop.f32.mrb[181].mxu0 }
 0x415   : > { %v5714_v0 = vadd.f32 %v8756_v27, %v5713_v17  ;;  %v7173_v41 = vpop.f32.mrb[182].mxu0 }
 0x416   : > { %v5834_v19 = vadd.f32 %v6515_v59, %v5722_v34  ;;  %v5725_v10 = vadd.f32 %v7173_v41, %v8756_v27  ;;  %v5716_v42 = vpop.f32.mrb[183].mxu0 }
 0x417   : > { %v5832_v40 = vadd.f32 %v6511_v30, %v5714_v0  ;;  %v5717_v1 = vadd.f32 %v8756_v27, %v5716_v42 }
 0x418   : > { %v5866_v32 = vmax.f32 %v5834_v19, 0.0  ;;  %v5835_v49 = vadd.f32 %v6516_v24, %v5725_v10 }
 0x419   : > { %v5864_v39 = vmax.f32 %v5832_v40, 0.0  ;;  %v5833_v36 = vadd.f32 %v6512_v43, %v5717_v1 }
 0x41a   : > { %5898 = vst.msk [vmem:[%s8766_s17 + $0xd0] sm:$0xff] %vm424_vm0, %v5866_v32  ;;  %v5867_v29 = vmax.f32 %v5835_v49, 0.0 }
 0x41b   : > { %5896 = vst.msk [vmem:[%s8766_s17 + $0xc0] sm:$0xff] %vm424_vm0, %v5864_v39  ;;  %v5865_v16 = vmax.f32 %v5833_v36, 0.0  ;;  %v7176_v56 = vpop.f32.mrb[184].mxu0 }
 0x41c   : > { %5899 = vst.msk [vmem:[%s8766_s17 + $0xd8] sm:$0xff] %vm424_vm0, %v5867_v29  ;;  %v5738_v9 = vadd.f32 %v7176_v56, %v8756_v27  ;;  %v5729_v25 = vpop.f32.mrb[185].mxu0 }
 0x41d   : > { %5897 = vst.msk [vmem:[%s8766_s17 + $0xc8] sm:$0xff] %vm424_vm0, %v5865_v16  ;;  %v5730_v46 = vadd.f32 %v8756_v27, %v5729_v25  ;;  %v7177_v8 = vpop.f32.mrb[186].mxu0 }
 0x41e   : > { %v5838_v21 = vadd.f32 %v6523_v47, %v5738_v9  ;;  %v5741_v3 = vadd.f32 %v7177_v8, %v8756_v27  ;;  %v5732_v57 = vpop.f32.mrb[187].mxu0 }
 0x41f   : > { %v5836_v62 = vadd.f32 %v6519_v31, %v5730_v46  ;;  %v5733_v20 = vadd.f32 %v8756_v27, %v5732_v57 }
 0x420   : > { %v5870_v2 = vmax.f32 %v5838_v21, 0.0  ;;  %v5839_v55 = vadd.f32 %v6524_v50, %v5741_v3 }
 0x421   : > { %v5868_v6 = vmax.f32 %v5836_v62, 0.0  ;;  %v5837_v12 = vadd.f32 %v6520_v37, %v5733_v20 }
 0x422   : > { %5902 = vst.msk [vmem:[%s8766_s17 + $0xf0] sm:$0xff] %vm424_vm0, %v5870_v2  ;;  %v5871_v38 = vmax.f32 %v5839_v55, 0.0 }
 0x423   : > { %5900 = vst.msk [vmem:[%s8766_s17 + $0xe0] sm:$0xff] %vm424_vm0, %v5868_v6  ;;  %v5869_v27 = vmax.f32 %v5837_v12, 0.0 }
 0x424   : > { %5903 = vst.msk [vmem:[%s8766_s17 + $0xf8] sm:$0xff] %vm424_vm0, %v5871_v38 }
 0x425   : > { %5901 = vst.msk [vmem:[%s8766_s17 + $0xe8] sm:$0xff] %vm424_vm0, %v5869_v27 }
 0x426   : > { %7588 = shalt.err (!%p7585_p5)
}
 0x427   : > { %s7589_s10 = scalar_lea.hbm %s8871_s21, 4096  ;;  %s7593_s17 = scalar_lea.hbm %s8936_s7, 8192 }
 0x428   : > { %p7590_p6 = scmp.ne.s32.totalorder %s8871_s21, %s7589_s10  ;;  %p7594_p10 = scmp.lt.u32.totalorder %s8871_s21, %s8936_s7 }
 0x429   : > { %p7595_p11 = scmp.lt.u32.totalorder %s7593_s17, %s7589_s10  ;;  %p7597_p13 = scmp.lt.u32.totalorder %s7589_s10, %s8871_s21 }
 0x42a   : > { %p7591_p7 = pnand %p7590_p6, %p7740_p4 }
 0x42b   : > { %p7596_p12 = por %p7595_p11, %p7594_p10 }
 0x42c   : > { %p7592_p9 = pneg %p7591_p7 }
 0x42d   : > { %p7598_p0 = por %p7597_p13, %p7596_p12 }
 0x42f   : > { %p7599_p1 = pnand %p7598_p0, %p7592_p9 }
 0x431   : > { %7602 = shalt.err (!%p7599_p1)
}
 0x432   : > { %s7658_s20 = smov 128   ;;  %s7659_s22 = smov 8  }
 0x433   : > { %7181 = dma.vmem_to_hbm [thread:$0]  (%p7740_p4), %s8873_s18, 4096, %s8871_s21, %s8883_s27, %s7658_s20, %s7658_s20, %s7659_s22  }
 0x434 PF: > { %p7187_p2 = scmp.ge.s32.totalorder %s7653_s29, 2  ;;  %s5936_s30 = sand.u32 1, %s7633_s24  }
 0x435   : > { %s5937_s8 = scalar_lea.sflag [#allocation5], %s5936_s30 }
 0x436   : > { %p7184_p3 = pnand %p7187_p2, %p7747_p8 }
 0x438   : > { %7628 = dma.done.wait (!%p7184_p3), %s5937_s8, 4096  }
 0x439   : > { %7630 = vsyncadd (!%p7184_p3), %s5937_s8, 4294963200  ;;  %s20_s29 = sadd.s32 1, %s7653_s29   ;;  %s8947_s24 = smov %s7637_s25 }
 0x43a   : > { %p17_p5 = scmp.ge.s32.totalorder %s20_s29, 4   ;;  %s8948_s25 = smov %s7641_s26 }
 0x43b   : > { %s8949_s26 = smov %s7753_s14  ;;  %s8950_s27 = smov %s7649_s28 }
 0x43c   : > { %s8951_s28 = smov %s8953_s9  ;;  %19 = sbr.rel (!%p17_p5) target bundleno = 4 (0x4), region = 89 }
 0x443   :  { %5942 = vsyncpa [#allocation5], 1 }
 0x444   :  { %5944 = vsyncpa [#allocation5 + $0x1], 1 }

</bundles_post_ra>
